<compile_context>
chip_gen: v7x
topology: tpu7x:2x2x1
jax: 0.10.0
libtpu: 0.0.40
codegen_flags: <defaults>
</compile_context>

<pallas_src>
import functools

import jax
import jax.numpy as jnp
from jax.experimental import pallas as pl
from jax.experimental.pallas import tpu as pltpu

# Model hyper-parameters (small, consistent with the module's forward:
# emb_size=128, hidden_size=256; vocab kept small for the demo).
VOCAB_SIZE = 256
EMB_SIZE = 128
HIDDEN_SIZE = 256
OUTPUT_SIZE = VOCAB_SIZE
NUM_STEPS = 3
PAD_TOKEN = 0

BATCH = 2
SEQ = 8


def _word_rrn_kernel(num_steps,
                     emb_ref,
                     w_in_ref, b_in_ref,
                     w_hcat_ref,            # (H, 2H): [w_m1[:H] | w_up[:H]]
                     w_m1b_ref, b_m1_ref,   # neighbor half of msg_fc1
                     w_m2_ref, b_m2_ref,
                     w_upb_ref, b_up_ref,   # x_in half of update_fc
                     w_out_ref, b_out_ref,
                     out_ref):
    B, S, E = emb_ref.shape
    H = w_in_ref.shape[1]
    BS = B * S

    # Hoist every weight/bias load out of the (Python-unrolled) step loop.
    w_hcat = w_hcat_ref[...]   # (H, 2H)
    w_m1b = w_m1b_ref[...]     # (H, H): multiplies neighbor h_j
    b_m1 = b_m1_ref[...]
    w_m2 = w_m2_ref[...]
    b_m2 = b_m2_ref[...]
    w_upb = w_upb_ref[...]     # (H, H): multiplies x_in (loop-invariant)
    b_up = b_up_ref[...]

    # h = relu(input_fc(emb)) -- recomputed identically inside the torch loop,
    # so compute once.
    emb2 = emb_ref[...].reshape(BS, E)
    x_in = jnp.maximum(
        jnp.dot(emb2, w_in_ref[...], preferred_element_type=jnp.float32)
        + b_in_ref[...], 0.0)
    h = x_in  # (BS, H)

    # Loop-invariant half of update_fc: dot(x_in, w_up[H:]) + b_up.
    upd_const = jnp.dot(x_in, w_upb, preferred_element_type=jnp.float32) + b_up

    # Per-row sequence position (row i of the flat layout is (b=i//S, t=i%S)).
    row = jax.lax.broadcasted_iota(jnp.int32, (BS, 1), 0)
    t = row % S
    mask_fwd = t >= 1          # m[:, 1:]  += msg(h[t], h[t-1])
    mask_bwd = t <= (S - 2)    # m[:, :-1] += msg(h[t], h[t+1])
    mask2 = jnp.concatenate([mask_fwd, mask_bwd], axis=0)  # (2*BS, 1)

    for _ in range(num_steps):
        # Neighbor rows via flat sublane rotates (XLU); cross-batch wrap rows
        # are zeroed by mask2 after the nonlinear message.
        h_prev = pltpu.roll(h, shift=1, axis=0)        # row t <- row t-1
        h_next = pltpu.roll(h, shift=BS - 1, axis=0)   # row t <- row t+1

        # One fused matmul produces both the shared msg_fc1 term and the
        # update_fc h-term (lane slice at H is vreg-tile aligned -> free).
        a = jnp.dot(h, w_hcat, preferred_element_type=jnp.float32)  # (BS, 2H)
        shared = a[:, :H] + b_m1          # msg_fc1 h_i half (+bias)
        upd_h = a[:, H:]                  # update_fc h half

        # Fuse the two neighbor matmuls by stacking along rows (sublanes).
        h_nb = jnp.concatenate([h_prev, h_next], axis=0)            # (2BS, H)
        nb = jnp.dot(h_nb, w_m1b, preferred_element_type=jnp.float32)
        shared2 = jnp.concatenate([shared, shared], axis=0)         # (2BS, H)
        pre = jnp.maximum(nb + shared2, 0.0)

        # Single fused msg_fc2 matmul for both directions.
        m_stack = jnp.maximum(
            jnp.dot(pre, w_m2, preferred_element_type=jnp.float32) + b_m2, 0.0)
        m_stack = jnp.where(mask2, m_stack, 0.0)
        m = m_stack[:BS] + m_stack[BS:]

        # update_fc: relu(dot(h, w_upa) + dot(x_in, w_upb) + b_up + m).
        h = jnp.maximum(upd_h + upd_const + m, 0.0)

    # Mean-pool over the sequence, project, log-softmax.
    h_pool = jnp.mean(h.reshape(B, S, H), axis=1)  # (B, H)
    logits = (jnp.dot(h_pool, w_out_ref[...], preferred_element_type=jnp.float32)
              + b_out_ref[...])                    # (B, V)
    mx = jnp.max(logits, axis=-1, keepdims=True)
    shifted = logits - mx
    lse = jnp.log(jnp.sum(jnp.exp(shifted), axis=-1, keepdims=True))
    out_ref[...] = shifted - lse


def word_rrn_forward(input_words, params, num_steps=NUM_STEPS):
    """Pallas-backed forward of WordRRN. input_words: (B, S) int32."""
    B, S = input_words.shape
    H = HIDDEN_SIZE

    # Embedding lookup (glue; gather stays in plain JAX).
    emb = params["emb_table"][input_words]  # (B, S, E), row 0 zeros (padding_idx)

    # seq_len == 1 branch of the torch module == same pipeline with 0 message steps.
    steps = 0 if S == 1 else num_steps

    # Pre-split/fuse the concatenation weights so the kernel never forms
    # (BS, 2H) lane concats of activations:
    #   w_hcat = [msg_fc1 h-half | update_fc h-half]  (H, 2H)
    w_hcat = jnp.concatenate([params["w_m1"][:H], params["w_up"][:H]], axis=1)
    w_m1b = params["w_m1"][H:]
    w_upb = params["w_up"][H:]

    # TODO(synk): weights could be cast to bf16 to halve HBM traffic; kept f32
    # to preserve the f32 module semantics within the 1e-3 check below.
    kernel = functools.partial(_word_rrn_kernel, steps)
    vmem = pl.BlockSpec(memory_space=pltpu.MemorySpace.VMEM)
    args = (emb,
            params["w_in"], params["b_in"],
            w_hcat,
            w_m1b, params["b_m1"],
            params["w_m2"], params["b_m2"],
            w_upb, params["b_up"],
            params["w_out"], params["b_out"])
    return pl.pallas_call(
        kernel,
        out_shape=jax.ShapeDtypeStruct((B, OUTPUT_SIZE), jnp.float32),
        in_specs=[vmem] * len(args),
        out_specs=vmem,
    )(*args)


def init_params(key):
    ks = jax.random.split(key, 12)
    scale = 0.05

    def lin(kw, kb, fan_in, fan_out):
        w = scale * jax.random.normal(kw, (fan_in, fan_out), jnp.float32)
        b = scale * jax.random.normal(kb, (1, fan_out), jnp.float32)
        return w, b

    emb_table = scale * jax.random.normal(ks[0], (VOCAB_SIZE, EMB_SIZE), jnp.float32)
    emb_table = emb_table.at[PAD_TOKEN].set(0.0)  # padding_idx=0

    w_in, b_in = lin(ks[1], ks[2], EMB_SIZE, HIDDEN_SIZE)
    w_m1, b_m1 = lin(ks[3], ks[4], 2 * HIDDEN_SIZE, HIDDEN_SIZE)
    w_m2, b_m2 = lin(ks[5], ks[6], HIDDEN_SIZE, HIDDEN_SIZE)
    w_up, b_up = lin(ks[7], ks[8], 2 * HIDDEN_SIZE, HIDDEN_SIZE)
    w_out, b_out = lin(ks[9], ks[10], HIDDEN_SIZE, OUTPUT_SIZE)
    return dict(emb_table=emb_table,
                w_in=w_in, b_in=b_in,
                w_m1=w_m1, b_m1=b_m1,
                w_m2=w_m2, b_m2=b_m2,
                w_up=w_up, b_up=b_up,
                w_out=w_out, b_out=b_out)


def ref_forward(input_words, p, num_steps=NUM_STEPS):
    """Pure-JAX reference mirroring the torch forward (cat along feature dim)."""
    emb = p["emb_table"][input_words]
    x_in = jax.nn.relu(emb @ p["w_in"] + p["b_in"])
    h = x_in
    B, S, H = h.shape

    def msg(h_i, h_j):
        x = jnp.concatenate([h_i, h_j], -1)
        m = jax.nn.relu(x @ p["w_m1"] + p["b_m1"])
        return jax.nn.relu(m @ p["w_m2"] + p["b_m2"])

    if S > 1:
        for _ in range(num_steps):
            m = jnp.zeros_like(h)
            m = m.at[:, 1:].add(msg(h[:, 1:], h[:, :-1]))
            m = m.at[:, :-1].add(msg(h[:, :-1], h[:, 1:]))
            h = jax.nn.relu(jnp.concatenate([h, x_in], -1) @ p["w_up"]
                            + p["b_up"] + m)
    h_pool = h.mean(axis=1)
    logits = h_pool @ p["w_out"] + p["b_out"]
    return jax.nn.log_softmax(logits, axis=-1)


if __name__ == "__main__":
    key = jax.random.PRNGKey(0)
    k_param, k_tok = jax.random.split(key)
    params = init_params(k_param)
    input_words = jax.random.randint(k_tok, (BATCH, SEQ), 0, VOCAB_SIZE, jnp.int32)

    out = word_rrn_forward(input_words, params)
    out = jax.block_until_ready(out)

    ref = ref_forward(input_words, params)
    assert out.shape == (BATCH, OUTPUT_SIZE)
    assert jnp.allclose(out, ref, atol=1e-3, rtol=1e-3), float(jnp.abs(out - ref).max())
    print("KERNEL_OK")
</pallas_src>

<mosaic_0001>
module attributes {stable_mosaic.version = 11 : i64} {
  func.func @_word_rrn_kernel(%arg0: memref<2x8x128xf32, #tpu.memory_space<vmem>>, %arg1: memref<128x256xf32, #tpu.memory_space<vmem>>, %arg2: memref<1x256xf32, #tpu.memory_space<vmem>>, %arg3: memref<256x512xf32, #tpu.memory_space<vmem>>, %arg4: memref<256x256xf32, #tpu.memory_space<vmem>>, %arg5: memref<1x256xf32, #tpu.memory_space<vmem>>, %arg6: memref<256x256xf32, #tpu.memory_space<vmem>>, %arg7: memref<1x256xf32, #tpu.memory_space<vmem>>, %arg8: memref<256x256xf32, #tpu.memory_space<vmem>>, %arg9: memref<1x256xf32, #tpu.memory_space<vmem>>, %arg10: memref<256x256xf32, #tpu.memory_space<vmem>>, %arg11: memref<1x256xf32, #tpu.memory_space<vmem>>, %arg12: memref<2x256xf32, #tpu.memory_space<vmem>>) attributes {dimension_semantics = [], scalar_prefetch = 0 : i64, scratch_operands = 0 : i64, tpu.core_type = #tpu.core_type<tc>} {
    %c0 = arith.constant 0 : index
    %c0_0 = arith.constant 0 : index
    %0 = vector.load %arg3[%c0, %c0_0] : memref<256x512xf32, #tpu.memory_space<vmem>>, vector<256x512xf32>
    %c0_1 = arith.constant 0 : index
    %c0_2 = arith.constant 0 : index
    %1 = vector.load %arg4[%c0_1, %c0_2] : memref<256x256xf32, #tpu.memory_space<vmem>>, vector<256x256xf32>
    %c0_3 = arith.constant 0 : index
    %c0_4 = arith.constant 0 : index
    %2 = vector.load %arg5[%c0_3, %c0_4] : memref<1x256xf32, #tpu.memory_space<vmem>>, vector<1x256xf32>
    %c0_5 = arith.constant 0 : index
    %c0_6 = arith.constant 0 : index
    %3 = vector.load %arg6[%c0_5, %c0_6] : memref<256x256xf32, #tpu.memory_space<vmem>>, vector<256x256xf32>
    %c0_7 = arith.constant 0 : index
    %c0_8 = arith.constant 0 : index
    %4 = vector.load %arg7[%c0_7, %c0_8] : memref<1x256xf32, #tpu.memory_space<vmem>>, vector<1x256xf32>
    %c0_9 = arith.constant 0 : index
    %c0_10 = arith.constant 0 : index
    %5 = vector.load %arg8[%c0_9, %c0_10] : memref<256x256xf32, #tpu.memory_space<vmem>>, vector<256x256xf32>
    %c0_11 = arith.constant 0 : index
    %c0_12 = arith.constant 0 : index
    %6 = vector.load %arg9[%c0_11, %c0_12] : memref<1x256xf32, #tpu.memory_space<vmem>>, vector<1x256xf32>
    %c0_13 = arith.constant 0 : index
    %c0_14 = arith.constant 0 : index
    %c0_15 = arith.constant 0 : index
    %7 = vector.load %arg0[%c0_13, %c0_14, %c0_15] : memref<2x8x128xf32, #tpu.memory_space<vmem>>, vector<2x8x128xf32>
    %8 = vector.shape_cast %7 : vector<2x8x128xf32> to vector<16x128xf32>
    %c0_16 = arith.constant 0 : index
    %c0_17 = arith.constant 0 : index
    %9 = vector.load %arg1[%c0_16, %c0_17] : memref<128x256xf32, #tpu.memory_space<vmem>>, vector<128x256xf32>
    %cst = arith.constant dense<0.000000e+00> : vector<16x256xf32>
    %10 = tpu.matmul %8, %9, %cst {dimension_numbers = #tpu.dot_dimension_numbers<[1], [0], [0], [1], [0, 0, 1, 1], [], []>} : vector<16x128xf32>, vector<128x256xf32>, vector<16x256xf32> -> vector<16x256xf32>
    %c0_18 = arith.constant 0 : index
    %c0_19 = arith.constant 0 : index
    %11 = vector.load %arg2[%c0_18, %c0_19] : memref<1x256xf32, #tpu.memory_space<vmem>>, vector<1x256xf32>
    %12 = vector.broadcast %11 : vector<1x256xf32> to vector<16x256xf32>
    %13 = arith.addf %10, %12 : vector<16x256xf32>
    %cst_20 = arith.constant 0.000000e+00 : f32
    %14 = vector.broadcast %cst_20 : f32 to vector<16x256xf32>
    %15 = arith.maximumf %13, %14 : vector<16x256xf32>
    %cst_21 = arith.constant dense<0.000000e+00> : vector<16x256xf32>
    %16 = tpu.matmul %15, %5, %cst_21 {dimension_numbers = #tpu.dot_dimension_numbers<[1], [0], [0], [1], [0, 0, 1, 1], [], []>} : vector<16x256xf32>, vector<256x256xf32>, vector<16x256xf32> -> vector<16x256xf32>
    %17 = vector.broadcast %6 : vector<1x256xf32> to vector<16x256xf32>
    %18 = arith.addf %16, %17 : vector<16x256xf32>
    %19 = tpu.iota {dimensions = array<i32: 0>} : vector<16x1xi32>
    %c8_i32 = arith.constant 8 : i32
    %c0_i32 = arith.constant 0 : i32
    %20 = arith.cmpi eq, %c8_i32, %c0_i32 : i32
    %c1_i32 = arith.constant 1 : i32
    %21 = arith.select %20, %c1_i32, %c8_i32 : i32
    %22 = vector.broadcast %21 : i32 to vector<16x1xi32>
    %23 = arith.remsi %19, %22 : vector<16x1xi32>
    %c0_i32_22 = arith.constant 0 : i32
    %24 = vector.broadcast %c0_i32_22 : i32 to vector<16x1xi32>
    %25 = arith.cmpi ne, %23, %24 : vector<16x1xi32>
    %c0_i32_23 = arith.constant 0 : i32
    %26 = vector.broadcast %c0_i32_23 : i32 to vector<16x1xi32>
    %27 = arith.cmpi slt, %23, %26 : vector<16x1xi32>
    %c0_i32_24 = arith.constant 0 : i32
    %28 = arith.cmpi slt, %21, %c0_i32_24 : i32
    %29 = vector.broadcast %28 : i1 to vector<16x1xi1>
    %30 = vector.broadcast %29 : vector<16x1xi1> to vector<16x1xi1>
    %31 = arith.xori %27, %30 : vector<16x1xi1>
    %32 = arith.andi %31, %25 : vector<16x1xi1>
    %33 = vector.broadcast %21 : i32 to vector<16x1xi32>
    %34 = arith.addi %23, %33 : vector<16x1xi32>
    %35 = arith.select %32, %34, %23 : vector<16x1xi1>, vector<16x1xi32>
    %c1_i32_25 = arith.constant 1 : i32
    %36 = vector.broadcast %c1_i32_25 : i32 to vector<16x1xi32>
    %37 = arith.cmpi sge, %35, %36 : vector<16x1xi32>
    %c6_i32 = arith.constant 6 : i32
    %38 = vector.broadcast %c6_i32 : i32 to vector<16x1xi32>
    %39 = arith.cmpi sle, %35, %38 : vector<16x1xi32>
    %40 = tpu.concatenate %37, %39 in 0 : vector<16x1xi1>, vector<16x1xi1> -> vector<32x1xi1>
    %c1_i32_26 = arith.constant 1 : i32
    %41 = tpu.dynamic_rotate %15 by %c1_i32_26 dim 0 : vector<16x256xf32>, i32 -> vector<16x256xf32>
    %c15_i32 = arith.constant 15 : i32
    %42 = tpu.dynamic_rotate %15 by %c15_i32 dim 0 : vector<16x256xf32>, i32 -> vector<16x256xf32>
    %cst_27 = arith.constant dense<0.000000e+00> : vector<16x512xf32>
    %43 = tpu.matmul %15, %0, %cst_27 {dimension_numbers = #tpu.dot_dimension_numbers<[1], [0], [0], [1], [0, 0, 1, 1], [], []>} : vector<16x256xf32>, vector<256x512xf32>, vector<16x512xf32> -> vector<16x512xf32>
    %44 = vector.extract_strided_slice %43 {offsets = [0, 0], sizes = [16, 256], strides = [1, 1]} : vector<16x512xf32> to vector<16x256xf32>
    %45 = vector.broadcast %2 : vector<1x256xf32> to vector<16x256xf32>
    %46 = arith.addf %44, %45 : vector<16x256xf32>
    %47 = vector.extract_strided_slice %43 {offsets = [0, 256], sizes = [16, 256], strides = [1, 1]} : vector<16x512xf32> to vector<16x256xf32>
    %48 = tpu.concatenate %41, %42 in 0 : vector<16x256xf32>, vector<16x256xf32> -> vector<32x256xf32>
    %cst_28 = arith.constant dense<0.000000e+00> : vector<32x256xf32>
    %49 = tpu.matmul %48, %1, %cst_28 {dimension_numbers = #tpu.dot_dimension_numbers<[1], [0], [0], [1], [0, 0, 1, 1], [], []>} : vector<32x256xf32>, vector<256x256xf32>, vector<32x256xf32> -> vector<32x256xf32>
    %50 = tpu.concatenate %46, %46 in 0 : vector<16x256xf32>, vector<16x256xf32> -> vector<32x256xf32>
    %51 = arith.addf %49, %50 : vector<32x256xf32>
    %cst_29 = arith.constant 0.000000e+00 : f32
    %52 = vector.broadcast %cst_29 : f32 to vector<32x256xf32>
    %53 = arith.maximumf %51, %52 : vector<32x256xf32>
    %cst_30 = arith.constant dense<0.000000e+00> : vector<32x256xf32>
    %54 = tpu.matmul %53, %3, %cst_30 {dimension_numbers = #tpu.dot_dimension_numbers<[1], [0], [0], [1], [0, 0, 1, 1], [], []>} : vector<32x256xf32>, vector<256x256xf32>, vector<32x256xf32> -> vector<32x256xf32>
    %55 = vector.broadcast %4 : vector<1x256xf32> to vector<32x256xf32>
    %56 = arith.addf %54, %55 : vector<32x256xf32>
    %cst_31 = arith.constant 0.000000e+00 : f32
    %57 = vector.broadcast %cst_31 : f32 to vector<32x256xf32>
    %58 = arith.maximumf %56, %57 : vector<32x256xf32>
    %cst_32 = arith.constant 0.000000e+00 : f32
    %59 = vector.shape_cast %40 : vector<32x1xi1> to vector<32x1xi1>
    %60 = vector.broadcast %59 : vector<32x1xi1> to vector<32x256xi1>
    %61 = vector.broadcast %cst_32 : f32 to vector<32x256xf32>
    %62 = arith.select %60, %58, %61 : vector<32x256xi1>, vector<32x256xf32>
    %63 = vector.extract_strided_slice %62 {offsets = [0, 0], sizes = [16, 256], strides = [1, 1]} : vector<32x256xf32> to vector<16x256xf32>
    %64 = vector.extract_strided_slice %62 {offsets = [16, 0], sizes = [16, 256], strides = [1, 1]} : vector<32x256xf32> to vector<16x256xf32>
    %65 = arith.addf %63, %64 : vector<16x256xf32>
    %66 = arith.addf %47, %18 : vector<16x256xf32>
    %67 = arith.addf %66, %65 : vector<16x256xf32>
    %cst_33 = arith.constant 0.000000e+00 : f32
    %68 = vector.broadcast %cst_33 : f32 to vector<16x256xf32>
    %69 = arith.maximumf %67, %68 : vector<16x256xf32>
    %c1_i32_34 = arith.constant 1 : i32
    %70 = tpu.dynamic_rotate %69 by %c1_i32_34 dim 0 : vector<16x256xf32>, i32 -> vector<16x256xf32>
    %c15_i32_35 = arith.constant 15 : i32
    %71 = tpu.dynamic_rotate %69 by %c15_i32_35 dim 0 : vector<16x256xf32>, i32 -> vector<16x256xf32>
    %cst_36 = arith.constant dense<0.000000e+00> : vector<16x512xf32>
    %72 = tpu.matmul %69, %0, %cst_36 {dimension_numbers = #tpu.dot_dimension_numbers<[1], [0], [0], [1], [0, 0, 1, 1], [], []>} : vector<16x256xf32>, vector<256x512xf32>, vector<16x512xf32> -> vector<16x512xf32>
    %73 = vector.extract_strided_slice %72 {offsets = [0, 0], sizes = [16, 256], strides = [1, 1]} : vector<16x512xf32> to vector<16x256xf32>
    %74 = vector.broadcast %2 : vector<1x256xf32> to vector<16x256xf32>
    %75 = arith.addf %73, %74 : vector<16x256xf32>
    %76 = vector.extract_strided_slice %72 {offsets = [0, 256], sizes = [16, 256], strides = [1, 1]} : vector<16x512xf32> to vector<16x256xf32>
    %77 = tpu.concatenate %70, %71 in 0 : vector<16x256xf32>, vector<16x256xf32> -> vector<32x256xf32>
    %cst_37 = arith.constant dense<0.000000e+00> : vector<32x256xf32>
    %78 = tpu.matmul %77, %1, %cst_37 {dimension_numbers = #tpu.dot_dimension_numbers<[1], [0], [0], [1], [0, 0, 1, 1], [], []>} : vector<32x256xf32>, vector<256x256xf32>, vector<32x256xf32> -> vector<32x256xf32>
    %79 = tpu.concatenate %75, %75 in 0 : vector<16x256xf32>, vector<16x256xf32> -> vector<32x256xf32>
    %80 = arith.addf %78, %79 : vector<32x256xf32>
    %cst_38 = arith.constant 0.000000e+00 : f32
    %81 = vector.broadcast %cst_38 : f32 to vector<32x256xf32>
    %82 = arith.maximumf %80, %81 : vector<32x256xf32>
    %cst_39 = arith.constant dense<0.000000e+00> : vector<32x256xf32>
    %83 = tpu.matmul %82, %3, %cst_39 {dimension_numbers = #tpu.dot_dimension_numbers<[1], [0], [0], [1], [0, 0, 1, 1], [], []>} : vector<32x256xf32>, vector<256x256xf32>, vector<32x256xf32> -> vector<32x256xf32>
    %84 = vector.broadcast %4 : vector<1x256xf32> to vector<32x256xf32>
    %85 = arith.addf %83, %84 : vector<32x256xf32>
    %cst_40 = arith.constant 0.000000e+00 : f32
    %86 = vector.broadcast %cst_40 : f32 to vector<32x256xf32>
    %87 = arith.maximumf %85, %86 : vector<32x256xf32>
    %cst_41 = arith.constant 0.000000e+00 : f32
    %88 = vector.shape_cast %40 : vector<32x1xi1> to vector<32x1xi1>
    %89 = vector.broadcast %88 : vector<32x1xi1> to vector<32x256xi1>
    %90 = vector.broadcast %cst_41 : f32 to vector<32x256xf32>
    %91 = arith.select %89, %87, %90 : vector<32x256xi1>, vector<32x256xf32>
    %92 = vector.extract_strided_slice %91 {offsets = [0, 0], sizes = [16, 256], strides = [1, 1]} : vector<32x256xf32> to vector<16x256xf32>
    %93 = vector.extract_strided_slice %91 {offsets = [16, 0], sizes = [16, 256], strides = [1, 1]} : vector<32x256xf32> to vector<16x256xf32>
    %94 = arith.addf %92, %93 : vector<16x256xf32>
    %95 = arith.addf %76, %18 : vector<16x256xf32>
    %96 = arith.addf %95, %94 : vector<16x256xf32>
    %cst_42 = arith.constant 0.000000e+00 : f32
    %97 = vector.broadcast %cst_42 : f32 to vector<16x256xf32>
    %98 = arith.maximumf %96, %97 : vector<16x256xf32>
    %c1_i32_43 = arith.constant 1 : i32
    %99 = tpu.dynamic_rotate %98 by %c1_i32_43 dim 0 : vector<16x256xf32>, i32 -> vector<16x256xf32>
    %c15_i32_44 = arith.constant 15 : i32
    %100 = tpu.dynamic_rotate %98 by %c15_i32_44 dim 0 : vector<16x256xf32>, i32 -> vector<16x256xf32>
    %cst_45 = arith.constant dense<0.000000e+00> : vector<16x512xf32>
    %101 = tpu.matmul %98, %0, %cst_45 {dimension_numbers = #tpu.dot_dimension_numbers<[1], [0], [0], [1], [0, 0, 1, 1], [], []>} : vector<16x256xf32>, vector<256x512xf32>, vector<16x512xf32> -> vector<16x512xf32>
    %102 = vector.extract_strided_slice %101 {offsets = [0, 0], sizes = [16, 256], strides = [1, 1]} : vector<16x512xf32> to vector<16x256xf32>
    %103 = vector.broadcast %2 : vector<1x256xf32> to vector<16x256xf32>
    %104 = arith.addf %102, %103 : vector<16x256xf32>
    %105 = vector.extract_strided_slice %101 {offsets = [0, 256], sizes = [16, 256], strides = [1, 1]} : vector<16x512xf32> to vector<16x256xf32>
    %106 = tpu.concatenate %99, %100 in 0 : vector<16x256xf32>, vector<16x256xf32> -> vector<32x256xf32>
    %cst_46 = arith.constant dense<0.000000e+00> : vector<32x256xf32>
    %107 = tpu.matmul %106, %1, %cst_46 {dimension_numbers = #tpu.dot_dimension_numbers<[1], [0], [0], [1], [0, 0, 1, 1], [], []>} : vector<32x256xf32>, vector<256x256xf32>, vector<32x256xf32> -> vector<32x256xf32>
    %108 = tpu.concatenate %104, %104 in 0 : vector<16x256xf32>, vector<16x256xf32> -> vector<32x256xf32>
    %109 = arith.addf %107, %108 : vector<32x256xf32>
    %cst_47 = arith.constant 0.000000e+00 : f32
    %110 = vector.broadcast %cst_47 : f32 to vector<32x256xf32>
    %111 = arith.maximumf %109, %110 : vector<32x256xf32>
    %cst_48 = arith.constant dense<0.000000e+00> : vector<32x256xf32>
    %112 = tpu.matmul %111, %3, %cst_48 {dimension_numbers = #tpu.dot_dimension_numbers<[1], [0], [0], [1], [0, 0, 1, 1], [], []>} : vector<32x256xf32>, vector<256x256xf32>, vector<32x256xf32> -> vector<32x256xf32>
    %113 = vector.broadcast %4 : vector<1x256xf32> to vector<32x256xf32>
    %114 = arith.addf %112, %113 : vector<32x256xf32>
    %cst_49 = arith.constant 0.000000e+00 : f32
    %115 = vector.broadcast %cst_49 : f32 to vector<32x256xf32>
    %116 = arith.maximumf %114, %115 : vector<32x256xf32>
    %cst_50 = arith.constant 0.000000e+00 : f32
    %117 = vector.shape_cast %40 : vector<32x1xi1> to vector<32x1xi1>
    %118 = vector.broadcast %117 : vector<32x1xi1> to vector<32x256xi1>
    %119 = vector.broadcast %cst_50 : f32 to vector<32x256xf32>
    %120 = arith.select %118, %116, %119 : vector<32x256xi1>, vector<32x256xf32>
    %121 = vector.extract_strided_slice %120 {offsets = [0, 0], sizes = [16, 256], strides = [1, 1]} : vector<32x256xf32> to vector<16x256xf32>
    %122 = vector.extract_strided_slice %120 {offsets = [16, 0], sizes = [16, 256], strides = [1, 1]} : vector<32x256xf32> to vector<16x256xf32>
    %123 = arith.addf %121, %122 : vector<16x256xf32>
    %124 = arith.addf %105, %18 : vector<16x256xf32>
    %125 = arith.addf %124, %123 : vector<16x256xf32>
    %cst_51 = arith.constant 0.000000e+00 : f32
    %126 = vector.broadcast %cst_51 : f32 to vector<16x256xf32>
    %127 = arith.maximumf %125, %126 : vector<16x256xf32>
    %128 = vector.shape_cast %127 : vector<16x256xf32> to vector<2x8x256xf32>
    %cst_52 = arith.constant dense<0.000000e+00> : vector<2x256xf32>
    %129 = vector.multi_reduction <add>, %128, %cst_52 [1] : vector<2x8x256xf32> to vector<2x256xf32>
    %cst_53 = arith.constant 8.000000e+00 : f32
    %130 = vector.broadcast %cst_53 : f32 to vector<2x256xf32>
    %131 = arith.divf %129, %130 : vector<2x256xf32>
    %c0_54 = arith.constant 0 : index
    %c0_55 = arith.constant 0 : index
    %132 = vector.load %arg10[%c0_54, %c0_55] : memref<256x256xf32, #tpu.memory_space<vmem>>, vector<256x256xf32>
    %cst_56 = arith.constant dense<0.000000e+00> : vector<2x256xf32>
    %133 = tpu.matmul %131, %132, %cst_56 {dimension_numbers = #tpu.dot_dimension_numbers<[1], [0], [0], [1], [0, 0, 1, 1], [], []>} : vector<2x256xf32>, vector<256x256xf32>, vector<2x256xf32> -> vector<2x256xf32>
    %c0_57 = arith.constant 0 : index
    %c0_58 = arith.constant 0 : index
    %134 = vector.load %arg11[%c0_57, %c0_58] : memref<1x256xf32, #tpu.memory_space<vmem>>, vector<1x256xf32>
    %135 = vector.broadcast %134 : vector<1x256xf32> to vector<2x256xf32>
    %136 = arith.addf %133, %135 : vector<2x256xf32>
    %cst_59 = arith.constant dense<0xFF800000> : vector<2xf32>
    %137 = vector.multi_reduction <maximumf>, %136, %cst_59 [1] : vector<2x256xf32> to vector<2xf32>
    %138 = vector.shape_cast %137 : vector<2xf32> to vector<2x1xf32>
    %139 = vector.broadcast %138 : vector<2x1xf32> to vector<2x256xf32>
    %140 = arith.subf %136, %139 : vector<2x256xf32>
    %141 = math.exp %140 : vector<2x256xf32>
    %cst_60 = arith.constant dense<0.000000e+00> : vector<2xf32>
    %142 = vector.multi_reduction <add>, %141, %cst_60 [1] : vector<2x256xf32> to vector<2xf32>
    %143 = vector.shape_cast %142 : vector<2xf32> to vector<2x1xf32>
    %144 = math.log %143 : vector<2x1xf32>
    %145 = vector.broadcast %144 : vector<2x1xf32> to vector<2x256xf32>
    %146 = arith.subf %140, %145 : vector<2x256xf32>
    %c0_61 = arith.constant 0 : index
    %c0_62 = arith.constant 0 : index
    %147 = vector.load %arg12[%c0_61, %c0_62] : memref<2x256xf32, #tpu.memory_space<vmem>>, vector<2x256xf32>
    tpu.vector_store %arg12[%c0_61, %c0_62], %146 {strides = array<i32>} : memref<2x256xf32, #tpu.memory_space<vmem>>, vector<2x256xf32>,
    return
  }
}

</mosaic_0001>

<bundles_post_ra>
// kernel: tpu_custom_call.1
= control target key start
LH: loop header
LB: loop body
LE: loop exit
PB: predicated region body
PF: predicated region fallthrough
CT: control target
= control target key end

     0   :  { %17 = vsyncpa [#allocation3], 0  ;;  %s4469_s0 = inlined_call_operand.hbm [shape: f32[2,8,128], index: 0, kind: input, shape index: {}]   ;;  %s4470_s1 = inlined_call_operand.hbm [shape: f32[128,256], index: 1, kind: input, shape index: {}]   ;;  %s4471_s2 = inlined_call_operand.vmem [shape: f32[1,256], index: 2, kind: input, shape index: {}]   ;;  %s4472_s3 = inlined_call_operand.hbm [shape: f32[256,512], index: 3, kind: input, shape index: {}]   ;;  %s4473_s4 = inlined_call_operand.hbm [shape: f32[256,256], index: 4, kind: input, shape index: {}]   ;;  %s4474_s5 = inlined_call_operand.vmem [shape: f32[1,256], index: 5, kind: input, shape index: {}]   ;;  %s4475_s6 = inlined_call_operand.hbm [shape: f32[256,256], index: 6, kind: input, shape index: {}]   ;;  %s4476_s7 = inlined_call_operand.vmem [shape: f32[1,256], index: 7, kind: input, shape index: {}]   ;;  %s4477_s8 = inlined_call_operand.hbm [shape: f32[256,256], index: 8, kind: input, shape index: {}]   ;;  %s4478_s9 = inlined_call_operand.vmem [shape: f32[1,256], index: 9, kind: input, shape index: {}]   ;;  %s4479_s10 = inlined_call_operand.hbm [shape: f32[256,256], index: 10, kind: input, shape index: {}]   ;;  %s4480_s11 = inlined_call_operand.vmem [shape: f32[1,256], index: 11, kind: input, shape index: {}]   ;;  %s4481_s12 = inlined_call_operand.hbm [shape: f32[2,256], index: 12, kind: output, shape index: {}]  }
   0x1   :  { %18 = vsyncpa [#allocation6], 0 }
   0x2   :  { %19 = vsyncpa [#allocation9], 0 }
   0x3   :  { %20 = vsyncpa [#allocation12], 0 }
   0x4   :  { %21 = vsyncpa [#allocation4], 0  ;;  %s3301_s21 = smov [#allocation5]   ;;  %s3115_s25 = scalar_lea.hbm %s4470_s1, 4096 }
   0x5   :  { %s39_s22 = sshll.u32 %s3301_s21, 4  ;;  %p3116_p0 = scmp.ne.s32.totalorder %s4470_s1, %s3115_s25  ;;  %s40_s22 = int_to_ptr.vmem [resolvable:$true] %s39_s22 }
   0x6   :  { %p3119_p1 = scmp.lt.u32.totalorder %s3115_s25, %s4470_s1 }
   0x8   :  { %p3121_p2 = pnand %p3119_p1, %p3116_p0 }
   0xa   :  { %3124 = shalt.err (!%p3121_p2)
}
   0xb   :  { %s3125_s30 = scalar_lea.vmem %s40_s22, 4096  ;;  %p3130_p4 = scmp.lt.s32.totalorder %s40_s22, %s40_s22 }
   0xc   :  { %p3126_p3 = scmp.ne.s32.totalorder %s40_s22, %s3125_s30  ;;  %p3131_p5 = scmp.lt.s32.totalorder %s3125_s30, %s3125_s30 }
   0xe   :  { %p3132_p6 = por %p3131_p5, %p3130_p4 }
  0x10   :  { %p3133_p7 = pnand %p3132_p6, %p3126_p3 }
  0x12   :  { %3136 = shalt.err (!%p3133_p7)
}
  0x13   :  { %s3302_s13 = smov 256   ;;  %s3303_s14 = smov 16  }
  0x14   :  { %45 = dma.hbm_to_vmem [thread:$0]  %s4470_s1, 4096, %s40_s22, [#allocation6], %s3302_s13, %s3302_s13, %s3303_s14  }
  0x15   :  { %s3304_s17 = smov [#allocation8]   ;;  %s3305_s19 = smov [#allocation11]  }
  0x16   :  { %s65_s18 = sshll.u32 %s3304_s17, 4  ;;  %s93_s20 = sshll.u32 %s3305_s19, 4  ;;  %s66_s18 = int_to_ptr.vmem [resolvable:$true] %s65_s18  ;;  %s94_s20 = int_to_ptr.vmem [resolvable:$true] %s93_s20 }
  0x17   :  { %s3137_s24 = scalar_lea.hbm %s4473_s4, 8192 }
  0x18   :  { %p3138_p8 = scmp.ne.s32.totalorder %s4473_s4, %s3137_s24  ;;  %p3141_p9 = scmp.lt.u32.totalorder %s3137_s24, %s4473_s4 }
  0x1a   :  { %p3143_p10 = pnand %p3141_p9, %p3138_p8 }
  0x1c   :  { %3146 = shalt.err (!%p3143_p10)
}
  0x1d   :  { %s3147_s1 = scalar_lea.vmem %s66_s18, 8192  ;;  %p3152_p12 = scmp.lt.s32.totalorder %s66_s18, %s66_s18 }
  0x1e   :  { %p3148_p11 = scmp.ne.s32.totalorder %s66_s18, %s3147_s1  ;;  %p3153_p13 = scmp.lt.s32.totalorder %s3147_s1, %s3147_s1 }
  0x20   :  { %p3154_p0 = por %p3153_p13, %p3152_p12 }
  0x22   :  { %p3155_p1 = pnand %p3154_p0, %p3148_p11 }
  0x24   :  { %3158 = shalt.err (!%p3155_p1)
}
  0x25   :  { %71 = dma.hbm_to_vmem [thread:$0]  %s4473_s4, 8192, %s66_s18, [#allocation9], %s3302_s13, %s3302_s13, %s3303_s14  }
  0x26   :  { %s3159_s16 = scalar_lea.hbm %s4477_s8, 8192 }
  0x27   :  { %p3160_p2 = scmp.ne.s32.totalorder %s4477_s8, %s3159_s16  ;;  %p3163_p3 = scmp.lt.u32.totalorder %s3159_s16, %s4477_s8 }
  0x29   :  { %p3165_p4 = pnand %p3163_p3, %p3160_p2 }
  0x2b   :  { %3168 = shalt.err (!%p3165_p4)
}
  0x2c   :  { %s3169_s24 = scalar_lea.vmem %s94_s20, 8192  ;;  %p3174_p6 = scmp.lt.s32.totalorder %s94_s20, %s94_s20 }
  0x2d   :  { %p3170_p5 = scmp.ne.s32.totalorder %s94_s20, %s3169_s24  ;;  %p3175_p7 = scmp.lt.s32.totalorder %s3169_s24, %s3169_s24 }
  0x2f   :  { %p3176_p8 = por %p3175_p7, %p3174_p6 }
  0x31   :  { %p3177_p9 = pnand %p3176_p8, %p3170_p5 }
  0x33   :  { %3180 = shalt.err (!%p3177_p9)
}
  0x34   :  { %99 = dma.hbm_to_vmem [thread:$0]  %s4477_s8, 8192, %s94_s20, [#allocation12], %s3302_s13, %s3302_s13, %s3303_s14  }
  0x35   :  { %s3306_s25 = smov [#allocation2]   ;;  %s3181_s1 = scalar_lea.hbm %s4469_s0, 256 }
  0x36   :  { %s27_s26 = sshll.u32 %s3306_s25, 4  ;;  %p3182_p10 = scmp.ne.s32.totalorder %s4469_s0, %s3181_s1  ;;  %s28_s26 = int_to_ptr.vmem [resolvable:$true] %s27_s26 }
  0x37   :  { %p3185_p11 = scmp.lt.u32.totalorder %s3181_s1, %s4469_s0 }
  0x39   :  { %p3187_p12 = pnand %p3185_p11, %p3182_p10 }
  0x3b   :  { %3190 = shalt.err (!%p3187_p12)
}
  0x3c   :  { %s3191_s16 = scalar_lea.vmem %s28_s26, 256  ;;  %p3196_p0 = scmp.lt.s32.totalorder %s28_s26, %s28_s26 }
  0x3d   :  { %p3192_p13 = scmp.ne.s32.totalorder %s28_s26, %s3191_s16  ;;  %p3197_p1 = scmp.lt.s32.totalorder %s3191_s16, %s3191_s16 }
  0x3f   :  { %p3198_p2 = por %p3197_p1, %p3196_p0 }
  0x41   :  { %p3199_p3 = pnand %p3198_p2, %p3192_p13 }
  0x43   :  { %3202 = shalt.err (!%p3199_p3)
}
  0x44   :  { %s3307_s8 = smov 128   ;;  %s3308_s20 = smov 8  }
  0x45   :  { %33 = dma.hbm_to_vmem [thread:$0]  %s4469_s0, 256, %s28_s26, [#allocation3], %s3307_s8, %s3307_s8, %s3308_s20  }
  0x46   :  { %s3309_s21 = smov [#allocation7]   ;;  %s3203_s18 = scalar_lea.hbm %s4472_s3, 16384 }
  0x47   :  { %s53_s23 = sshll.u32 %s3309_s21, 4  ;;  %p3204_p4 = scmp.ne.s32.totalorder %s4472_s3, %s3203_s18  ;;  %s54_s23 = int_to_ptr.vmem [resolvable:$true] %s53_s23 }
  0x48   :  { %p3207_p5 = scmp.lt.u32.totalorder %s3203_s18, %s4472_s3 }
  0x4a   :  { %p3209_p6 = pnand %p3207_p5, %p3204_p4 }
  0x4c   :  { %3212 = shalt.err (!%p3209_p6)
}
  0x4d   :  { %s3213_s22 = scalar_lea.vmem %s54_s23, 16384  ;;  %p3218_p8 = scmp.lt.s32.totalorder %s54_s23, %s54_s23 }
  0x4e   :  { %p3214_p7 = scmp.ne.s32.totalorder %s54_s23, %s3213_s22  ;;  %p3219_p9 = scmp.lt.s32.totalorder %s3213_s22, %s3213_s22 }
  0x50   :  { %p3220_p10 = por %p3219_p9, %p3218_p8 }
  0x52   :  { %p3221_p11 = pnand %p3220_p10, %p3214_p7 }
  0x54   :  { %3224 = shalt.err (!%p3221_p11)
}
  0x55   :  { %s3310_s0 = smov 512   ;;  %s3311_s26 = smov 32  }
  0x56   :  { %59 = dma.hbm_to_vmem [thread:$0]  %s4472_s3, 16384, %s54_s23, [#allocation6], %s3310_s0, %s3310_s0, %s3311_s26  }
  0x57   :  { %s3312_s15 = smov [#allocation10]   ;;  %s3313_s8 = smov [#allocation13]  }
  0x58   :  { %s79_s16 = sshll.u32 %s3312_s15, 4  ;;  %s107_s20 = sshll.u32 %s3313_s8, 4  ;;  %s80_s16 = int_to_ptr.vmem [resolvable:$true] %s79_s16  ;;  %s108_s20 = int_to_ptr.vmem [resolvable:$true] %s107_s20 }
  0x59   :  { %s3225_s21 = scalar_lea.hbm %s4475_s6, 8192 }
  0x5a   :  { %p3226_p12 = scmp.ne.s32.totalorder %s4475_s6, %s3225_s21  ;;  %p3229_p13 = scmp.lt.u32.totalorder %s3225_s21, %s4475_s6 }
  0x5c   :  { %p3231_p0 = pnand %p3229_p13, %p3226_p12 }
  0x5e   :  { %3234 = shalt.err (!%p3231_p0)
}
  0x5f   :  { %s3235_s3 = scalar_lea.vmem %s80_s16, 8192  ;;  %p3240_p2 = scmp.lt.s32.totalorder %s80_s16, %s80_s16 }
  0x60   :  { %p3236_p1 = scmp.ne.s32.totalorder %s80_s16, %s3235_s3  ;;  %p3241_p3 = scmp.lt.s32.totalorder %s3235_s3, %s3235_s3 }
  0x62   :  { %p3242_p4 = por %p3241_p3, %p3240_p2 }
  0x64   :  { %p3243_p5 = pnand %p3242_p4, %p3236_p1 }
  0x66   :  { %3246 = shalt.err (!%p3243_p5)
}
  0x67   :  { %85 = dma.hbm_to_vmem [thread:$0]  %s4475_s6, 8192, %s80_s16, [#allocation9], %s3302_s13, %s3302_s13, %s3303_s14  }
  0x68   :  { %s3247_s22 = scalar_lea.hbm %s4479_s10, 8192 }
  0x69   :  { %p3248_p6 = scmp.ne.s32.totalorder %s4479_s10, %s3247_s22  ;;  %p3251_p7 = scmp.lt.u32.totalorder %s3247_s22, %s4479_s10 }
  0x6b   :  { %p3253_p8 = pnand %p3251_p7, %p3248_p6 }
  0x6d   :  { %3256 = shalt.err (!%p3253_p8)
}
  0x6e   :  { %s3257_s15 = scalar_lea.vmem %s108_s20, 8192  ;;  %p3262_p10 = scmp.lt.s32.totalorder %s108_s20, %s108_s20 }
  0x6f   :  { %p3258_p9 = scmp.ne.s32.totalorder %s108_s20, %s3257_s15  ;;  %p3263_p11 = scmp.lt.s32.totalorder %s3257_s15, %s3257_s15 }
  0x71   :  { %p3264_p12 = por %p3263_p11, %p3262_p10 }
  0x73   :  { %p3265_p13 = pnand %p3264_p12, %p3258_p9 }
  0x75   :  { %3268 = shalt.err (!%p3265_p13)
}
  0x76   :  { %113 = dma.hbm_to_vmem [thread:$0]  %s4479_s10, 8192, %s108_s20, [#allocation12], %s3302_s13, %s3302_s13, %s3303_s14  }
  0x77   :  { %3291 = dma.done.wait [#allocation3], 256  }
  0x78   :  { %3292 = vsyncadd [#allocation3], 4294967040 }
  0x79   :  { %3293 = dma.done.wait [#allocation6], 20480  }
  0x7a   :  { %3294 = vsyncadd [#allocation6], 4294946816 }
  0x7b   :  { %3295 = dma.done.wait [#allocation9], 16384  }
  0x7c   :  { %3296 = vsyncadd [#allocation9], 4294950912 }
  0x7d   :  { %3297 = dma.done.wait [#allocation12], 16384  }
  0x7e   :  { %3298 = vsyncadd [#allocation12], 4294950912  ;;  %v3314_v0 = vmov 0.0   ;;  %v463_v1 = vld [vmem:[#allocation5 + $0x8] sm:$0xff]  ;;  %v465_v2 = vld [vmem:[#allocation5 + $0x18] sm:$0xff]  ;;  %vm2035_vm10 = vcmask 1041409  }
  0x7f   :  { %570 = vmatprep.mubr.f32.mxu0 %v3314_v0  ;;  %v462_v3 = vld [vmem:[#allocation5] sm:$0xff]  ;;  %v2163_v4 = vpack.c.bf16 %v465_v2, %v463_v1  ;;  %v464_v5 = vld [vmem:[#allocation5 + $0x10] sm:$0xff]  ;;  %v467_v6 = vld [vmem:[#allocation5 + $0x28] sm:$0xff]  ;;  %vm2111_vm11 = vcmask 1041408  }
  0x80   :  { %v469_v7 = vld [vmem:[#allocation5 + $0x38] sm:$0xff]  ;;  %v2165_v8 = vpack.c.bf16 %v464_v5, %v462_v3  ;;  %v466_v10 = vld [vmem:[#allocation5 + $0x20] sm:$0xff]  ;;  %v468_v11 = vld [vmem:[#allocation5 + $0x30] sm:$0xff] }
  0x81   :  { %v2167_v9 = vpack.c.bf16 %v469_v7, %v467_v6  ;;  %v471_v12 = vld [vmem:[#allocation5 + $0x48] sm:$0xff]  ;;  %2164 = vmatprep.subr.bf16.mxu0 %v2163_v4  ;;  %v473_v13 = vld [vmem:[#allocation5 + $0x58] sm:$0xff]  ;;  %v2169_v14 = vpack.c.bf16 %v468_v11, %v466_v10  ;;  %v470_v16 = vld [vmem:[#allocation5 + $0x40] sm:$0xff] }
  0x82   :  { %2166 = vmatpush1.bf16.msra.mxu0 %v2165_v8  ;;  %v2171_v15 = vpack.c.bf16 %v473_v13, %v471_v12  ;;  %v472_v17 = vld [vmem:[#allocation5 + $0x50] sm:$0xff]  ;;  %v475_v18 = vld [vmem:[#allocation5 + $0x68] sm:$0xff]  ;;  %v477_v19 = vld [vmem:[#allocation5 + $0x78] sm:$0xff] }
  0x83   :  { %2168 = vmatprep.subr.bf16.mxu0 %v2167_v9  ;;  %v2173_v20 = vpack.c.bf16 %v472_v17, %v470_v16  ;;  %v2175_v21 = vpack.c.bf16 %v477_v19, %v475_v18  ;;  %v474_v22 = vld [vmem:[#allocation5 + $0x60] sm:$0xff]  ;;  %v476_v23 = vld [vmem:[#allocation5 + $0x70] sm:$0xff]  ;;  %v479_v24 = vld [vmem:[#allocation5 + $0x88] sm:$0xff] }
  0x84   :  { %v481_v25 = vld [vmem:[#allocation5 + $0x98] sm:$0xff]  ;;  %v396_v26 = vld [vmem:[#allocation11 + $0x8] sm:$0xff]  ;;  %v2177_v28 = vpack.c.bf16 %v476_v23, %v474_v22  ;;  %v478_v29 = vld [vmem:[#allocation5 + $0x80] sm:$0xff] }
  0x85   :  { %v398_v27 = vld [vmem:[#allocation11 + $0x18] sm:$0xff]  ;;  %v395_v31 = vld [vmem:[#allocation11] sm:$0xff]  ;;  %v2179_v32 = vpack.c.bf16 %v481_v25, %v479_v24  ;;  %v480_v33 = vld [vmem:[#allocation5 + $0x90] sm:$0xff] }
  0x86   :  { %2170 = vmatpush1.bf16.msra.mxu0 %v2169_v14  ;;  %v2195_v30 = vpack.c.bf16 %v398_v27, %v396_v26  ;;  %v483_v34 = vld [vmem:[#allocation5 + $0xa8] sm:$0xff]  ;;  %v397_v35 = vld [vmem:[#allocation11 + $0x10] sm:$0xff]  ;;  %v485_v36 = vld [vmem:[#allocation5 + $0xb8] sm:$0xff]  ;;  %v2181_v43 = vpack.c.bf16 %v480_v33, %v478_v29 }
  0x87   :  { %2172 = vmatprep.subr.bf16.mxu0 %v2171_v15  ;;  %v2197_v37 = vpack.c.bf16 %v397_v35, %v395_v31  ;;  %v400_v38 = vld [vmem:[#allocation11 + $0x28] sm:$0xff]  ;;  %v402_v39 = vld [vmem:[#allocation11 + $0x38] sm:$0xff]  ;;  %v399_v41 = vld [vmem:[#allocation11 + $0x20] sm:$0xff]  ;;  %v2183_v47 = vpack.c.bf16 %v485_v36, %v483_v34 }
  0x88   :  { %2196 = vmatprep.subr.bf16.mxu1 %v2195_v30  ;;  %v2199_v40 = vpack.c.bf16 %v402_v39, %v400_v38  ;;  %v401_v42 = vld [vmem:[#allocation11 + $0x30] sm:$0xff]  ;;  %v482_v44 = vld [vmem:[#allocation5 + $0xa0] sm:$0xff]  ;;  %v404_v46 = vld [vmem:[#allocation11 + $0x48] sm:$0xff] }
  0x89   :  { %2198 = vmatpush1.bf16.msra.mxu1 %v2197_v37  ;;  %v2201_v45 = vpack.c.bf16 %v401_v42, %v399_v41  ;;  %v484_v48 = vld [vmem:[#allocation5 + $0xb0] sm:$0xff]  ;;  %v487_v49 = vld [vmem:[#allocation5 + $0xc8] sm:$0xff]  ;;  %v406_v50 = vld [vmem:[#allocation11 + $0x58] sm:$0xff] }
  0x8a   :  { %2174 = vmatpush1.bf16.msra.mxu0 %v2173_v20  ;;  %2200 = vmatprep.subr.bf16.mxu1 %v2199_v40  ;;  %v489_v51 = vld [vmem:[#allocation5 + $0xd8] sm:$0xff]  ;;  %v2203_v52 = vpack.c.bf16 %v406_v50, %v404_v46  ;;  %v403_v53 = vld [vmem:[#allocation11 + $0x40] sm:$0xff]  ;;  %v405_v54 = vld [vmem:[#allocation11 + $0x50] sm:$0xff]  ;;  %v2185_v57 = vpack.c.bf16 %v484_v48, %v482_v44 }
  0x8b   :  { %2176 = vmatprep.subr.bf16.mxu0 %v2175_v21  ;;  %v408_v55 = vld [vmem:[#allocation11 + $0x68] sm:$0xff]  ;;  %v410_v56 = vld [vmem:[#allocation11 + $0x78] sm:$0xff]  ;;  %v486_v58 = vld [vmem:[#allocation5 + $0xc0] sm:$0xff]  ;;  %v2205_v60 = vpack.c.bf16 %v405_v54, %v403_v53  ;;  %v2187_v61 = vpack.c.bf16 %v489_v51, %v487_v49 }
  0x8c   :  { %v488_v59 = vld [vmem:[#allocation5 + $0xd0] sm:$0xff]  ;;  %v491_v62 = vld [vmem:[#allocation5 + $0xe8] sm:$0xff]  ;;  %v2207_v63 = vpack.c.bf16 %v410_v56, %v408_v55  ;;  %v407_v1 = vld [vmem:[#allocation11 + $0x60] sm:$0xff] }
  0x8d   :  { %2202 = vmatpush1.bf16.msra.mxu1 %v2201_v45  ;;  %v409_v2 = vld [vmem:[#allocation11 + $0x70] sm:$0xff]  ;;  %v493_v3 = vld [vmem:[#allocation5 + $0xf8] sm:$0xff]  ;;  %v412_v4 = vld [vmem:[#allocation11 + $0x88] sm:$0xff]  ;;  %v2189_v6 = vpack.c.bf16 %v488_v59, %v486_v58 }
  0x8e   :  { %2178 = vmatpush1.bf16.msra.mxu0 %v2177_v28  ;;  %2204 = vmatprep.subr.bf16.mxu1 %v2203_v52  ;;  %v414_v5 = vld [vmem:[#allocation11 + $0x98] sm:$0xff]  ;;  %v490_v7 = vld [vmem:[#allocation5 + $0xe0] sm:$0xff]  ;;  %v492_v8 = vld [vmem:[#allocation5 + $0xf0] sm:$0xff]  ;;  %v2209_v9 = vpack.c.bf16 %v409_v2, %v407_v1  ;;  %v2191_v10 = vpack.c.bf16 %v493_v3, %v491_v62 }
  0x8f   :  { %2180 = vmatprep.subr.bf16.mxu0 %v2179_v32  ;;  %v138_v11 = vld [vmem:[#allocation7 + $0x8] sm:$0xff]  ;;  %v2211_v12 = vpack.c.bf16 %v414_v5, %v412_v4  ;;  %v411_v13 = vld [vmem:[#allocation11 + $0x80] sm:$0xff]  ;;  %v413_v14 = vld [vmem:[#allocation11 + $0x90] sm:$0xff]  ;;  %v2193_v18 = vpack.c.bf16 %v492_v8, %v490_v7 }
  0x90   :  { %v142_v15 = vld [vmem:[#allocation7 + $0x28] sm:$0xff]  ;;  %v418_v17 = vld [vmem:[#allocation11 + $0xb8] sm:$0xff]  ;;  %v2213_v19 = vpack.c.bf16 %v413_v14, %v411_v13  ;;  %v137_v21 = vld [vmem:[#allocation7] sm:$0xff] }
  0x91   :  { %2206 = vmatpush1.bf16.msra.mxu1 %v2205_v60  ;;  %v416_v16 = vld [vmem:[#allocation11 + $0xa8] sm:$0xff]  ;;  %v3482_v20 = vpack.c.bf16 %v142_v15, %v138_v11  ;;  %v141_v22 = vld [vmem:[#allocation7 + $0x20] sm:$0xff]  ;;  %v417_v27 = vld [vmem:[#allocation11 + $0xb0] sm:$0xff] }
  0x92   :  { %2182 = vmatpush1.bf16.msra.mxu0 %v2181_v43  ;;  %2208 = vmatprep.subr.bf16.mxu1 %v2207_v63  ;;  %v146_v23 = vld [vmem:[#allocation7 + $0x48] sm:$0xff]  ;;  %v2215_v24 = vpack.c.bf16 %v418_v17, %v416_v16  ;;  %v415_v26 = vld [vmem:[#allocation11 + $0xa0] sm:$0xff]  ;;  %v422_v29 = vld [vmem:[#allocation11 + $0xd8] sm:$0xff]  ;;  %v3484_v31 = vpack.c.bf16 %v141_v22, %v137_v21 }
  0x93   :  { %2184 = vmatprep.subr.bf16.mxu0 %v2183_v47  ;;  %4672 = vst [vmem:[#allocation20_spill] sm:$0xff] %v3482_v20  ;;  %v150_v25 = vld [vmem:[#allocation7 + $0x68] sm:$0xff]  ;;  %v460_v30 = vld [vmem:[#allocation2] sm:$0xff]  ;;  %v145_v33 = vld [vmem:[#allocation7 + $0x40] sm:$0xff]  ;;  %v2217_v36 = vpack.c.bf16 %v417_v27, %v415_v26 }
  0x94   :  { %v420_v28 = vld [vmem:[#allocation11 + $0xc8] sm:$0xff]  ;;  %4673 = vst [vmem:[#allocation21_spill] sm:$0xff] %v3484_v31  ;;  %v3487_v32 = vpack.c.bf16 %v150_v25, %v146_v23  ;;  %v149_v34 = vld [vmem:[#allocation7 + $0x60] sm:$0xff]  ;;  %v421_v40 = vld [vmem:[#allocation11 + $0xd0] sm:$0xff] }
  0x95   :  { %2210 = vmatpush1.bf16.msra.mxu1 %v2209_v9  ;;  %v154_v35 = vld [vmem:[#allocation7 + $0x88] sm:$0xff]  ;;  %v2219_v38 = vpack.c.bf16 %v422_v29, %v420_v28  ;;  %v419_v39 = vld [vmem:[#allocation11 + $0xc0] sm:$0xff]  ;;  %v426_v42 = vld [vmem:[#allocation11 + $0xf8] sm:$0xff]  ;;  %v3491_v44 = vpack.c.bf16 %v149_v34, %v145_v33 }
  0x96   :  { %2186 = vmatpush1.bf16.msra.mxu0 %v2185_v57  ;;  %2212 = vmatprep.subr.bf16.mxu1 %v2211_v12  ;;  %4674 = vst [vmem:[#allocation22_spill] sm:$0xff] %v3487_v32  ;;  %v158_v37 = vld [vmem:[#allocation7 + $0xa8] sm:$0xff]  ;;  %v461_v43 = vld [vmem:[#allocation2 + $0x8] sm:$0xff]  ;;  %v153_v46 = vld [vmem:[#allocation7 + $0x80] sm:$0xff]  ;;  %v2221_v49 = vpack.c.bf16 %v421_v40, %v419_v39 }
  0x97   :  { %2188 = vmatprep.subr.bf16.mxu0 %v2187_v61  ;;  %v424_v41 = vld [vmem:[#allocation11 + $0xe8] sm:$0xff]  ;;  %4675 = vst [vmem:[#allocation23_spill] sm:$0xff] %v3491_v44  ;;  %v3494_v45 = vpack.c.bf16 %v158_v37, %v154_v35  ;;  %v157_v47 = vld [vmem:[#allocation7 + $0xa0] sm:$0xff]  ;;  %v425_v53 = vld [vmem:[#allocation11 + $0xf0] sm:$0xff] }
  0x98   :  { %v162_v48 = vld [vmem:[#allocation7 + $0xc8] sm:$0xff]  ;;  %v2223_v51 = vpack.c.bf16 %v426_v42, %v424_v41  ;;  %v423_v52 = vld [vmem:[#allocation11 + $0xe0] sm:$0xff]  ;;  %v430_v54 = vld [vmem:[#allocation11 + $0x118] sm:$0xff]  ;;  %v3497_v55 = vpack.c.bf16 %v157_v47, %v153_v46 }
  0x99   :  { %2214 = vmatpush1.bf16.msra.mxu1 %v2213_v19  ;;  %4676 = vst [vmem:[#allocation24_spill] sm:$0xff] %v3494_v45  ;;  %v166_v50 = vld [vmem:[#allocation7 + $0xe8] sm:$0xff]  ;;  %v161_v57 = vld [vmem:[#allocation7 + $0xc0] sm:$0xff]  ;;  %v2225_v60 = vpack.c.bf16 %v425_v53, %v423_v52  ;;  %v429_v1 = vld [vmem:[#allocation11 + $0x110] sm:$0xff] }
  0x9a   :  { %2190 = vmatpush1.bf16.msra.mxu0 %v2189_v6  ;;  %2216 = vmatprep.subr.bf16.mxu1 %v2215_v24  ;;  %4677 = vst [vmem:[#allocation25_spill] sm:$0xff] %v3497_v55  ;;  %v3500_v56 = vpack.c.bf16 %v166_v50, %v162_v48  ;;  %v165_v58 = vld [vmem:[#allocation7 + $0xe0] sm:$0xff]  ;;  %v170_v59 = vld [vmem:[#allocation7 + $0x108] sm:$0xff]  ;;  %v434_v3 = vld [vmem:[#allocation11 + $0x138] sm:$0xff] }
  0x9b   :  { %2192 = vmatprep.subr.bf16.mxu0 %v2191_v10  ;;  %v174_v61 = vld [vmem:[#allocation7 + $0x128] sm:$0xff]  ;;  %v427_v63 = vld [vmem:[#allocation11 + $0x100] sm:$0xff]  ;;  %v3503_v4 = vpack.c.bf16 %v165_v58, %v161_v57  ;;  %v433_v13 = vld [vmem:[#allocation11 + $0x130] sm:$0xff] }
  0x9c   :  { %4678 = vst [vmem:[#allocation26_spill] sm:$0xff] %v3500_v56  ;;  %v432_v2 = vld [vmem:[#allocation11 + $0x128] sm:$0xff]  ;;  %v3506_v5 = vpack.c.bf16 %v174_v61, %v170_v59  ;;  %v169_v6 = vld [vmem:[#allocation7 + $0x100] sm:$0xff]  ;;  %v2229_v9 = vpack.c.bf16 %v429_v1, %v427_v63  ;;  %v438_v15 = vld [vmem:[#allocation11 + $0x158] sm:$0xff] }
  0x9d   :  { %2218 = vmatpush1.bf16.msra.mxu1 %v2217_v36  ;;  %4679 = vst [vmem:[#allocation27_spill] sm:$0xff] %v3503_v4  ;;  %v173_v7 = vld [vmem:[#allocation7 + $0x120] sm:$0xff]  ;;  %v178_v8 = vld [vmem:[#allocation7 + $0x148] sm:$0xff]  ;;  %v2231_v11 = vpack.c.bf16 %v434_v3, %v432_v2  ;;  %v437_v26 = vld [vmem:[#allocation11 + $0x150] sm:$0xff] }
  0x9e   :  { %2194 = vmatpush1.bf16.msra.mxu0 %v2193_v18  ;;  %2220 = vmatprep.subr.bf16.mxu1 %v2219_v38  ;;  %4680 = vst [vmem:[#allocation28_spill] sm:$0xff] %v3506_v5  ;;  %v182_v10 = vld [vmem:[#allocation7 + $0x168] sm:$0xff]  ;;  %v431_v12 = vld [vmem:[#allocation11 + $0x120] sm:$0xff]  ;;  %v3509_v16 = vpack.c.bf16 %v173_v7, %v169_v6  ;;  %v442_v28 = vld [vmem:[#allocation11 + $0x178] sm:$0xff] }
  0x9f   :  { %2260 = vmatprep.subr.bf16.mxu0 %v3482_v20  ;;  %v436_v14 = vld [vmem:[#allocation11 + $0x148] sm:$0xff]  ;;  %v3512_v17 = vpack.c.bf16 %v182_v10, %v178_v8  ;;  %v177_v18 = vld [vmem:[#allocation7 + $0x140] sm:$0xff]  ;;  %v2233_v22 = vpack.c.bf16 %v433_v13, %v431_v12  ;;  %v441_v40 = vld [vmem:[#allocation11 + $0x170] sm:$0xff] }
  0xa0   :  { %4681 = vst [vmem:[#allocation29_spill] sm:$0xff] %v3509_v16  ;;  %v181_v19 = vld [vmem:[#allocation7 + $0x160] sm:$0xff]  ;;  %v186_v21 = vld [vmem:[#allocation7 + $0x188] sm:$0xff]  ;;  %v2235_v24 = vpack.c.bf16 %v438_v15, %v436_v14  ;;  %v446_v42 = vld [vmem:[#allocation11 + $0x198] sm:$0xff] }
  0xa1   :  { %571 = vmatmul.mubr.f32.vlgmr.msra.gmra.mrb[0].mxu0 %v460_v30  ;;  %2222 = vmatpush1.bf16.msra.mxu1 %v2221_v49  ;;  %4682 = vst [vmem:[#allocation30_spill] sm:$0xff] %v3512_v17  ;;  %v190_v23 = vld [vmem:[#allocation7 + $0x1a8] sm:$0xff]  ;;  %v435_v25 = vld [vmem:[#allocation11 + $0x140] sm:$0xff]  ;;  %v3515_v29 = vpack.c.bf16 %v181_v19, %v177_v18  ;;  %v450_v57 = vld [vmem:[#allocation11 + $0x1b8] sm:$0xff] }
  0xa2   :  { %576 = vmatprep.mubr.f32.mxu0 %v3314_v0  ;;  %2262 = vmatpush1.bf16.msra.mxu0 %v3484_v31  ;;  %v428_v0 = vld [vmem:[#allocation11 + $0x108] sm:$0xff]  ;;  %v3518_v30 = vpack.c.bf16 %v190_v23, %v186_v21  ;;  %v185_v33 = vld [vmem:[#allocation7 + $0x180] sm:$0xff]  ;;  %v2237_v36 = vpack.c.bf16 %v437_v26, %v435_v25  ;;  %v449_v6 = vld [vmem:[#allocation11 + $0x1b0] sm:$0xff] }
  0xa3   :  { %2264 = vmatprep.subr.bf16.mxu0 %v3487_v32  ;;  %2224 = vmatprep.subr.bf16.mxu1 %v2223_v51  ;;  %v2227_v62 = vpack.c.bf16 %v430_v54, %v428_v0  ;;  %v440_v27 = vld [vmem:[#allocation11 + $0x168] sm:$0xff]  ;;  %4683 = vst [vmem:[#allocation31_spill] sm:$0xff] %v3515_v29  ;;  %v189_v34 = vld [vmem:[#allocation7 + $0x1a0] sm:$0xff]  ;;  %v445_v0 = vld [vmem:[#allocation11 + $0x190] sm:$0xff] }
  0xa4   :  { %4684 = vst [vmem:[#allocation32_spill] sm:$0xff] %v3518_v30  ;;  %v194_v35 = vld [vmem:[#allocation7 + $0x1c8] sm:$0xff]  ;;  %v2239_v38 = vpack.c.bf16 %v442_v28, %v440_v27  ;;  %v439_v39 = vld [vmem:[#allocation11 + $0x160] sm:$0xff]  ;;  %v454_v8 = vld [vmem:[#allocation11 + $0x1d8] sm:$0xff] }
  0xa5   :  { %577 = vmatmul.mubr.f32.gmra.mrb[2].mxu0 %v461_v43  ;;  %2226 = vmatpush1.bf16.msra.mxu1 %v2225_v60  ;;  %v198_v37 = vld [vmem:[#allocation7 + $0x1e8] sm:$0xff]  ;;  %v3521_v43 = vpack.c.bf16 %v189_v34, %v185_v33  ;;  %v193_v47 = vld [vmem:[#allocation7 + $0x1c0] sm:$0xff]  ;;  %v2241_v50 = vpack.c.bf16 %v441_v40, %v439_v39  ;;  %v453_v21 = vld [vmem:[#allocation11 + $0x1d0] sm:$0xff] }
  0xa6   :  { %2266 = vmatpush1.bf16.msra.mxu0 %v3491_v44  ;;  %2228 = vmatprep.subr.bf16.mxu1 %v2227_v62  ;;  %v444_v41 = vld [vmem:[#allocation11 + $0x188] sm:$0xff]  ;;  %v3524_v46 = vpack.c.bf16 %v198_v37, %v194_v35  ;;  %v197_v48 = vld [vmem:[#allocation7 + $0x1e0] sm:$0xff] }
  0xa7   :  { %2268 = vmatprep.subr.bf16.mxu0 %v3494_v45  ;;  %4685 = vst [vmem:[#allocation33_spill] sm:$0xff] %v3521_v43  ;;  %v202_v49 = vld [vmem:[#allocation7 + $0x208] sm:$0xff]  ;;  %v2243_v52 = vpack.c.bf16 %v446_v42, %v444_v41  ;;  %v443_v53 = vld [vmem:[#allocation11 + $0x180] sm:$0xff]  ;;  %v3527_v58 = vpack.c.bf16 %v197_v48, %v193_v47 }
  0xa8   :  { %4686 = vst [vmem:[#allocation34_spill] sm:$0xff] %v3524_v46  ;;  %v206_v51 = vld [vmem:[#allocation7 + $0x228] sm:$0xff]  ;;  %v201_v60 = vld [vmem:[#allocation7 + $0x200] sm:$0xff]  ;;  %v2245_v63 = vpack.c.bf16 %v445_v0, %v443_v53 }
  0xa9   :  { %2230 = vmatpush1.bf16.msra.mxu1 %v2229_v9  ;;  %v448_v54 = vld [vmem:[#allocation11 + $0x1a8] sm:$0xff]  ;;  %4687 = vst [vmem:[#allocation35_spill] sm:$0xff] %v3527_v58  ;;  %v3530_v59 = vpack.c.bf16 %v206_v51, %v202_v49  ;;  %v205_v61 = vld [vmem:[#allocation7 + $0x220] sm:$0xff] }
  0xaa   :  { %2270 = vmatpush1.bf16.msra.mxu0 %v3497_v55  ;;  %2232 = vmatprep.subr.bf16.mxu1 %v2231_v11  ;;  %v210_v62 = vld [vmem:[#allocation7 + $0x248] sm:$0xff]  ;;  %v2247_v2 = vpack.c.bf16 %v450_v57, %v448_v54  ;;  %v447_v3 = vld [vmem:[#allocation11 + $0x1a0] sm:$0xff]  ;;  %v3533_v9 = vpack.c.bf16 %v205_v61, %v201_v60 }
  0xab   :  { %2272 = vmatprep.subr.bf16.mxu0 %v3500_v56  ;;  %4688 = vst [vmem:[#allocation36_spill] sm:$0xff] %v3530_v59  ;;  %v214_v1 = vld [vmem:[#allocation7 + $0x268] sm:$0xff]  ;;  %v209_v11 = vld [vmem:[#allocation7 + $0x240] sm:$0xff]  ;;  %v2249_v14 = vpack.c.bf16 %v449_v6, %v447_v3 }
  0xac   :  { %v452_v7 = vld [vmem:[#allocation11 + $0x1c8] sm:$0xff]  ;;  %4689 = vst [vmem:[#allocation37_spill] sm:$0xff] %v3533_v9  ;;  %v3536_v10 = vpack.c.bf16 %v214_v1, %v210_v62  ;;  %v213_v12 = vld [vmem:[#allocation7 + $0x260] sm:$0xff]  ;;  %v458_v1 = vld [vmem:[#allocation11 + $0x1f8] sm:$0xff] }
  0xad   :  { %2234 = vmatpush1.bf16.msra.mxu1 %v2233_v22  ;;  %v218_v13 = vld [vmem:[#allocation7 + $0x288] sm:$0xff]  ;;  %v2251_v18 = vpack.c.bf16 %v454_v8, %v452_v7  ;;  %v451_v19 = vld [vmem:[#allocation11 + $0x1c0] sm:$0xff]  ;;  %v3539_v22 = vpack.c.bf16 %v213_v12, %v209_v11  ;;  %v457_v8 = vld [vmem:[#allocation11 + $0x1f0] sm:$0xff] }
  0xae   :  { %2274 = vmatpush1.bf16.msra.mxu0 %v3503_v4  ;;  %2236 = vmatprep.subr.bf16.mxu1 %v2235_v24  ;;  %4690 = vst [vmem:[#allocation38_spill] sm:$0xff] %v3536_v10  ;;  %v222_v15 = vld [vmem:[#allocation7 + $0x2a8] sm:$0xff]  ;;  %v217_v24 = vld [vmem:[#allocation7 + $0x280] sm:$0xff]  ;;  %v2253_v26 = vpack.c.bf16 %v453_v21, %v451_v19  ;;  %v144_v19 = vld [vmem:[#allocation7 + $0x38] sm:$0xff] }
  0xaf   :  { %2276 = vmatprep.subr.bf16.mxu0 %v3506_v5  ;;  %4691 = vst [vmem:[#allocation39_spill] sm:$0xff] %v3539_v22  ;;  %v3542_v23 = vpack.c.bf16 %v222_v15, %v218_v13  ;;  %v221_v25 = vld [vmem:[#allocation7 + $0x2a0] sm:$0xff]  ;;  %v226_v27 = vld [vmem:[#allocation7 + $0x2c8] sm:$0xff] }
  0xb0   :  { %v230_v28 = vld [vmem:[#allocation7 + $0x2e8] sm:$0xff]  ;;  %v3545_v33 = vpack.c.bf16 %v221_v25, %v217_v24  ;;  %v225_v35 = vld [vmem:[#allocation7 + $0x2c0] sm:$0xff]  ;;  %v268_v25 = vld [vmem:[#allocation8 + $0x18] sm:$0xff] }
  0xb1   :  { %2238 = vmatpush1.bf16.msra.mxu1 %v2237_v36  ;;  %4692 = vst [vmem:[#allocation40_spill] sm:$0xff] %v3542_v23  ;;  %v3548_v34 = vpack.c.bf16 %v230_v28, %v226_v27  ;;  %v229_v36 = vld [vmem:[#allocation7 + $0x2e0] sm:$0xff]  ;;  %v234_v37 = vld [vmem:[#allocation7 + $0x308] sm:$0xff]  ;;  %v496_v27 = vlaneseq }
  0xb2   :  { %2278 = vmatpush1.bf16.msra.mxu0 %v3509_v16  ;;  %2240 = vmatprep.subr.bf16.mxu1 %v2239_v38  ;;  %4693 = vst [vmem:[#allocation41_spill] sm:$0xff] %v3545_v33  ;;  %v238_v38 = vld [vmem:[#allocation7 + $0x328] sm:$0xff]  ;;  %v3551_v39 = vpack.c.bf16 %v229_v36, %v225_v35  ;;  %v233_v41 = vld [vmem:[#allocation7 + $0x300] sm:$0xff]  ;;  %v494_v36 = vld [vmem:[%s4471_s2] sm:$0x3] }
  0xb3   :  { %2280 = vmatprep.subr.bf16.mxu0 %v3512_v17  ;;  %4694 = vst [vmem:[#allocation42_spill] sm:$0xff] %v3548_v34  ;;  %v3554_v40 = vpack.c.bf16 %v238_v38, %v234_v37  ;;  %v237_v42 = vld [vmem:[#allocation7 + $0x320] sm:$0xff]  ;;  %v242_v47 = vld [vmem:[#allocation7 + $0x348] sm:$0xff]  ;;  %v3585_v28 = vshrl.u32 %v496_v27, 7 }
  0xb4   :  { %4695 = vst [vmem:[#allocation43_spill] sm:$0xff] %v3551_v39  ;;  %v246_v48 = vld [vmem:[#allocation7 + $0x368] sm:$0xff]  ;;  %v3557_v49 = vpack.c.bf16 %v237_v42, %v233_v41  ;;  %v241_v51 = vld [vmem:[#allocation7 + $0x340] sm:$0xff] }
  0xb5   :  { %2242 = vmatpush1.bf16.msra.mxu1 %v2241_v50  ;;  %4696 = vst [vmem:[#allocation44_spill] sm:$0xff] %v3554_v40  ;;  %v3560_v50 = vpack.c.bf16 %v246_v48, %v242_v47  ;;  %v250_v53 = vld [vmem:[#allocation7 + $0x388] sm:$0xff]  ;;  %v249_v60 = vld [vmem:[#allocation7 + $0x380] sm:$0xff]  ;;  %v3588_v35 = vsub.s32 0, %v3585_v28  ;;  %v3594_v37 = vsub.s32 1, %v3585_v28  ;;  %v139_v47 = vld [vmem:[#allocation7 + $0x10] sm:$0xff] }
  0xb6   :  { %2282 = vmatpush1.bf16.msra.mxu0 %v3515_v29  ;;  %2244 = vmatprep.subr.bf16.mxu1 %v2243_v52  ;;  %4697 = vst [vmem:[#allocation45_spill] sm:$0xff] %v3557_v49  ;;  %v245_v52 = vld [vmem:[#allocation7 + $0x360] sm:$0xff]  ;;  %v254_v0 = vld [vmem:[#allocation7 + $0x3a8] sm:$0xff]  ;;  %v143_v48 = vld [vmem:[#allocation7 + $0x30] sm:$0xff]  ;;  %vm710_vm0 = vcmp.lt.s32.totalorder %v3585_v28, 1  ;;  %vm719_vm1 = vcmp.lt.s32.totalorder %v3585_v28, 7 }
  0xb7   :  { %2284 = vmatprep.subr.bf16.mxu0 %v3518_v30  ;;  %4698 = vst [vmem:[#allocation46_spill] sm:$0xff] %v3560_v50  ;;  %v3563_v54 = vpack.c.bf16 %v245_v52, %v241_v51  ;;  %v3566_v57 = vpack.c.bf16 %v254_v0, %v250_v53  ;;  %v253_v61 = vld [vmem:[#allocation7 + $0x3a0] sm:$0xff]  ;;  %v262_v6 = vld [vmem:[#allocation7 + $0x3e8] sm:$0xff]  ;;  %4706 = vst [vmem:[#allocation54_spill] sm:$0xff] %v3588_v35  ;;  %v499_v38 = vrot.slane %v494_v36, %v3588_v35 }
  0xb8   :  { %v3569_v62 = vpack.c.bf16 %v253_v61, %v249_v60  ;;  %v455_v7 = vld [vmem:[#allocation11 + $0x1e0] sm:$0xff]  ;;  %v266_v21 = vld [vmem:[#allocation8 + $0x8] sm:$0xff]  ;;  %4707 = vst [vmem:[#allocation55_spill] sm:$0xff] %v3594_v37  ;;  %v503_v41 = vrot.slane %v494_v36, %v3594_v37  ;;  %v267_v0 = vld [vmem:[#allocation8 + $0x10] sm:$0xff] }
  0xb9   :  { %2246 = vmatpush1.bf16.msra.mxu1 %v2245_v63  ;;  %4699 = vst [vmem:[#allocation47_spill] sm:$0xff] %v3563_v54  ;;  %4700 = vst [vmem:[#allocation48_spill] sm:$0xff] %v3566_v57  ;;  %v456_v63 = vld [vmem:[#allocation11 + $0x1e8] sm:$0xff]  ;;  %v2257_v12 = vpack.c.bf16 %v457_v8, %v455_v7  ;;  %v257_v13 = vld [vmem:[#allocation7 + $0x3c0] sm:$0xff]  ;;  %v3600_v7 = vpack.c.bf16 %v143_v48, %v139_v47 }
  0xba   :  { %2286 = vmatpush1.bf16.msra.mxu0 %v3521_v43  ;;  %2248 = vmatprep.subr.bf16.mxu1 %v2247_v2  ;;  %4701 = vst [vmem:[#allocation49_spill] sm:$0xff] %v3569_v62  ;;  %v258_v2 = vld [vmem:[#allocation7 + $0x3c8] sm:$0xff]  ;;  %v2255_v3 = vpack.c.bf16 %v458_v1, %v456_v63  ;;  %v265_v53 = vld [vmem:[#allocation8] sm:$0xff]  ;;  %v148_v60 = vld [vmem:[#allocation7 + $0x58] sm:$0xff] }
  0xbb   :  { %2288 = vmatprep.subr.bf16.mxu0 %v3524_v46  ;;  %v3573_v11 = vpack.c.bf16 %v262_v6, %v258_v2  ;;  %v152_v63 = vld [vmem:[#allocation7 + $0x78] sm:$0xff]  ;;  %v270_v1 = vld [vmem:[#allocation8 + $0x28] sm:$0xff]  ;;  %4708 = vst [vmem:[#allocation56_spill] sm:$0xff] %v3600_v7  ;;  %v3602_v8 = vpack.c.bf16 %v267_v0, %v265_v53  ;;  %v269_v27 = vld [vmem:[#allocation8 + $0x20] sm:$0xff] }
  0xbc   :  { %v272_v2 = vld [vmem:[#allocation8 + $0x38] sm:$0xff]  ;;  %v271_v36 = vld [vmem:[#allocation8 + $0x30] sm:$0xff]  ;;  %v274_v48 = vld [vmem:[#allocation8 + $0x48] sm:$0xff] }
  0xbd   :  { %2250 = vmatpush1.bf16.msra.mxu1 %v2249_v14  ;;  %4702 = vst [vmem:[#allocation50_spill] sm:$0xff] %v3573_v11  ;;  %v261_v14 = vld [vmem:[#allocation7 + $0x3e0] sm:$0xff]  ;;  %4709 = vst [vmem:[#allocation57_spill] sm:$0xff] %v3602_v8  ;;  %v160_v47 = vld [vmem:[#allocation7 + $0xb8] sm:$0xff] }
  0xbe   :  { %2290 = vmatpush1.bf16.msra.mxu0 %v3527_v58  ;;  %2252 = vmatprep.subr.bf16.mxu1 %v2251_v18  ;;  %v3575_v15 = vpack.c.bf16 %v261_v14, %v257_v13  ;;  %v140_v18 = vld [vmem:[#allocation7 + $0x18] sm:$0xff]  ;;  %v151_v13 = vld [vmem:[#allocation7 + $0x70] sm:$0xff] }
  0xbf   :  { %2292 = vmatprep.subr.bf16.mxu0 %v3530_v59  ;;  %v3579_v24 = vpack.c.bf16 %v144_v19, %v140_v18  ;;  %v276_v53 = vld [vmem:[#allocation8 + $0x58] sm:$0xff] }
  0xc0   :  { %4703 = vst [vmem:[#allocation51_spill] sm:$0xff] %v3575_v15  ;;  %v284_v37 = vld [vmem:[#allocation8 + $0x98] sm:$0xff] }
  0xc1   :  { %2254 = vmatpush1.bf16.msra.mxu1 %v2253_v26  ;;  %4704 = vst [vmem:[#allocation52_spill] sm:$0xff] %v3579_v24  ;;  %v3581_v26 = vpack.c.bf16 %v268_v25, %v266_v21  ;;  %v3606_v21 = vpack.c.bf16 %v152_v63, %v148_v60  ;;  %v3608_v25 = vpack.c.bf16 %v272_v2, %v270_v1  ;;  %v159_v60 = vld [vmem:[#allocation7 + $0xb0] sm:$0xff] }
  0xc2   :  { %2294 = vmatpush1.bf16.msra.mxu0 %v3533_v9  ;;  %2256 = vmatprep.subr.bf16.mxu1 %v2255_v3  ;;  %v275_v63 = vld [vmem:[#allocation8 + $0x50] sm:$0xff] }
  0xc3   :  { %2296 = vmatprep.subr.bf16.mxu0 %v3536_v10  ;;  %4705 = vst [vmem:[#allocation53_spill] sm:$0xff] %v3581_v26  ;;  %4710 = vst [vmem:[#allocation58_spill] sm:$0xff] %v3606_v21 }
  0xc4   :  { %4711 = vst [vmem:[#allocation59_spill] sm:$0xff] %v3608_v25 }
  0xc5   :  { %2258 = vmatpush1.bf16.msra.mxu1 %v2257_v12  ;;  %v147_v12 = vld [vmem:[#allocation7 + $0x50] sm:$0xff] }
  0xc6   :  { %2298 = vmatpush1.bf16.msra.mxu0 %v3539_v22  ;;  %2324 = vmatprep.subr.bf16.mxu1 %v3579_v24  ;;  %v3618_v0 = vpack.c.bf16 %v151_v13, %v147_v12  ;;  %v168_v12 = vld [vmem:[#allocation7 + $0xf8] sm:$0xff] }
  0xc7   :  { %2300 = vmatprep.subr.bf16.mxu0 %v3542_v23 }
  0xc8   :  { %4712 = vst [vmem:[#allocation60_spill] sm:$0xff] %v3618_v0 }
  0xca   :  { %2302 = vmatpush1.bf16.msra.mxu0 %v3545_v33 }
  0xcb   :  { %2304 = vmatprep.subr.bf16.mxu0 %v3548_v34 }
  0xce   :  { %2306 = vmatpush1.bf16.msra.mxu0 %v3551_v39 }
  0xcf   :  { %2308 = vmatprep.subr.bf16.mxu0 %v3554_v40 }
  0xd2   :  { %2310 = vmatpush1.bf16.msra.mxu0 %v3557_v49 }
  0xd3   :  { %2312 = vmatprep.subr.bf16.mxu0 %v3560_v50 }
  0xd6   :  { %2314 = vmatpush1.bf16.msra.mxu0 %v3563_v54 }
  0xd7   :  { %2316 = vmatprep.subr.bf16.mxu0 %v3566_v57 }
  0xda   :  { %2318 = vmatpush1.bf16.msra.mxu0 %v3569_v62 }
  0xdb   :  { %2320 = vmatprep.subr.bf16.mxu0 %v3573_v11 }
  0xde   :  { %2322 = vmatpush1.bf16.msra.mxu0 %v3575_v15 }
  0xdf   :  { %2388 = vmatprep.subr.bf16.mxu0 %v3581_v26 }
 0x174   :  { %v572_v42 = vpop.f32.mrb[0].mxu0 }
 0x175   :  { %v573_v51 = vadd.f32 %v572_v42, %v499_v38  ;;  %v574_v52 = vpop.f32.mrb[1].mxu0  ;;  %v156_v42 = vld [vmem:[#allocation7 + $0x98] sm:$0xff] }
 0x176   :  { %v575_v61 = vadd.f32 %v574_v52, %v503_v41  ;;  %v3627_v2 = vpack.c.bf16 %v160_v47, %v156_v42 }
 0x177   :  { %v3604_v14 = vmax.f32 %v573_v51, 0.0 }
 0x178   :  { %v3598_v3 = vmax.f32 %v575_v61, 0.0  ;;  %v578_v6 = vpop.f32.mrb[2].mxu0  ;;  %v273_v61 = vld [vmem:[#allocation8 + $0x40] sm:$0xff]  ;;  %4714 = vst [vmem:[#allocation62_spill] sm:$0xff] %v3627_v2 }
 0x179   :  { %v579_v18 = vadd.f32 %v578_v6, %v499_v38  ;;  %v580_v19 = vpop.f32.mrb[3].mxu0  ;;  %v155_v38 = vld [vmem:[#allocation7 + $0x90] sm:$0xff]  ;;  %v3629_v6 = vpack.c.bf16 %v276_v53, %v274_v48  ;;  %v3642_v48 = vpack.c.bf16 %v275_v63, %v273_v61  ;;  %v277_v61 = vld [vmem:[#allocation8 + $0x60] sm:$0xff] }
 0x17a   :  { %v581_v52 = vadd.f32 %v580_v19, %v503_v41  ;;  %662 = vmatprep.mubr.f32.mxu1 %v3598_v3  ;;  %788 = vmatprep.mubr.f32.mxu0 %v3598_v3  ;;  %v3620_v41 = vpack.c.bf16 %v271_v36, %v269_v27  ;;  %v164_v19 = vld [vmem:[#allocation7 + $0xd8] sm:$0xff]  ;;  %v707_v13 = vrot.slane %v3598_v3, 7  ;;  %v278_v27 = vld [vmem:[#allocation8 + $0x68] sm:$0xff]  ;;  %v3640_v47 = vpack.c.bf16 %v159_v60, %v155_v38  ;;  %v279_v63 = vld [vmem:[#allocation8 + $0x70] sm:$0xff] }
 0x17b   :  { %663 = vmatmul.mubr.f32.vlgmr.msra.gmra.mrb[0].mxu1 %v3604_v14  ;;  %789 = vmatmul.mubr.f32.vlgmr.msra.gmra.mrb[4].mxu0 %v3604_v14  ;;  %v3623_v1 = vmax.f32 %v579_v18, 0.0  ;;  %4715 = vst [vmem:[#allocation63_spill] sm:$0xff] %v3629_v6  ;;  %v280_v36 = vld [vmem:[#allocation8 + $0x78] sm:$0xff]  ;;  %4717 = vst [vmem:[#allocation65_spill] sm:$0xff] %v3642_v48  ;;  %v3657_v38 = vpack.c.bf16 %v168_v12, %v164_v19  ;;  %v3671_v19 = vpack.c.bf16 %v279_v63, %v277_v61  ;;  %v171_v12 = vld [vmem:[#allocation7 + $0x110] sm:$0xff] }
 0x17c   :  { %v3614_v51 = vmax.f32 %v581_v52, 0.0  ;;  %2326 = vmatpush1.bf16.msra.mxu1 %v3600_v7  ;;  %2390 = vmatpush1.bf16.msra.mxu0 %v3602_v8  ;;  %4713 = vst [vmem:[#allocation61_spill] sm:$0xff] %v3620_v41  ;;  %v716_v52 = vrot.slane %v3598_v3, 1  ;;  %4716 = vst [vmem:[#allocation64_spill] sm:$0xff] %v3640_v47  ;;  %v167_v8 = vld [vmem:[#allocation7 + $0xf0] sm:$0xff]  ;;  %v3659_v60 = vpack.c.bf16 %v280_v36, %v278_v27 }
 0x17d   :  { %2328 = vmatprep.subr.bf16.mxu1 %v3606_v21  ;;  %2392 = vmatprep.subr.bf16.mxu0 %v3608_v25  ;;  %v163_v25 = vld [vmem:[#allocation7 + $0xd0] sm:$0xff]  ;;  %4718 = vst [vmem:[#allocation66_spill] sm:$0xff] %v3657_v38  ;;  %4721 = vst [vmem:[#allocation69_spill] sm:$0xff] %v3671_v19 }
 0x17e   :  { %668 = vmatprep.mubr.f32.mxu1 %v3614_v51  ;;  %794 = vmatprep.mubr.f32.mxu0 %v3614_v51  ;;  %v709_v18 = vrot.slane %v3614_v51, 7  ;;  %v718_v42 = vrot.slane %v3614_v51, 1  ;;  %4719 = vst [vmem:[#allocation67_spill] sm:$0xff] %v3659_v60  ;;  %v175_v27 = vld [vmem:[#allocation7 + $0x130] sm:$0xff] }
 0x17f   :  { %669 = vmatmul.mubr.f32.gmra.mrb[2].mxu1 %v3623_v1  ;;  %795 = vmatmul.mubr.f32.gmra.mrb[6].mxu0 %v3623_v1  ;;  %v179_v61 = vld [vmem:[#allocation7 + $0x150] sm:$0xff] }
 0x180   :  { %2330 = vmatpush1.bf16.msra.mxu1 %v3618_v0  ;;  %2394 = vmatpush1.bf16.msra.mxu0 %v3620_v41  ;;  %v714_v53 = vsel %vm710_vm0, %v709_v18, %v707_v13  ;;  %v3650_v21 = vsel %vm710_vm0, %v707_v13, %v709_v18  ;;  %v3654_v7 = vsel %vm719_vm1, %v716_v52, %v718_v42  ;;  %v172_v41 = vld [vmem:[#allocation7 + $0x118] sm:$0xff]  ;;  %v282_v18 = vld [vmem:[#allocation8 + $0x88] sm:$0xff]  ;;  %v183_v63 = vld [vmem:[#allocation7 + $0x170] sm:$0xff] }
 0x181   :  { %865 = vmatprep.mubr.f32.mxu1 %v3598_v3  ;;  %957 = vmatprep.mubr.f32.mxu0 %v714_v53  ;;  %v3663_v0 = vsel %vm719_vm1, %v718_v42, %v716_v52  ;;  %v176_v13 = vld [vmem:[#allocation7 + $0x138] sm:$0xff]  ;;  %v3669_v3 = vpack.c.bf16 %v167_v8, %v163_v25  ;;  %v3677_v52 = vpack.c.bf16 %v284_v37, %v282_v18  ;;  %v281_v42 = vld [vmem:[#allocation8 + $0x80] sm:$0xff]  ;;  %v283_v53 = vld [vmem:[#allocation8 + $0x90] sm:$0xff] }
 0x182   :  { %2332 = vmatprep.subr.bf16.mxu1 %v3627_v2  ;;  %2396 = vmatprep.subr.bf16.mxu0 %v3629_v6  ;;  %v3675_v36 = vpack.c.bf16 %v176_v13, %v172_v41  ;;  %v180_v6 = vld [vmem:[#allocation7 + $0x158] sm:$0xff]  ;;  %v286_v2 = vld [vmem:[#allocation8 + $0xa8] sm:$0xff]  ;;  %v3681_v8 = vpack.c.bf16 %v175_v27, %v171_v12  ;;  %v3683_v25 = vpack.c.bf16 %v283_v53, %v281_v42  ;;  %v285_v13 = vld [vmem:[#allocation8 + $0xa0] sm:$0xff] }
 0x183   :  { %4720 = vst [vmem:[#allocation68_spill] sm:$0xff] %v3669_v3  ;;  %4723 = vst [vmem:[#allocation71_spill] sm:$0xff] %v3677_v52  ;;  %v287_v18 = vld [vmem:[#allocation8 + $0xb0] sm:$0xff]  ;;  %v3693_v12 = vpack.c.bf16 %v183_v63, %v179_v61 }
 0x184   :  { %2334 = vmatpush1.bf16.msra.mxu1 %v3640_v47  ;;  %2398 = vmatpush1.bf16.msra.mxu0 %v3642_v48  ;;  %4722 = vst [vmem:[#allocation70_spill] sm:$0xff] %v3675_v36  ;;  %v184_v47 = vld [vmem:[#allocation7 + $0x178] sm:$0xff]  ;;  %4724 = vst [vmem:[#allocation72_spill] sm:$0xff] %v3681_v8  ;;  %v3695_v27 = vpack.c.bf16 %v287_v18, %v285_v13  ;;  %v187_v42 = vld [vmem:[#allocation7 + $0x190] sm:$0xff] }
 0x185   :  { %2336 = vmatprep.subr.bf16.mxu1 %v3657_v38  ;;  %2400 = vmatprep.subr.bf16.mxu0 %v3659_v60  ;;  %v288_v48 = vld [vmem:[#allocation8 + $0xb8] sm:$0xff]  ;;  %4725 = vst [vmem:[#allocation73_spill] sm:$0xff] %v3683_v25  ;;  %v3687_v37 = vpack.c.bf16 %v184_v47, %v180_v6  ;;  %v290_v38 = vld [vmem:[#allocation8 + $0xc8] sm:$0xff]  ;;  %4728 = vst [vmem:[#allocation76_spill] sm:$0xff] %v3693_v12 }
 0x186   :  { %v3689_v41 = vpack.c.bf16 %v288_v48, %v286_v2  ;;  %v188_v60 = vld [vmem:[#allocation7 + $0x198] sm:$0xff]  ;;  %4729 = vst [vmem:[#allocation77_spill] sm:$0xff] %v3695_v27  ;;  %v191_v53 = vld [vmem:[#allocation7 + $0x1b0] sm:$0xff]  ;;  %v289_v47 = vld [vmem:[#allocation8 + $0xc0] sm:$0xff] }
 0x187   :  { %4726 = vst [vmem:[#allocation74_spill] sm:$0xff] %v3687_v37  ;;  %v291_v48 = vld [vmem:[#allocation8 + $0xd0] sm:$0xff]  ;;  %v3705_v61 = vpack.c.bf16 %v191_v53, %v187_v42 }
 0x188   :  { %2338 = vmatpush1.bf16.msra.mxu1 %v3669_v3  ;;  %2402 = vmatpush1.bf16.msra.mxu0 %v3671_v19  ;;  %4727 = vst [vmem:[#allocation75_spill] sm:$0xff] %v3689_v41  ;;  %v192_v3 = vld [vmem:[#allocation7 + $0x1b8] sm:$0xff]  ;;  %v3707_v63 = vpack.c.bf16 %v291_v48, %v289_v47  ;;  %v195_v13 = vld [vmem:[#allocation7 + $0x1d0] sm:$0xff] }
 0x189   :  { %2340 = vmatprep.subr.bf16.mxu1 %v3675_v36  ;;  %2404 = vmatprep.subr.bf16.mxu0 %v3677_v52  ;;  %v292_v19 = vld [vmem:[#allocation8 + $0xd8] sm:$0xff]  ;;  %v3699_v2 = vpack.c.bf16 %v192_v3, %v188_v60  ;;  %v294_v36 = vld [vmem:[#allocation8 + $0xe8] sm:$0xff]  ;;  %4732 = vst [vmem:[#allocation80_spill] sm:$0xff] %v3705_v61  ;;  %v199_v18 = vld [vmem:[#allocation7 + $0x1f0] sm:$0xff] }
 0x18a   :  { %v3701_v6 = vpack.c.bf16 %v292_v19, %v290_v38  ;;  %v196_v52 = vld [vmem:[#allocation7 + $0x1d8] sm:$0xff]  ;;  %4733 = vst [vmem:[#allocation81_spill] sm:$0xff] %v3707_v63  ;;  %v293_v3 = vld [vmem:[#allocation8 + $0xe0] sm:$0xff]  ;;  %v295_v19 = vld [vmem:[#allocation8 + $0xf0] sm:$0xff]  ;;  %v3717_v42 = vpack.c.bf16 %v199_v18, %v195_v13 }
 0x18b   :  { %4730 = vst [vmem:[#allocation78_spill] sm:$0xff] %v3699_v2  ;;  %v3719_v53 = vpack.c.bf16 %v295_v19, %v293_v3  ;;  %v203_v47 = vld [vmem:[#allocation7 + $0x210] sm:$0xff] }
 0x18c   :  { %2342 = vmatpush1.bf16.msra.mxu1 %v3681_v8  ;;  %2406 = vmatpush1.bf16.msra.mxu0 %v3683_v25  ;;  %4731 = vst [vmem:[#allocation79_spill] sm:$0xff] %v3701_v6  ;;  %v200_v8 = vld [vmem:[#allocation7 + $0x1f8] sm:$0xff]  ;;  %4736 = vst [vmem:[#allocation84_spill] sm:$0xff] %v3717_v42  ;;  %v207_v48 = vld [vmem:[#allocation7 + $0x230] sm:$0xff] }
 0x18d   :  { %2344 = vmatprep.subr.bf16.mxu1 %v3687_v37  ;;  %2408 = vmatprep.subr.bf16.mxu0 %v3689_v41  ;;  %v296_v25 = vld [vmem:[#allocation8 + $0xf8] sm:$0xff]  ;;  %v3711_v38 = vpack.c.bf16 %v200_v8, %v196_v52  ;;  %v298_v37 = vld [vmem:[#allocation8 + $0x108] sm:$0xff]  ;;  %4737 = vst [vmem:[#allocation85_spill] sm:$0xff] %v3719_v53  ;;  %v297_v8 = vld [vmem:[#allocation8 + $0x100] sm:$0xff]  ;;  %v3729_v13 = vpack.c.bf16 %v207_v48, %v203_v47 }
 0x18e   :  { %v3713_v60 = vpack.c.bf16 %v296_v25, %v294_v36  ;;  %v204_v41 = vld [vmem:[#allocation7 + $0x218] sm:$0xff]  ;;  %v299_v25 = vld [vmem:[#allocation8 + $0x110] sm:$0xff] }
 0x18f   :  { %4734 = vst [vmem:[#allocation82_spill] sm:$0xff] %v3711_v38  ;;  %4740 = vst [vmem:[#allocation88_spill] sm:$0xff] %v3729_v13  ;;  %v3731_v18 = vpack.c.bf16 %v299_v25, %v297_v8  ;;  %v211_v3 = vld [vmem:[#allocation7 + $0x250] sm:$0xff] }
 0x190   :  { %2346 = vmatpush1.bf16.msra.mxu1 %v3693_v12  ;;  %2410 = vmatpush1.bf16.msra.mxu0 %v3695_v27  ;;  %4735 = vst [vmem:[#allocation83_spill] sm:$0xff] %v3713_v60  ;;  %v208_v12 = vld [vmem:[#allocation7 + $0x238] sm:$0xff]  ;;  %v215_v19 = vld [vmem:[#allocation7 + $0x270] sm:$0xff] }
 0x191   :  { %2348 = vmatprep.subr.bf16.mxu1 %v3699_v2  ;;  %2412 = vmatprep.subr.bf16.mxu0 %v3701_v6  ;;  %v300_v27 = vld [vmem:[#allocation8 + $0x118] sm:$0xff]  ;;  %v3723_v36 = vpack.c.bf16 %v208_v12, %v204_v41  ;;  %v302_v2 = vld [vmem:[#allocation8 + $0x128] sm:$0xff]  ;;  %4741 = vst [vmem:[#allocation89_spill] sm:$0xff] %v3731_v18  ;;  %v301_v12 = vld [vmem:[#allocation8 + $0x120] sm:$0xff]  ;;  %v3741_v47 = vpack.c.bf16 %v215_v19, %v211_v3 }
 0x192   :  { %v3725_v52 = vpack.c.bf16 %v300_v27, %v298_v37  ;;  %v212_v6 = vld [vmem:[#allocation7 + $0x258] sm:$0xff]  ;;  %v303_v27 = vld [vmem:[#allocation8 + $0x130] sm:$0xff] }
 0x193   :  { %4738 = vst [vmem:[#allocation86_spill] sm:$0xff] %v3723_v36  ;;  %4744 = vst [vmem:[#allocation92_spill] sm:$0xff] %v3741_v47  ;;  %v3743_v48 = vpack.c.bf16 %v303_v27, %v301_v12  ;;  %v219_v8 = vld [vmem:[#allocation7 + $0x290] sm:$0xff] }
 0x194   :  { %2350 = vmatpush1.bf16.msra.mxu1 %v3705_v61  ;;  %2414 = vmatpush1.bf16.msra.mxu0 %v3707_v63  ;;  %4739 = vst [vmem:[#allocation87_spill] sm:$0xff] %v3725_v52  ;;  %v216_v61 = vld [vmem:[#allocation7 + $0x278] sm:$0xff]  ;;  %v223_v25 = vld [vmem:[#allocation7 + $0x2b0] sm:$0xff] }
 0x195   :  { %2352 = vmatprep.subr.bf16.mxu1 %v3711_v38  ;;  %2416 = vmatprep.subr.bf16.mxu0 %v3713_v60  ;;  %v304_v63 = vld [vmem:[#allocation8 + $0x138] sm:$0xff]  ;;  %v3735_v37 = vpack.c.bf16 %v216_v61, %v212_v6  ;;  %v306_v38 = vld [vmem:[#allocation8 + $0x148] sm:$0xff]  ;;  %4745 = vst [vmem:[#allocation93_spill] sm:$0xff] %v3743_v48  ;;  %v305_v61 = vld [vmem:[#allocation8 + $0x140] sm:$0xff]  ;;  %v3753_v3 = vpack.c.bf16 %v223_v25, %v219_v8 }
 0x196   :  { %v3737_v41 = vpack.c.bf16 %v304_v63, %v302_v2  ;;  %v220_v60 = vld [vmem:[#allocation7 + $0x298] sm:$0xff]  ;;  %v307_v63 = vld [vmem:[#allocation8 + $0x150] sm:$0xff] }
 0x197   :  { %4742 = vst [vmem:[#allocation90_spill] sm:$0xff] %v3735_v37  ;;  %4748 = vst [vmem:[#allocation96_spill] sm:$0xff] %v3753_v3  ;;  %v3755_v19 = vpack.c.bf16 %v307_v63, %v305_v61  ;;  %v227_v12 = vld [vmem:[#allocation7 + $0x2d0] sm:$0xff] }
 0x198   :  { %2354 = vmatpush1.bf16.msra.mxu1 %v3717_v42  ;;  %2418 = vmatpush1.bf16.msra.mxu0 %v3719_v53  ;;  %4743 = vst [vmem:[#allocation91_spill] sm:$0xff] %v3737_v41  ;;  %v224_v42 = vld [vmem:[#allocation7 + $0x2b8] sm:$0xff]  ;;  %v231_v27 = vld [vmem:[#allocation7 + $0x2f0] sm:$0xff] }
 0x199   :  { %2356 = vmatprep.subr.bf16.mxu1 %v3723_v36  ;;  %2420 = vmatprep.subr.bf16.mxu0 %v3725_v52  ;;  %v308_v53 = vld [vmem:[#allocation8 + $0x158] sm:$0xff]  ;;  %v3747_v2 = vpack.c.bf16 %v224_v42, %v220_v60  ;;  %v310_v36 = vld [vmem:[#allocation8 + $0x168] sm:$0xff]  ;;  %4749 = vst [vmem:[#allocation97_spill] sm:$0xff] %v3755_v19  ;;  %v309_v42 = vld [vmem:[#allocation8 + $0x160] sm:$0xff]  ;;  %v3765_v8 = vpack.c.bf16 %v231_v27, %v227_v12 }
 0x19a   :  { %v3749_v6 = vpack.c.bf16 %v308_v53, %v306_v38  ;;  %v228_v52 = vld [vmem:[#allocation7 + $0x2d8] sm:$0xff]  ;;  %v311_v53 = vld [vmem:[#allocation8 + $0x170] sm:$0xff] }
 0x19b   :  { %4746 = vst [vmem:[#allocation94_spill] sm:$0xff] %v3747_v2  ;;  %4752 = vst [vmem:[#allocation100_spill] sm:$0xff] %v3765_v8  ;;  %v3767_v25 = vpack.c.bf16 %v311_v53, %v309_v42  ;;  %v235_v61 = vld [vmem:[#allocation7 + $0x310] sm:$0xff] }
 0x19c   :  { %2358 = vmatpush1.bf16.msra.mxu1 %v3729_v13  ;;  %2422 = vmatpush1.bf16.msra.mxu0 %v3731_v18  ;;  %4747 = vst [vmem:[#allocation95_spill] sm:$0xff] %v3749_v6  ;;  %v232_v13 = vld [vmem:[#allocation7 + $0x2f8] sm:$0xff]  ;;  %v239_v63 = vld [vmem:[#allocation7 + $0x330] sm:$0xff] }
 0x19d   :  { %2360 = vmatprep.subr.bf16.mxu1 %v3735_v37  ;;  %2424 = vmatprep.subr.bf16.mxu0 %v3737_v41  ;;  %v312_v18 = vld [vmem:[#allocation8 + $0x178] sm:$0xff]  ;;  %v3759_v38 = vpack.c.bf16 %v232_v13, %v228_v52  ;;  %v314_v37 = vld [vmem:[#allocation8 + $0x188] sm:$0xff]  ;;  %4753 = vst [vmem:[#allocation101_spill] sm:$0xff] %v3767_v25  ;;  %v313_v13 = vld [vmem:[#allocation8 + $0x180] sm:$0xff]  ;;  %v3777_v12 = vpack.c.bf16 %v239_v63, %v235_v61 }
 0x19e   :  { %v3761_v60 = vpack.c.bf16 %v312_v18, %v310_v36  ;;  %v236_v41 = vld [vmem:[#allocation7 + $0x318] sm:$0xff]  ;;  %v315_v18 = vld [vmem:[#allocation8 + $0x190] sm:$0xff] }
 0x19f   :  { %4750 = vst [vmem:[#allocation98_spill] sm:$0xff] %v3759_v38  ;;  %4756 = vst [vmem:[#allocation104_spill] sm:$0xff] %v3777_v12  ;;  %v3779_v27 = vpack.c.bf16 %v315_v18, %v313_v13  ;;  %v243_v42 = vld [vmem:[#allocation7 + $0x350] sm:$0xff] }
 0x1a0   :  { %2362 = vmatpush1.bf16.msra.mxu1 %v3741_v47  ;;  %2426 = vmatpush1.bf16.msra.mxu0 %v3743_v48  ;;  %4751 = vst [vmem:[#allocation99_spill] sm:$0xff] %v3761_v60  ;;  %v240_v47 = vld [vmem:[#allocation7 + $0x338] sm:$0xff]  ;;  %v247_v53 = vld [vmem:[#allocation7 + $0x370] sm:$0xff] }
 0x1a1   :  { %2364 = vmatprep.subr.bf16.mxu1 %v3747_v2  ;;  %2428 = vmatprep.subr.bf16.mxu0 %v3749_v6  ;;  %v316_v48 = vld [vmem:[#allocation8 + $0x198] sm:$0xff]  ;;  %v3771_v36 = vpack.c.bf16 %v240_v47, %v236_v41  ;;  %v318_v2 = vld [vmem:[#allocation8 + $0x1a8] sm:$0xff]  ;;  %4757 = vst [vmem:[#allocation105_spill] sm:$0xff] %v3779_v27  ;;  %v317_v47 = vld [vmem:[#allocation8 + $0x1a0] sm:$0xff]  ;;  %v3789_v61 = vpack.c.bf16 %v247_v53, %v243_v42 }
 0x1a2   :  { %v3773_v52 = vpack.c.bf16 %v316_v48, %v314_v37  ;;  %v244_v6 = vld [vmem:[#allocation7 + $0x358] sm:$0xff]  ;;  %v319_v48 = vld [vmem:[#allocation8 + $0x1b0] sm:$0xff] }
 0x1a3   :  { %4754 = vst [vmem:[#allocation102_spill] sm:$0xff] %v3771_v36  ;;  %4760 = vst [vmem:[#allocation108_spill] sm:$0xff] %v3789_v61  ;;  %v3791_v63 = vpack.c.bf16 %v319_v48, %v317_v47  ;;  %v251_v13 = vld [vmem:[#allocation7 + $0x390] sm:$0xff] }
 0x1a4   :  { %2366 = vmatpush1.bf16.msra.mxu1 %v3753_v3  ;;  %2430 = vmatpush1.bf16.msra.mxu0 %v3755_v19  ;;  %4755 = vst [vmem:[#allocation103_spill] sm:$0xff] %v3773_v52  ;;  %v248_v3 = vld [vmem:[#allocation7 + $0x378] sm:$0xff]  ;;  %v255_v18 = vld [vmem:[#allocation7 + $0x3b0] sm:$0xff] }
 0x1a5   :  { %2368 = vmatprep.subr.bf16.mxu1 %v3759_v38  ;;  %2432 = vmatprep.subr.bf16.mxu0 %v3761_v60  ;;  %v320_v19 = vld [vmem:[#allocation8 + $0x1b8] sm:$0xff]  ;;  %v3783_v37 = vpack.c.bf16 %v248_v3, %v244_v6  ;;  %v322_v38 = vld [vmem:[#allocation8 + $0x1c8] sm:$0xff]  ;;  %4761 = vst [vmem:[#allocation109_spill] sm:$0xff] %v3791_v63  ;;  %v321_v3 = vld [vmem:[#allocation8 + $0x1c0] sm:$0xff]  ;;  %v3801_v42 = vpack.c.bf16 %v255_v18, %v251_v13 }
 0x1a6   :  { %v3785_v41 = vpack.c.bf16 %v320_v19, %v318_v2  ;;  %v252_v60 = vld [vmem:[#allocation7 + $0x398] sm:$0xff]  ;;  %v323_v19 = vld [vmem:[#allocation8 + $0x1d0] sm:$0xff] }
 0x1a7   :  { %4758 = vst [vmem:[#allocation106_spill] sm:$0xff] %v3783_v37  ;;  %4764 = vst [vmem:[#allocation112_spill] sm:$0xff] %v3801_v42  ;;  %v3803_v53 = vpack.c.bf16 %v323_v19, %v321_v3  ;;  %v259_v47 = vld [vmem:[#allocation7 + $0x3d0] sm:$0xff]  ;;  %v717_v3 = vrot.slane %v3623_v1, 1  ;;  %v715_v19 = vrot.slane %v3604_v14, 1 }
 0x1a8   :  { %2370 = vmatpush1.bf16.msra.mxu1 %v3765_v8  ;;  %2434 = vmatpush1.bf16.msra.mxu0 %v3767_v25  ;;  %4759 = vst [vmem:[#allocation107_spill] sm:$0xff] %v3785_v41  ;;  %v256_v8 = vld [vmem:[#allocation7 + $0x3b8] sm:$0xff]  ;;  %v327_v48 = vld [vmem:[#allocation8 + $0x1f0] sm:$0xff] }
 0x1a9   :  { %2372 = vmatprep.subr.bf16.mxu1 %v3771_v36  ;;  %2436 = vmatprep.subr.bf16.mxu0 %v3773_v52  ;;  %v324_v25 = vld [vmem:[#allocation8 + $0x1d8] sm:$0xff]  ;;  %v3795_v2 = vpack.c.bf16 %v256_v8, %v252_v60  ;;  %v326_v36 = vld [vmem:[#allocation8 + $0x1e8] sm:$0xff]  ;;  %4765 = vst [vmem:[#allocation113_spill] sm:$0xff] %v3803_v53  ;;  %v263_v8 = vld [vmem:[#allocation7 + $0x3f0] sm:$0xff] }
 0x1aa   :  { %v3797_v6 = vpack.c.bf16 %v324_v25, %v322_v38  ;;  %v260_v52 = vld [vmem:[#allocation7 + $0x3d8] sm:$0xff]  ;;  %v325_v25 = vld [vmem:[#allocation8 + $0x1e0] sm:$0xff]  ;;  %v3813_v13 = vpack.c.bf16 %v263_v8, %v259_v47  ;;  %v332_v47 = vld [vmem:[#allocation10 + $0x10] sm:$0xff] }
 0x1ab   :  { %4762 = vst [vmem:[#allocation110_spill] sm:$0xff] %v3795_v2  ;;  %v3815_v18 = vpack.c.bf16 %v327_v48, %v325_v25  ;;  %v335_v8 = vld [vmem:[#allocation10 + $0x28] sm:$0xff]  ;;  %v337_v25 = vld [vmem:[#allocation10 + $0x38] sm:$0xff] }
 0x1ac   :  { %2374 = vmatpush1.bf16.msra.mxu1 %v3777_v12  ;;  %2438 = vmatpush1.bf16.msra.mxu0 %v3779_v27  ;;  %4763 = vst [vmem:[#allocation111_spill] sm:$0xff] %v3797_v6  ;;  %v264_v12 = vld [vmem:[#allocation7 + $0x3f8] sm:$0xff]  ;;  %4768 = vst [vmem:[#allocation116_spill] sm:$0xff] %v3813_v13 }
 0x1ad   :  { %2376 = vmatprep.subr.bf16.mxu1 %v3783_v37  ;;  %2440 = vmatprep.subr.bf16.mxu0 %v3785_v41  ;;  %v328_v27 = vld [vmem:[#allocation8 + $0x1f8] sm:$0xff]  ;;  %v3807_v38 = vpack.c.bf16 %v264_v12, %v260_v52  ;;  %4769 = vst [vmem:[#allocation117_spill] sm:$0xff] %v3815_v18  ;;  %v708_v52 = vrot.slane %v3623_v1, 7 }
 0x1ae   :  { %v3809_v60 = vpack.c.bf16 %v328_v27, %v326_v36  ;;  %v706_v36 = vrot.slane %v3604_v14, 7 }
 0x1af   :  { %4766 = vst [vmem:[#allocation114_spill] sm:$0xff] %v3807_v38 }
 0x1b0   :  { %2378 = vmatpush1.bf16.msra.mxu1 %v3789_v61  ;;  %2442 = vmatpush1.bf16.msra.mxu0 %v3791_v63  ;;  %4767 = vst [vmem:[#allocation115_spill] sm:$0xff] %v3809_v60  ;;  %v713_v12 = vsel %vm710_vm0, %v708_v52, %v706_v36  ;;  %v711_v27 = vsel %vm710_vm0, %v706_v36, %v708_v52  ;;  %v334_v36 = vld [vmem:[#allocation10 + $0x20] sm:$0xff] }
 0x1b1   :  { %2380 = vmatprep.subr.bf16.mxu1 %v3795_v2  ;;  %2444 = vmatprep.subr.bf16.mxu0 %v3797_v6  ;;  %v3855_v52 = vpack.c.bf16 %v337_v25, %v335_v8  ;;  %v342_v25 = vld [vmem:[#allocation10 + $0x60] sm:$0xff] }
 0x1b4   :  { %2382 = vmatpush1.bf16.msra.mxu1 %v3801_v42  ;;  %2446 = vmatpush1.bf16.msra.mxu0 %v3803_v53 }
 0x1b5   :  { %2384 = vmatprep.subr.bf16.mxu1 %v3807_v38  ;;  %2448 = vmatprep.subr.bf16.mxu0 %v3809_v60 }
 0x1b8   :  { %2386 = vmatpush1.bf16.msra.mxu1 %v3813_v13  ;;  %2450 = vmatpush1.bf16.msra.mxu0 %v3815_v18 }
 0x1b9   :  { %2516 = vmatprep.subr.bf16.mxu0 %v3482_v20 }
 0x1bb   :  { %866 = vmatmul.mubr.f32.vlgmr.msra.gmra.mrb[4].mxu1 %v3604_v14  ;;  %958 = vmatmul.mubr.f32.vlgmr.msra.gmra.mrb[8].mxu0 %v713_v12  ;;  %v333_v14 = vld [vmem:[#allocation10 + $0x18] sm:$0xff]  ;;  %v336_v12 = vld [vmem:[#allocation10 + $0x30] sm:$0xff] }
 0x1bc   :  { %871 = vmatprep.mubr.f32.mxu1 %v3614_v51  ;;  %963 = vmatprep.mubr.f32.mxu0 %v3650_v21  ;;  %v720_v21 = vsel %vm719_vm1, %v715_v19, %v717_v3  ;;  %v722_v51 = vsel %vm719_vm1, %v717_v3, %v715_v19  ;;  %v341_v3 = vld [vmem:[#allocation10 + $0x58] sm:$0xff]  ;;  %v3860_v19 = vpack.c.bf16 %v336_v12, %v334_v36  ;;  %v344_v36 = vld [vmem:[#allocation10 + $0x70] sm:$0xff]  ;;  %v347_v12 = vld [vmem:[#allocation10 + $0x88] sm:$0xff] }
 0x1bd   :  { %2518 = vmatpush1.bf16.msra.mxu0 %v3484_v31 }
 0x1be   :  { %2520 = vmatprep.subr.bf16.mxu0 %v3487_v32 }
 0x1bf   :  { %872 = vmatmul.mubr.f32.gmra.mrb[6].mxu1 %v3623_v1  ;;  %964 = vmatmul.mubr.f32.gmra.mrb[10].mxu0 %v711_v27  ;;  %v330_v1 = vld [vmem:[#allocation10] sm:$0xff]  ;;  %v339_v27 = vld [vmem:[#allocation10 + $0x48] sm:$0xff] }
 0x1c0   :  { %969 = vmatprep.mubr.f32.mxu0 %v3654_v7  ;;  %v331_v7 = vld [vmem:[#allocation10 + $0x8] sm:$0xff]  ;;  %v3853_v48 = vpack.c.bf16 %v332_v47, %v330_v1  ;;  %v345_v1 = vld [vmem:[#allocation10 + $0x78] sm:$0xff] }
 0x1c1   :  { %2522 = vmatpush1.bf16.msra.mxu0 %v3491_v44 }
 0x1c2   :  { %2524 = vmatprep.subr.bf16.mxu0 %v3494_v45 }
 0x1c3   :  { %970 = vmatmul.mubr.f32.gmra.mrb[12].mxu0 %v720_v21  ;;  %v3863_v21 = vpack.c.bf16 %v341_v3, %v339_v27  ;;  %v349_v27 = vld [vmem:[#allocation10 + $0x98] sm:$0xff]  ;;  %v3876_v3 = vpack.c.bf16 %v344_v36, %v342_v25  ;;  %v350_v36 = vld [vmem:[#allocation10 + $0xa0] sm:$0xff] }
 0x1c4   :  { %975 = vmatprep.mubr.f32.mxu0 %v3663_v0  ;;  %v3850_v0 = vpack.c.bf16 %v333_v14, %v331_v7  ;;  %v340_v7 = vld [vmem:[#allocation10 + $0x50] sm:$0xff]  ;;  %v343_v14 = vld [vmem:[#allocation10 + $0x68] sm:$0xff] }
 0x1c5   :  { %2526 = vmatpush1.bf16.msra.mxu0 %v3497_v55  ;;  %v3871_v8 = vpack.c.bf16 %v345_v1, %v343_v14  ;;  %v351_v14 = vld [vmem:[#allocation10 + $0xa8] sm:$0xff]  ;;  %v353_v1 = vld [vmem:[#allocation10 + $0xb8] sm:$0xff] }
 0x1c6   :  { %2528 = vmatprep.subr.bf16.mxu0 %v3500_v56  ;;  %4770 = vst [vmem:[#allocation118_spill] sm:$0xff] %v3850_v0  ;;  %2452 = vmatprep.subr.bf16.mxu1 %v3850_v0  ;;  %v3887_v25 = vpack.c.bf16 %v353_v1, %v351_v14  ;;  %v359_v14 = vld [vmem:[#allocation10 + $0xe8] sm:$0xff]  ;;  %v361_v1 = vld [vmem:[#allocation10 + $0xf8] sm:$0xff] }
 0x1c7   :  { %976 = vmatmul.mubr.f32.gmra.mrb[14].mxu0 %v722_v51  ;;  %2454 = vmatpush1.bf16.msra.mxu1 %v3853_v48  ;;  %v338_v51 = vld [vmem:[#allocation10 + $0x40] sm:$0xff] }
 0x1c8   :  { %2456 = vmatprep.subr.bf16.mxu1 %v3855_v52  ;;  %v3868_v47 = vpack.c.bf16 %v340_v7, %v338_v51  ;;  %v3879_v51 = vpack.c.bf16 %v349_v27, %v347_v12  ;;  %v346_v7 = vld [vmem:[#allocation10 + $0x80] sm:$0xff]  ;;  %v355_v12 = vld [vmem:[#allocation10 + $0xc8] sm:$0xff]  ;;  %v357_v27 = vld [vmem:[#allocation10 + $0xd8] sm:$0xff] }
 0x1c9   :  { %2530 = vmatpush1.bf16.msra.mxu0 %v3503_v4 }
 0x1ca   :  { %2532 = vmatprep.subr.bf16.mxu0 %v3506_v5 }
 0x1cb   :  { %2458 = vmatpush1.bf16.msra.mxu1 %v3860_v19 }
 0x1cc   :  { %2460 = vmatprep.subr.bf16.mxu1 %v3863_v21 }
 0x1cd   :  { %2534 = vmatpush1.bf16.msra.mxu0 %v3509_v16 }
 0x1ce   :  { %2536 = vmatprep.subr.bf16.mxu0 %v3512_v17 }
 0x1cf   :  { %2462 = vmatpush1.bf16.msra.mxu1 %v3868_v47 }
 0x1d0   :  { %2464 = vmatprep.subr.bf16.mxu1 %v3871_v8 }
 0x1d1   :  { %2538 = vmatpush1.bf16.msra.mxu0 %v3515_v29  ;;  %v393_v29 = vld [vmem:[#allocation10 + $0x1f8] sm:$0xff] }
 0x1d2   :  { %2540 = vmatprep.subr.bf16.mxu0 %v3518_v30  ;;  %v384_v30 = vld [vmem:[#allocation10 + $0x1b0] sm:$0xff] }
 0x1d3   :  { %2466 = vmatpush1.bf16.msra.mxu1 %v3876_v3 }
 0x1d4   :  { %2468 = vmatprep.subr.bf16.mxu1 %v3879_v51 }
 0x1d5   :  { %2542 = vmatpush1.bf16.msra.mxu0 %v3521_v43 }
 0x1d6   :  { %2544 = vmatprep.subr.bf16.mxu0 %v3524_v46  ;;  %v348_v46 = vld [vmem:[#allocation10 + $0x90] sm:$0xff] }
 0x1d9   :  { %2546 = vmatpush1.bf16.msra.mxu0 %v3527_v58  ;;  %v3884_v58 = vpack.c.bf16 %v348_v46, %v346_v7  ;;  %v3895_v46 = vpack.c.bf16 %v357_v27, %v355_v12  ;;  %v354_v7 = vld [vmem:[#allocation10 + $0xc0] sm:$0xff]  ;;  %v363_v12 = vld [vmem:[#allocation10 + $0x108] sm:$0xff]  ;;  %v365_v27 = vld [vmem:[#allocation10 + $0x118] sm:$0xff] }
 0x1da   :  { %2548 = vmatprep.subr.bf16.mxu0 %v3530_v59  ;;  %v352_v59 = vld [vmem:[#allocation10 + $0xb0] sm:$0xff] }
 0x1db   :  { %2470 = vmatpush1.bf16.msra.mxu1 %v3884_v58 }
 0x1dc   :  { %2472 = vmatprep.subr.bf16.mxu1 %v3887_v25 }
 0x1dd   :  { %2550 = vmatpush1.bf16.msra.mxu0 %v3533_v9  ;;  %v3892_v9 = vpack.c.bf16 %v352_v59, %v350_v36  ;;  %v3903_v59 = vpack.c.bf16 %v361_v1, %v359_v14  ;;  %v358_v36 = vld [vmem:[#allocation10 + $0xe0] sm:$0xff]  ;;  %v367_v14 = vld [vmem:[#allocation10 + $0x128] sm:$0xff]  ;;  %v369_v1 = vld [vmem:[#allocation10 + $0x138] sm:$0xff] }
 0x1de   :  { %2552 = vmatprep.subr.bf16.mxu0 %v3536_v10  ;;  %v356_v10 = vld [vmem:[#allocation10 + $0xd0] sm:$0xff] }
 0x1df   :  { %2474 = vmatpush1.bf16.msra.mxu1 %v3892_v9  ;;  %4772 = vst [vmem:[#allocation120_spill] sm:$0xff] %v3903_v59 }
 0x1e0   :  { %2476 = vmatprep.subr.bf16.mxu1 %v3895_v46 }
 0x1e1   :  { %2554 = vmatpush1.bf16.msra.mxu0 %v3539_v22  ;;  %v3900_v22 = vpack.c.bf16 %v356_v10, %v354_v7  ;;  %v3911_v10 = vpack.c.bf16 %v365_v27, %v363_v12  ;;  %v362_v7 = vld [vmem:[#allocation10 + $0x100] sm:$0xff]  ;;  %v371_v12 = vld [vmem:[#allocation10 + $0x148] sm:$0xff]  ;;  %v373_v27 = vld [vmem:[#allocation10 + $0x158] sm:$0xff] }
 0x1e2   :  { %2556 = vmatprep.subr.bf16.mxu0 %v3542_v23  ;;  %v360_v23 = vld [vmem:[#allocation10 + $0xf0] sm:$0xff] }
 0x1e3   :  { %4771 = vst [vmem:[#allocation119_spill] sm:$0xff] %v3900_v22  ;;  %2478 = vmatpush1.bf16.msra.mxu1 %v3900_v22  ;;  %4774 = vst [vmem:[#allocation122_spill] sm:$0xff] %v3911_v10 }
 0x1e4   :  { %2480 = vmatprep.subr.bf16.mxu1 %v3903_v59 }
 0x1e5   :  { %2558 = vmatpush1.bf16.msra.mxu0 %v3545_v33  ;;  %v3908_v33 = vpack.c.bf16 %v360_v23, %v358_v36  ;;  %v3919_v23 = vpack.c.bf16 %v369_v1, %v367_v14  ;;  %v366_v36 = vld [vmem:[#allocation10 + $0x120] sm:$0xff]  ;;  %v375_v14 = vld [vmem:[#allocation10 + $0x168] sm:$0xff]  ;;  %v377_v1 = vld [vmem:[#allocation10 + $0x178] sm:$0xff] }
 0x1e6   :  { %2560 = vmatprep.subr.bf16.mxu0 %v3548_v34  ;;  %v364_v34 = vld [vmem:[#allocation10 + $0x110] sm:$0xff] }
 0x1e7   :  { %4773 = vst [vmem:[#allocation121_spill] sm:$0xff] %v3908_v33  ;;  %2482 = vmatpush1.bf16.msra.mxu1 %v3908_v33  ;;  %4776 = vst [vmem:[#allocation124_spill] sm:$0xff] %v3919_v23 }
 0x1e8   :  { %2484 = vmatprep.subr.bf16.mxu1 %v3911_v10 }
 0x1e9   :  { %2562 = vmatpush1.bf16.msra.mxu0 %v3551_v39  ;;  %v3916_v39 = vpack.c.bf16 %v364_v34, %v362_v7  ;;  %v3927_v34 = vpack.c.bf16 %v373_v27, %v371_v12  ;;  %v370_v7 = vld [vmem:[#allocation10 + $0x140] sm:$0xff]  ;;  %v379_v12 = vld [vmem:[#allocation10 + $0x188] sm:$0xff]  ;;  %v381_v27 = vld [vmem:[#allocation10 + $0x198] sm:$0xff] }
 0x1ea   :  { %2564 = vmatprep.subr.bf16.mxu0 %v3554_v40  ;;  %v368_v40 = vld [vmem:[#allocation10 + $0x130] sm:$0xff] }
 0x1eb   :  { %4775 = vst [vmem:[#allocation123_spill] sm:$0xff] %v3916_v39  ;;  %2486 = vmatpush1.bf16.msra.mxu1 %v3916_v39  ;;  %4778 = vst [vmem:[#allocation126_spill] sm:$0xff] %v3927_v34 }
 0x1ec   :  { %2488 = vmatprep.subr.bf16.mxu1 %v3919_v23 }
 0x1ed   :  { %2566 = vmatpush1.bf16.msra.mxu0 %v3557_v49  ;;  %v3924_v49 = vpack.c.bf16 %v368_v40, %v366_v36  ;;  %v3935_v40 = vpack.c.bf16 %v377_v1, %v375_v14  ;;  %v374_v36 = vld [vmem:[#allocation10 + $0x160] sm:$0xff]  ;;  %v383_v14 = vld [vmem:[#allocation10 + $0x1a8] sm:$0xff]  ;;  %v385_v1 = vld [vmem:[#allocation10 + $0x1b8] sm:$0xff] }
 0x1ee   :  { %2568 = vmatprep.subr.bf16.mxu0 %v3560_v50  ;;  %v372_v50 = vld [vmem:[#allocation10 + $0x150] sm:$0xff] }
 0x1ef   :  { %4777 = vst [vmem:[#allocation125_spill] sm:$0xff] %v3924_v49  ;;  %2490 = vmatpush1.bf16.msra.mxu1 %v3924_v49  ;;  %4780 = vst [vmem:[#allocation128_spill] sm:$0xff] %v3935_v40 }
 0x1f0   :  { %2492 = vmatprep.subr.bf16.mxu1 %v3927_v34 }
 0x1f1   :  { %2570 = vmatpush1.bf16.msra.mxu0 %v3563_v54  ;;  %v3932_v54 = vpack.c.bf16 %v372_v50, %v370_v7  ;;  %v3943_v50 = vpack.c.bf16 %v381_v27, %v379_v12  ;;  %v378_v7 = vld [vmem:[#allocation10 + $0x180] sm:$0xff] }
 0x1f2   :  { %2572 = vmatprep.subr.bf16.mxu0 %v3566_v57  ;;  %v376_v57 = vld [vmem:[#allocation10 + $0x170] sm:$0xff] }
 0x1f3   :  { %4779 = vst [vmem:[#allocation127_spill] sm:$0xff] %v3932_v54  ;;  %2494 = vmatpush1.bf16.msra.mxu1 %v3932_v54  ;;  %4782 = vst [vmem:[#allocation130_spill] sm:$0xff] %v3943_v50 }
 0x1f4   :  { %2496 = vmatprep.subr.bf16.mxu1 %v3935_v40 }
 0x1f5   :  { %2574 = vmatpush1.bf16.msra.mxu0 %v3569_v62  ;;  %v3940_v62 = vpack.c.bf16 %v376_v57, %v374_v36  ;;  %v387_v57 = vld [vmem:[#allocation10 + $0x1c8] sm:$0xff]  ;;  %v389_v36 = vld [vmem:[#allocation10 + $0x1d8] sm:$0xff] }
 0x1f6   :  { %2576 = vmatprep.subr.bf16.mxu0 %v3573_v11  ;;  %v380_v11 = vld [vmem:[#allocation10 + $0x190] sm:$0xff]  ;;  %v3955_v27 = vpack.c.bf16 %v389_v36, %v387_v57  ;;  %v682_v57 = vand.u32 7, %v3585_v28  ;;  %v677_v36 = vadd.s32 8, %v3585_v28 }
 0x1f7   :  { %4781 = vst [vmem:[#allocation129_spill] sm:$0xff] %v3940_v62  ;;  %2498 = vmatpush1.bf16.msra.mxu1 %v3940_v62  ;;  %v3946_v43 = vpack.c.bf16 %v380_v11, %v378_v7  ;;  %v386_v11 = vld [vmem:[#allocation10 + $0x1c0] sm:$0xff]  ;;  %v388_v7 = vld [vmem:[#allocation10 + $0x1d0] sm:$0xff] }
 0x1f8   :  { %2500 = vmatprep.subr.bf16.mxu1 %v3943_v50  ;;  %4786 = vst [vmem:[#allocation134_spill] sm:$0xff] %v3955_v27  ;;  %vm702_vm2 = vcmp.ge.s32.totalorder %v682_v57, 1  ;;  %vm704_vm3 = vcmp.le.s32.totalorder %v682_v57, 6  ;;  %v4922_v28 = vld [vmem:[#allocation81_spill] sm:$0xff] }
 0x1f9   :  { %2578 = vmatpush1.bf16.msra.mxu0 %v3575_v15  ;;  %4783 = vst [vmem:[#allocation131_spill] sm:$0xff] %v3946_v43  ;;  %v3949_v15 = vpack.c.bf16 %v385_v1, %v383_v14  ;;  %v3959_v14 = vpack.c.bf16 %v388_v7, %v386_v11  ;;  %v391_v1 = vld [vmem:[#allocation10 + $0x1e8] sm:$0xff]  ;;  %v3315_v11 = vmov 0  }
 0x1fa   :  { %2644 = vmatprep.subr.bf16.mxu0 %v3581_v26  ;;  %v382_v26 = vld [vmem:[#allocation10 + $0x1a0] sm:$0xff]  ;;  %v3962_v17 = vpack.c.bf16 %v393_v29, %v391_v1  ;;  %3107 = vset.pattern.permute.xlu0 %v3315_v11  ;;  %v689_v29 = vand.u32 7, %v677_v36  ;;  %v1098_v7 = vsel %vm702_vm2, 1, %v3315_v11 }
 0x1fb   :  { %4784 = vst [vmem:[#allocation132_spill] sm:$0xff] %v3949_v15  ;;  %2502 = vmatpush1.bf16.msra.mxu1 %v3946_v43  ;;  %v3952_v12 = vpack.c.bf16 %v384_v30, %v382_v26  ;;  %4787 = vst [vmem:[#allocation135_spill] sm:$0xff] %v3959_v14  ;;  %v390_v30 = vld [vmem:[#allocation10 + $0x1e0] sm:$0xff]  ;;  %v392_v26 = vld [vmem:[#allocation10 + $0x1f0] sm:$0xff]  ;;  %3108 = vset.pattern.permute.xlu1 %v3315_v11 }
 0x1fc   :  { %2504 = vmatprep.subr.bf16.mxu1 %v3949_v15  ;;  %4788 = vst [vmem:[#allocation136_spill] sm:$0xff] %v3962_v17  ;;  %v3964_v16 = vpack.c.bf16 %v392_v26, %v390_v30  ;;  %1103 = vperm.xlu0 %3107, %v1098_v7   ;;  %vm703_vm4 = vcmp.ge.s32.totalorder %v689_v29, 1  ;;  %vm705_vm5 = vcmp.le.s32.totalorder %v689_v29, 6  ;;  %v1100_v30 = vsel %vm704_vm3, 1, %v3315_v11  ;;  %v329_v29 = vld [vmem:[%s4474_s5] sm:$0x3] }
 0x1fd   :  { %4785 = vst [vmem:[#allocation133_spill] sm:$0xff] %v3952_v12  ;;  %v1099_v1 = vsel %vm703_vm4, 1, %v3315_v11  ;;  %v1101_v26 = vsel %vm705_vm5, 1, %v3315_v11  ;;  %v3983_v11 = vrot.slane %v329_v29, %v3588_v35  ;;  %v4793_v15 = vld [vmem:[#allocation56_spill] sm:$0xff] }
 0x1fe   :  { %4789 = vst [vmem:[#allocation137_spill] sm:$0xff] %v3964_v16  ;;  %1106 = vperm.xlu1 %3108, %v1099_v1   ;;  %v4791_v1 = vld [vmem:[#allocation55_spill] sm:$0xff] }
 0x1ff   :  { %2506 = vmatpush1.bf16.msra.mxu1 %v3952_v12  ;;  %4790 = vst [vmem:[#allocation138_spill] sm:$0xff] %v3983_v11 }
 0x200   :  { %2508 = vmatprep.subr.bf16.mxu1 %v3955_v27  ;;  %1109 = vperm.xlu0 %3107, %v1100_v30   ;;  %v3986_v30 = vrot.slane %v329_v29, %v4791_v1 }
 0x202   :  { %1112 = vperm.xlu1 %3108, %v1101_v26   ;;  %4792 = vst [vmem:[#allocation139_spill] sm:$0xff] %v3986_v30 }
 0x203   :  { %2510 = vmatpush1.bf16.msra.mxu1 %v3959_v14 }
 0x204   :  { %2512 = vmatprep.subr.bf16.mxu1 %v3962_v17 }
 0x207   :  { %2514 = vmatpush1.bf16.msra.mxu1 %v3964_v16 }
 0x208   :  { %2580 = vmatprep.subr.bf16.mxu1 %v3579_v24 }
 0x24e   :  { %v3971_v5 = vpop.f32.mrb[0].mxu1  ;;  %v790_v4 = vpop.f32.mrb[4].mxu0 }
 0x24f   :  { %v3973_v56 = vpop.f32.mrb[1].mxu1  ;;  %v792_v55 = vpop.f32.mrb[5].mxu0  ;;  %v889_v26 = vadd.f32 %v3983_v11, %v790_v4 }
 0x250   :  { %v890_v44 = vadd.f32 %v3986_v30, %v792_v55 }
 0x252   :  { %v3975_v45 = vpop.f32.mrb[2].mxu1  ;;  %v796_v36 = vpop.f32.mrb[6].mxu0 }
 0x253   :  { %v3977_v57 = vpop.f32.mrb[3].mxu1  ;;  %v798_v7 = vpop.f32.mrb[7].mxu0  ;;  %v891_v17 = vadd.f32 %v3983_v11, %v796_v36 }
 0x254   :  { %v892_v14 = vadd.f32 %v3986_v30, %v798_v7  ;;  %v4794_v7 = vld [vmem:[#allocation58_spill] sm:$0xff]  ;;  %v4795_v30 = vld [vmem:[#allocation60_spill] sm:$0xff] }
 0x28e   :  { %v3990_v32 = vpop.f32.mrb[4].mxu1  ;;  %v959_v31 = vpop.f32.mrb[8].mxu0 }
 0x28f   :  { %v960_v24 = vadd.f32 %v959_v31, %v889_v26  ;;  %v3992_v16 = vpop.f32.mrb[5].mxu1  ;;  %v961_v20 = vpop.f32.mrb[9].mxu0 }
 0x290   :  { %v962_v18 = vadd.f32 %v961_v20, %v890_v44 }
 0x291   :  { %v982_v27 = vmax.f32 %v960_v24, 0.0 }
 0x292   :  { %v983_v60 = vmax.f32 %v962_v18, 0.0  ;;  %v3996_v53 = vpop.f32.mrb[6].mxu1  ;;  %v965_v29 = vpop.f32.mrb[10].mxu0 }
 0x293   :  { %v966_v4 = vadd.f32 %v965_v29, %v891_v17  ;;  %v3998_v12 = vpop.f32.mrb[7].mxu1  ;;  %v967_v55 = vpop.f32.mrb[11].mxu0 }
 0x294   :  { %v968_v6 = vadd.f32 %v967_v55, %v892_v14  ;;  %1065 = vmatprep.mubr.f32.mxu1 %v983_v60 }
 0x295   :  { %1066 = vmatmul.mubr.f32.vlgmr.msra.gmra.mrb[8].mxu1 %v982_v27  ;;  %v984_v20 = vmax.f32 %v966_v4, 0.0  ;;  %v4796_v27 = vld [vmem:[#allocation62_spill] sm:$0xff] }
 0x296   :  { %v985_v31 = vmax.f32 %v968_v6, 0.0  ;;  %v971_v63 = vpop.f32.mrb[12].mxu0  ;;  %2582 = vmatpush1.bf16.msra.mxu1 %v4793_v15 }
 0x297   :  { %v972_v36 = vadd.f32 %v971_v63, %v889_v26  ;;  %v973_v11 = vpop.f32.mrb[13].mxu0  ;;  %2584 = vmatprep.subr.bf16.mxu1 %v4794_v7  ;;  %v4797_v63 = vld [vmem:[#allocation64_spill] sm:$0xff]  ;;  %v4798_v7 = vld [vmem:[#allocation66_spill] sm:$0xff] }
 0x298   :  { %v974_v18 = vadd.f32 %v973_v11, %v890_v44  ;;  %1071 = vmatprep.mubr.f32.mxu1 %v985_v31  ;;  %v4799_v44 = vld [vmem:[#allocation68_spill] sm:$0xff]  ;;  %v4800_v11 = vld [vmem:[#allocation70_spill] sm:$0xff] }
 0x299   :  { %1072 = vmatmul.mubr.f32.gmra.mrb[10].mxu1 %v984_v20  ;;  %v986_v43 = vmax.f32 %v972_v36, 0.0  ;;  %v4801_v31 = vld [vmem:[#allocation72_spill] sm:$0xff]  ;;  %v4806_v36 = vld [vmem:[#allocation82_spill] sm:$0xff] }
 0x29a   :  { %v987_v24 = vmax.f32 %v974_v18, 0.0  ;;  %v977_v29 = vpop.f32.mrb[14].mxu0  ;;  %2586 = vmatpush1.bf16.msra.mxu1 %v4795_v30  ;;  %v4803_v20 = vld [vmem:[#allocation76_spill] sm:$0xff] }
 0x29b   :  { %v978_v55 = vadd.f32 %v977_v29, %v891_v17  ;;  %v979_v60 = vpop.f32.mrb[15].mxu0  ;;  %2588 = vmatprep.subr.bf16.mxu1 %v4796_v27  ;;  %v4802_v17 = vld [vmem:[#allocation74_spill] sm:$0xff]  ;;  %v4807_v18 = vld [vmem:[#allocation84_spill] sm:$0xff] }
 0x29c   :  { %v980_v6 = vadd.f32 %v979_v60, %v892_v14  ;;  %1077 = vmatprep.mubr.f32.mxu1 %v987_v24  ;;  %v4804_v14 = vld [vmem:[#allocation78_spill] sm:$0xff]  ;;  %v4809_v29 = vld [vmem:[#allocation88_spill] sm:$0xff] }
 0x29d   :  { %1078 = vmatmul.mubr.f32.gmra.mrb[12].mxu1 %v986_v43  ;;  %v988_v26 = vmax.f32 %v978_v55, 0.0  ;;  %v4805_v43 = vld [vmem:[#allocation80_spill] sm:$0xff]  ;;  %v4808_v24 = vld [vmem:[#allocation86_spill] sm:$0xff] }
 0x29e   :  { %v989_v4 = vmax.f32 %v980_v6, 0.0  ;;  %2590 = vmatpush1.bf16.msra.mxu1 %v4797_v63  ;;  %v4810_v55 = vld [vmem:[#allocation90_spill] sm:$0xff]  ;;  %v4811_v60 = vld [vmem:[#allocation92_spill] sm:$0xff] }
 0x29f   :  { %2592 = vmatprep.subr.bf16.mxu1 %v4798_v7  ;;  %v4812_v6 = vld [vmem:[#allocation94_spill] sm:$0xff] }
 0x2a0   :  { %1083 = vmatprep.mubr.f32.mxu1 %v989_v4  ;;  %v4813_v4 = vld [vmem:[#allocation96_spill] sm:$0xff] }
 0x2a1   :  { %1084 = vmatmul.mubr.f32.gmra.mrb[14].mxu1 %v988_v26  ;;  %v4814_v26 = vld [vmem:[#allocation98_spill] sm:$0xff] }
 0x2a2   :  { %2594 = vmatpush1.bf16.msra.mxu1 %v4799_v44 }
 0x2a3   :  { %2596 = vmatprep.subr.bf16.mxu1 %v4800_v11 }
 0x2a6   :  { %2598 = vmatpush1.bf16.msra.mxu1 %v4801_v31 }
 0x2a7   :  { %2600 = vmatprep.subr.bf16.mxu1 %v4802_v17 }
 0x2aa   :  { %2602 = vmatpush1.bf16.msra.mxu1 %v4803_v20 }
 0x2ab   :  { %2604 = vmatprep.subr.bf16.mxu1 %v4804_v14  ;;  %v4815_v14 = vld [vmem:[#allocation100_spill] sm:$0xff] }
 0x2ae   :  { %2606 = vmatpush1.bf16.msra.mxu1 %v4805_v43  ;;  %v4816_v43 = vld [vmem:[#allocation102_spill] sm:$0xff] }
 0x2af   :  { %2608 = vmatprep.subr.bf16.mxu1 %v4806_v36  ;;  %v4817_v36 = vld [vmem:[#allocation104_spill] sm:$0xff] }
 0x2b2   :  { %2610 = vmatpush1.bf16.msra.mxu1 %v4807_v18 }
 0x2b3   :  { %2612 = vmatprep.subr.bf16.mxu1 %v4808_v24 }
 0x2b6   :  { %2614 = vmatpush1.bf16.msra.mxu1 %v4809_v29 }
 0x2b7   :  { %2616 = vmatprep.subr.bf16.mxu1 %v4810_v55 }
 0x2ba   :  { %2618 = vmatpush1.bf16.msra.mxu1 %v4811_v60 }
 0x2bb   :  { %2620 = vmatprep.subr.bf16.mxu1 %v4812_v6  ;;  %v4049_v6 = vpop.permute.xlu1 %1106 }
 0x2bc   :  { %vm1115_vm7 = vcmp.eq.s32.totalorder %v4049_v6, 1 }
 0x2be   :  { %2622 = vmatpush1.bf16.msra.mxu1 %v4813_v4 }
 0x2bf   :  { %2624 = vmatprep.subr.bf16.mxu1 %v4814_v26  ;;  %v4060_v20 = vpop.permute.xlu1 %1112 }
 0x2c0   :  { %vm1117_vm9 = vcmp.eq.s32.totalorder %v4060_v20, 1 }
 0x2c2   :  { %2626 = vmatpush1.bf16.msra.mxu1 %v4815_v14 }
 0x2c3   :  { %2628 = vmatprep.subr.bf16.mxu1 %v4816_v43  ;;  %v394_v43 = vld [vmem:[%s4476_s7] sm:$0x3] }
 0x2c6   :  { %2630 = vmatpush1.bf16.msra.mxu1 %v4817_v36  ;;  %v4036_v36 = vrot.slane %v394_v43, %v3588_v35 }
 0x2c7   :  { %2632 = vmatprep.subr.bf16.mxu1 %v3783_v37 }
 0x2ca   :  { %2634 = vmatpush1.bf16.msra.mxu1 %v3789_v61  ;;  %v4039_v61 = vrot.slane %v394_v43, %v4791_v1 }
 0x2cb   :  { %2636 = vmatprep.subr.bf16.mxu1 %v3795_v2  ;;  %v4044_v2 = vpop.permute.xlu0 %1103 }
 0x2cc   :  { %4818 = vst [vmem:[#allocation56_spill] sm:$0xff] %v4044_v2  ;;  %vm1114_vm6 = vcmp.eq.s32.totalorder %v4044_v2, 1 }
 0x2ce   :  { %2638 = vmatpush1.bf16.msra.mxu1 %v3801_v42  ;;  %v459_v42 = vld [vmem:[%s4478_s9] sm:$0x3] }
 0x2cf   :  { %2640 = vmatprep.subr.bf16.mxu1 %v3807_v38  ;;  %v595_v43 = vrot.slane %v459_v42, %v4791_v1  ;;  %v4055_v29 = vpop.permute.xlu0 %1109 }
 0x2d0   :  { %vm1116_vm8 = vcmp.eq.s32.totalorder %v4055_v29, 1 }
 0x2d2   :  { %2642 = vmatpush1.bf16.msra.mxu1 %v3813_v13 }
 0x2d3   :  { %2708 = vmatprep.subr.bf16.mxu1 %v3850_v0  ;;  %v591_v0 = vrot.slane %v459_v42, %v3588_v35 }
 0x2d5   :  { %v4053_v60 = vadd.f32 %v3971_v5, %v591_v0  ;;  %v4065_v5 = vadd.f32 %v3973_v56, %v595_v43 }
 0x2d7   :  { %4819 = vst [vmem:[#allocation60_spill] sm:$0xff] %v4053_v60 }
 0x368   :  { %v1067_v37 = vpop.f32.mrb[8].mxu1 }
 0x369   :  { %v1069_v38 = vpop.f32.mrb[9].mxu1  ;;  %v1068_v13 = vadd.f32 %v1067_v37, %v4036_v36 }
 0x36a   :  { %v1070_v26 = vadd.f32 %v1069_v38, %v4039_v61 }
 0x36b   :  { %v1090_v55 = vmax.f32 %v1068_v13, 0.0  ;;  %v1130_v13 = vadd.f32 %v3990_v32, %v4053_v60 }
 0x36c   :  { %v1073_v14 = vpop.f32.mrb[10].mxu1  ;;  %v1091_v18 = vmax.f32 %v1070_v26, 0.0 }
 0x36d   :  { %v1075_v4 = vpop.f32.mrb[11].mxu1  ;;  %v1074_v37 = vadd.f32 %v1073_v14, %v4036_v36  ;;  %v1118_v14 = vsel %vm1114_vm6, %v1090_v55, 0.0 }
 0x36e   :  { %v1076_v17 = vadd.f32 %v1075_v4, %v4039_v61 }
 0x36f   :  { %v1092_v4 = vmax.f32 %v1074_v37, 0.0 }
 0x370   :  { %v1079_v24 = vpop.f32.mrb[12].mxu1 }
 0x371   :  { %v1080_v35 = vadd.f32 %v1079_v24, %v4036_v36  ;;  %v1081_v38 = vpop.f32.mrb[13].mxu1 }
 0x372   :  { %v1082_v42 = vadd.f32 %v1081_v38, %v4039_v61  ;;  %v1119_v38 = vsel %vm1114_vm6, %v1091_v18, 0.0 }
 0x373   :  { %v1094_v26 = vmax.f32 %v1080_v35, 0.0  ;;  %v1093_v35 = vmax.f32 %v1076_v17, 0.0  ;;  %v1120_v17 = vsel %vm1115_vm7, %v1092_v4, 0.0  ;;  %v4820_v4 = vld [vmem:[#allocation57_spill] sm:$0xff] }
 0x374   :  { %v1095_v24 = vmax.f32 %v1082_v42, 0.0  ;;  %v1085_v1 = vpop.f32.mrb[14].mxu1  ;;  %v1131_v42 = vadd.f32 %v3992_v16, %v4065_v5 }
 0x375   :  { %v1122_v56 = vsel %vm1116_vm8, %v1094_v26, 0.0  ;;  %v1086_v32 = vadd.f32 %v1085_v1, %v4036_v36  ;;  %v1087_v60 = vpop.f32.mrb[15].mxu1  ;;  %v4085_v26 = vadd.f32 %v3975_v45, %v591_v0  ;;  %v4088_v1 = vadd.f32 %v3977_v57, %v595_v43 }
 0x376   :  { %v1126_v31 = vadd.f32 %v1122_v56, %v1118_v14  ;;  %v1123_v11 = vsel %vm1116_vm8, %v1095_v24, 0.0  ;;  %v1088_v55 = vadd.f32 %v1087_v60, %v4039_v61 }
 0x377   :  { %v1127_v37 = vadd.f32 %v1123_v11, %v1119_v38  ;;  %v1096_v44 = vmax.f32 %v1086_v32, 0.0  ;;  %v1132_v16 = vadd.f32 %v3996_v53, %v4085_v26  ;;  %v1121_v11 = vsel %vm1115_vm7, %v1093_v35, 0.0  ;;  %v4821_v38 = vld [vmem:[#allocation59_spill] sm:$0xff] }
 0x378   :  { %v1134_v2 = vadd.f32 %v1130_v13, %v1126_v31  ;;  %v1097_v18 = vmax.f32 %v1088_v55, 0.0  ;;  %v1133_v57 = vadd.f32 %v3998_v12, %v4088_v1 }
 0x379   :  { %v1135_v14 = vadd.f32 %v1131_v42, %v1127_v37  ;;  %v1124_v60 = vsel %vm1117_vm9, %v1096_v44, 0.0 }
 0x37a   :  { %v1125_v45 = vsel %vm1117_vm9, %v1097_v18, 0.0  ;;  %v1128_v0 = vadd.f32 %v1124_v60, %v1120_v17  ;;  %v1138_v13 = vmax.f32 %v1134_v2, 0.0 }
 0x37b   :  { %v1139_v31 = vmax.f32 %v1135_v14, 0.0  ;;  %v1129_v43 = vadd.f32 %v1125_v45, %v1121_v11 }
 0x37c   :  { %v1136_v24 = vadd.f32 %v1132_v16, %v1128_v0  ;;  %v1142_v32 = vrot.slane %v1138_v13, 7  ;;  %v1150_v12 = vrot.slane %v1138_v13, 1  ;;  %v4822_v16 = vld [vmem:[#allocation61_spill] sm:$0xff] }
 0x37d   :  { %1222 = vmatprep.mubr.f32.mxu0 %v1139_v31  ;;  %1299 = vmatprep.mubr.f32.mxu1 %v1139_v31  ;;  %v1137_v44 = vadd.f32 %v1133_v57, %v1129_v43  ;;  %v1143_v2 = vrot.slane %v1139_v31, 7  ;;  %v1151_v37 = vrot.slane %v1139_v31, 1  ;;  %v4823_v31 = vld [vmem:[#allocation63_spill] sm:$0xff] }
 0x37e   :  { %1223 = vmatmul.mubr.f32.vlgmr.msra.gmra.mrb[16].mxu0 %v1138_v13  ;;  %1300 = vmatmul.mubr.f32.vlgmr.msra.gmra.mrb[16].mxu1 %v1138_v13  ;;  %v1140_v53 = vmax.f32 %v1136_v24, 0.0  ;;  %v4824_v13 = vld [vmem:[#allocation65_spill] sm:$0xff]  ;;  %v4825_v24 = vld [vmem:[#allocation67_spill] sm:$0xff] }
 0x37f   :  { %2646 = vmatpush1.bf16.msra.mxu0 %v4820_v4  ;;  %v1141_v56 = vmax.f32 %v1137_v44, 0.0  ;;  %2710 = vmatpush1.bf16.msra.mxu1 %v3853_v48  ;;  %v4826_v44 = vld [vmem:[#allocation69_spill] sm:$0xff] }
 0x380   :  { %2648 = vmatprep.subr.bf16.mxu0 %v4821_v38  ;;  %v1144_v35 = vrot.slane %v1140_v53, 7  ;;  %v1152_v55 = vrot.slane %v1140_v53, 1  ;;  %2712 = vmatprep.subr.bf16.mxu1 %v3855_v52 }
 0x381   :  { %1228 = vmatprep.mubr.f32.mxu0 %v1141_v56  ;;  %1305 = vmatprep.mubr.f32.mxu1 %v1141_v56  ;;  %v1145_v42 = vrot.slane %v1141_v56, 7  ;;  %v1153_v18 = vrot.slane %v1141_v56, 1  ;;  %v4828_v56 = vld [vmem:[#allocation73_spill] sm:$0xff] }
 0x382   :  { %1229 = vmatmul.mubr.f32.gmra.mrb[18].mxu0 %v1140_v53  ;;  %1306 = vmatmul.mubr.f32.gmra.mrb[18].mxu1 %v1140_v53  ;;  %v4108_v17 = vsel %vm710_vm0, %v1144_v35, %v1142_v32  ;;  %v4112_v14 = vsel %vm710_vm0, %v1142_v32, %v1144_v35  ;;  %v4116_v60 = vsel %vm719_vm1, %v1150_v12, %v1152_v55  ;;  %v4827_v53 = vld [vmem:[#allocation71_spill] sm:$0xff]  ;;  %v4830_v35 = vld [vmem:[#allocation77_spill] sm:$0xff] }
 0x383   :  { %2650 = vmatpush1.bf16.msra.mxu0 %v4822_v16  ;;  %v1149_v11 = vsel %vm710_vm0, %v1145_v42, %v1143_v2  ;;  %v4123_v45 = vsel %vm710_vm0, %v1143_v2, %v1145_v42  ;;  %v4127_v0 = vsel %vm719_vm1, %v1151_v37, %v1153_v18  ;;  %v4131_v57 = vsel %vm719_vm1, %v1153_v18, %v1151_v37  ;;  %v4829_v32 = vld [vmem:[#allocation75_spill] sm:$0xff]  ;;  %v4834_v42 = vld [vmem:[#allocation85_spill] sm:$0xff] }
 0x384   :  { %1380 = vmatprep.mubr.f32.mxu0 %v1149_v11  ;;  %2652 = vmatprep.subr.bf16.mxu0 %v4823_v31  ;;  %v4136_v43 = vsel %vm719_vm1, %v1152_v55, %v1150_v12  ;;  %v4831_v12 = vld [vmem:[#allocation79_spill] sm:$0xff]  ;;  %v4832_v55 = vld [vmem:[#allocation81_spill] sm:$0xff] }
 0x385   :  { %2714 = vmatpush1.bf16.msra.mxu1 %v3860_v19  ;;  %v4833_v2 = vld [vmem:[#allocation83_spill] sm:$0xff]  ;;  %v4836_v18 = vld [vmem:[#allocation89_spill] sm:$0xff] }
 0x386   :  { %2716 = vmatprep.subr.bf16.mxu1 %v3863_v21  ;;  %v4835_v37 = vld [vmem:[#allocation87_spill] sm:$0xff] }
 0x387   :  { %2654 = vmatpush1.bf16.msra.mxu0 %v4824_v13  ;;  %v4837_v11 = vld [vmem:[#allocation91_spill] sm:$0xff] }
 0x388   :  { %2656 = vmatprep.subr.bf16.mxu0 %v4825_v24 }
 0x389   :  { %2718 = vmatpush1.bf16.msra.mxu1 %v3868_v47 }
 0x38a   :  { %2720 = vmatprep.subr.bf16.mxu1 %v3871_v8 }
 0x38b   :  { %2658 = vmatpush1.bf16.msra.mxu0 %v4826_v44 }
 0x38c   :  { %2660 = vmatprep.subr.bf16.mxu0 %v4827_v53 }
 0x38d   :  { %2722 = vmatpush1.bf16.msra.mxu1 %v3876_v3 }
 0x38e   :  { %2724 = vmatprep.subr.bf16.mxu1 %v3879_v51 }
 0x38f   :  { %2662 = vmatpush1.bf16.msra.mxu0 %v4828_v56 }
 0x390   :  { %2664 = vmatprep.subr.bf16.mxu0 %v4829_v32 }
 0x391   :  { %2726 = vmatpush1.bf16.msra.mxu1 %v3884_v58 }
 0x392   :  { %2728 = vmatprep.subr.bf16.mxu1 %v3887_v25 }
 0x393   :  { %2666 = vmatpush1.bf16.msra.mxu0 %v4830_v35 }
 0x394   :  { %2668 = vmatprep.subr.bf16.mxu0 %v4831_v12 }
 0x395   :  { %2730 = vmatpush1.bf16.msra.mxu1 %v3892_v9 }
 0x396   :  { %2732 = vmatprep.subr.bf16.mxu1 %v3895_v46 }
 0x397   :  { %2670 = vmatpush1.bf16.msra.mxu0 %v4832_v55 }
 0x398   :  { %2672 = vmatprep.subr.bf16.mxu0 %v4833_v2  ;;  %v4838_v2 = vld [vmem:[#allocation93_spill] sm:$0xff] }
 0x399   :  { %2734 = vmatpush1.bf16.msra.mxu1 %v3900_v22  ;;  %v4839_v22 = vld [vmem:[#allocation95_spill] sm:$0xff] }
 0x39a   :  { %2736 = vmatprep.subr.bf16.mxu1 %v3903_v59 }
 0x39b   :  { %2674 = vmatpush1.bf16.msra.mxu0 %v4834_v42 }
 0x39c   :  { %2676 = vmatprep.subr.bf16.mxu0 %v4835_v37  ;;  %v4840_v37 = vld [vmem:[#allocation97_spill] sm:$0xff] }
 0x39d   :  { %2738 = vmatpush1.bf16.msra.mxu1 %v3908_v33  ;;  %v4841_v33 = vld [vmem:[#allocation99_spill] sm:$0xff] }
 0x39e   :  { %2740 = vmatprep.subr.bf16.mxu1 %v3911_v10 }
 0x39f   :  { %2678 = vmatpush1.bf16.msra.mxu0 %v4836_v18 }
 0x3a0   :  { %2680 = vmatprep.subr.bf16.mxu0 %v4837_v11  ;;  %v4842_v11 = vld [vmem:[#allocation101_spill] sm:$0xff] }
 0x3a1   :  { %2742 = vmatpush1.bf16.msra.mxu1 %v3916_v39  ;;  %v4843_v39 = vld [vmem:[#allocation103_spill] sm:$0xff] }
 0x3a2   :  { %2744 = vmatprep.subr.bf16.mxu1 %v3919_v23 }
 0x3a3   :  { %2682 = vmatpush1.bf16.msra.mxu0 %v4838_v2 }
 0x3a4   :  { %2684 = vmatprep.subr.bf16.mxu0 %v4839_v22  ;;  %v4844_v22 = vld [vmem:[#allocation105_spill] sm:$0xff] }
 0x3a5   :  { %2746 = vmatpush1.bf16.msra.mxu1 %v3924_v49 }
 0x3a6   :  { %2748 = vmatprep.subr.bf16.mxu1 %v3927_v34  ;;  %v4845_v34 = vld [vmem:[#allocation131_spill] sm:$0xff] }
 0x3a7   :  { %2686 = vmatpush1.bf16.msra.mxu0 %v4840_v37  ;;  %v4846_v37 = vld [vmem:[#allocation132_spill] sm:$0xff] }
 0x3a8   :  { %2688 = vmatprep.subr.bf16.mxu0 %v4841_v33  ;;  %v4847_v33 = vld [vmem:[#allocation109_spill] sm:$0xff] }
 0x3a9   :  { %2750 = vmatpush1.bf16.msra.mxu1 %v3932_v54  ;;  %v4848_v54 = vld [vmem:[#allocation111_spill] sm:$0xff] }
 0x3aa   :  { %2752 = vmatprep.subr.bf16.mxu1 %v3935_v40  ;;  %v4849_v40 = vld [vmem:[#allocation133_spill] sm:$0xff] }
 0x3ab   :  { %2690 = vmatpush1.bf16.msra.mxu0 %v4842_v11  ;;  %v4850_v11 = vld [vmem:[#allocation134_spill] sm:$0xff] }
 0x3ac   :  { %2692 = vmatprep.subr.bf16.mxu0 %v4843_v39  ;;  %v4851_v39 = vld [vmem:[#allocation113_spill] sm:$0xff] }
 0x3ad   :  { %2754 = vmatpush1.bf16.msra.mxu1 %v3940_v62  ;;  %v4852_v62 = vld [vmem:[#allocation115_spill] sm:$0xff] }
 0x3ae   :  { %2756 = vmatprep.subr.bf16.mxu1 %v3943_v50  ;;  %v4853_v50 = vld [vmem:[#allocation135_spill] sm:$0xff] }
 0x3af   :  { %2694 = vmatpush1.bf16.msra.mxu0 %v4844_v22  ;;  %v4854_v22 = vld [vmem:[#allocation136_spill] sm:$0xff] }
 0x3b0   :  { %2696 = vmatprep.subr.bf16.mxu0 %v3785_v41  ;;  %v4855_v41 = vld [vmem:[#allocation117_spill] sm:$0xff] }
 0x3b1   :  { %2758 = vmatpush1.bf16.msra.mxu1 %v4845_v34  ;;  %v4856_v34 = vld [vmem:[#allocation20_spill] sm:$0xff] }
 0x3b2   :  { %2760 = vmatprep.subr.bf16.mxu1 %v4846_v37  ;;  %v4857_v37 = vld [vmem:[#allocation137_spill] sm:$0xff] }
 0x3b3   :  { %2698 = vmatpush1.bf16.msra.mxu0 %v4847_v33 }
 0x3b4   :  { %2700 = vmatprep.subr.bf16.mxu0 %v4848_v54  ;;  %v4858_v54 = vld [vmem:[#allocation52_spill] sm:$0xff] }
 0x3b5   :  { %2762 = vmatpush1.bf16.msra.mxu1 %v4849_v40 }
 0x3b6   :  { %2764 = vmatprep.subr.bf16.mxu1 %v4850_v11  ;;  %v4859_v11 = vld [vmem:[#allocation21_spill] sm:$0xff] }
 0x3b7   :  { %2702 = vmatpush1.bf16.msra.mxu0 %v4851_v39  ;;  %v4860_v39 = vld [vmem:[#allocation22_spill] sm:$0xff] }
 0x3b8   :  { %2704 = vmatprep.subr.bf16.mxu0 %v4852_v62 }
 0x3b9   :  { %2766 = vmatpush1.bf16.msra.mxu1 %v4853_v50 }
 0x3ba   :  { %2768 = vmatprep.subr.bf16.mxu1 %v4854_v22  ;;  %v4861_v22 = vld [vmem:[#allocation23_spill] sm:$0xff] }
 0x3bb   :  { %2706 = vmatpush1.bf16.msra.mxu0 %v4855_v41  ;;  %v4862_v41 = vld [vmem:[#allocation24_spill] sm:$0xff] }
 0x3bc   :  { %2772 = vmatprep.subr.bf16.mxu0 %v4856_v34  ;;  %v4863_v34 = vld [vmem:[#allocation25_spill] sm:$0xff] }
 0x3bd   :  { %2770 = vmatpush1.bf16.msra.mxu1 %v4857_v37  ;;  %v4892_v37 = vld [vmem:[#allocation139_spill] sm:$0xff] }
 0x3be   :  { %1381 = vmatmul.mubr.f32.vlgmr.msra.gmra.mrb[20].mxu0 %v4108_v17  ;;  %2836 = vmatprep.subr.bf16.mxu1 %v4858_v54  ;;  %v4864_v54 = vld [vmem:[#allocation26_spill] sm:$0xff]  ;;  %v4865_v17 = vld [vmem:[#allocation27_spill] sm:$0xff] }
 0x3bf   :  { %1386 = vmatprep.mubr.f32.mxu0 %v4123_v45  ;;  %2774 = vmatpush1.bf16.msra.mxu0 %v4859_v11  ;;  %v4868_v45 = vld [vmem:[#allocation30_spill] sm:$0xff]  ;;  %v4874_v11 = vld [vmem:[#allocation36_spill] sm:$0xff] }
 0x3c0   :  { %2776 = vmatprep.subr.bf16.mxu0 %v4860_v39  ;;  %v4866_v39 = vld [vmem:[#allocation28_spill] sm:$0xff] }
 0x3c2   :  { %1387 = vmatmul.mubr.f32.gmra.mrb[22].mxu0 %v4112_v14  ;;  %v4867_v14 = vld [vmem:[#allocation29_spill] sm:$0xff] }
 0x3c3   :  { %1392 = vmatprep.mubr.f32.mxu0 %v4127_v0  ;;  %2778 = vmatpush1.bf16.msra.mxu0 %v4861_v22  ;;  %v4869_v22 = vld [vmem:[#allocation31_spill] sm:$0xff]  ;;  %v4872_v0 = vld [vmem:[#allocation34_spill] sm:$0xff] }
 0x3c4   :  { %2780 = vmatprep.subr.bf16.mxu0 %v4862_v41  ;;  %v4870_v41 = vld [vmem:[#allocation32_spill] sm:$0xff] }
 0x3c6   :  { %1393 = vmatmul.mubr.f32.gmra.mrb[24].mxu0 %v4116_v60  ;;  %v4871_v60 = vld [vmem:[#allocation33_spill] sm:$0xff] }
 0x3c7   :  { %1398 = vmatprep.mubr.f32.mxu0 %v4131_v57  ;;  %2782 = vmatpush1.bf16.msra.mxu0 %v4863_v34  ;;  %v4873_v57 = vld [vmem:[#allocation35_spill] sm:$0xff]  ;;  %v4876_v34 = vld [vmem:[#allocation38_spill] sm:$0xff] }
 0x3c8   :  { %2784 = vmatprep.subr.bf16.mxu0 %v4864_v54  ;;  %v4877_v54 = vld [vmem:[#allocation39_spill] sm:$0xff] }
 0x3ca   :  { %1399 = vmatmul.mubr.f32.gmra.mrb[26].mxu0 %v4136_v43  ;;  %v4875_v43 = vld [vmem:[#allocation37_spill] sm:$0xff] }
 0x3cb   :  { %2786 = vmatpush1.bf16.msra.mxu0 %v4865_v17  ;;  %v4878_v17 = vld [vmem:[#allocation40_spill] sm:$0xff] }
 0x3cc   :  { %2788 = vmatprep.subr.bf16.mxu0 %v4866_v39  ;;  %v4879_v39 = vld [vmem:[#allocation41_spill] sm:$0xff] }
 0x3cf   :  { %2790 = vmatpush1.bf16.msra.mxu0 %v4867_v14  ;;  %v4880_v14 = vld [vmem:[#allocation42_spill] sm:$0xff] }
 0x3d0   :  { %2792 = vmatprep.subr.bf16.mxu0 %v4868_v45  ;;  %v4881_v45 = vld [vmem:[#allocation43_spill] sm:$0xff] }
 0x3d3   :  { %2794 = vmatpush1.bf16.msra.mxu0 %v4869_v22  ;;  %v4882_v22 = vld [vmem:[#allocation44_spill] sm:$0xff] }
 0x3d4   :  { %2796 = vmatprep.subr.bf16.mxu0 %v4870_v41  ;;  %v4883_v41 = vld [vmem:[#allocation45_spill] sm:$0xff] }
 0x3d7   :  { %2798 = vmatpush1.bf16.msra.mxu0 %v4871_v60  ;;  %v4884_v60 = vld [vmem:[#allocation46_spill] sm:$0xff] }
 0x3d8   :  { %2800 = vmatprep.subr.bf16.mxu0 %v4872_v0  ;;  %v4885_v0 = vld [vmem:[#allocation47_spill] sm:$0xff] }
 0x3db   :  { %2802 = vmatpush1.bf16.msra.mxu0 %v4873_v57  ;;  %v4886_v57 = vld [vmem:[#allocation48_spill] sm:$0xff] }
 0x3dc   :  { %2804 = vmatprep.subr.bf16.mxu0 %v4874_v11  ;;  %v4887_v11 = vld [vmem:[#allocation49_spill] sm:$0xff] }
 0x3df   :  { %2806 = vmatpush1.bf16.msra.mxu0 %v4875_v43  ;;  %v4888_v43 = vld [vmem:[#allocation50_spill] sm:$0xff] }
 0x3e0   :  { %2808 = vmatprep.subr.bf16.mxu0 %v4876_v34  ;;  %v4889_v34 = vld [vmem:[#allocation51_spill] sm:$0xff] }
 0x3e3   :  { %2810 = vmatpush1.bf16.msra.mxu0 %v4877_v54  ;;  %v4890_v54 = vld [vmem:[#allocation53_spill] sm:$0xff] }
 0x3e4   :  { %2812 = vmatprep.subr.bf16.mxu0 %v4878_v17 }
 0x3e7   :  { %2814 = vmatpush1.bf16.msra.mxu0 %v4879_v39 }
 0x3e8   :  { %2816 = vmatprep.subr.bf16.mxu0 %v4880_v14 }
 0x3eb   :  { %2818 = vmatpush1.bf16.msra.mxu0 %v4881_v45 }
 0x3ec   :  { %2820 = vmatprep.subr.bf16.mxu0 %v4882_v22 }
 0x3ef   :  { %2822 = vmatpush1.bf16.msra.mxu0 %v4883_v41 }
 0x3f0   :  { %2824 = vmatprep.subr.bf16.mxu0 %v4884_v60 }
 0x3f3   :  { %2826 = vmatpush1.bf16.msra.mxu0 %v4885_v0 }
 0x3f4   :  { %2828 = vmatprep.subr.bf16.mxu0 %v4886_v57  ;;  %v4891_v57 = vld [vmem:[#allocation138_spill] sm:$0xff] }
 0x3f7   :  { %2830 = vmatpush1.bf16.msra.mxu0 %v4887_v11 }
 0x3f8   :  { %2832 = vmatprep.subr.bf16.mxu0 %v4888_v43 }
 0x3fb   :  { %2834 = vmatpush1.bf16.msra.mxu0 %v4889_v34 }
 0x3fc   :  { %2900 = vmatprep.subr.bf16.mxu0 %v4890_v54 }
 0x451   :  { %v1224_v17 = vpop.f32.mrb[16].mxu0  ;;  %v4235_v39 = vpop.f32.mrb[16].mxu1 }
 0x452   :  { %v1226_v14 = vpop.f32.mrb[17].mxu0  ;;  %v4237_v45 = vpop.f32.mrb[17].mxu1  ;;  %v1312_v11 = vadd.f32 %v1224_v17, %v4891_v57 }
 0x453   :  { %v1313_v43 = vadd.f32 %v1226_v14, %v4892_v37 }
 0x455   :  { %v1230_v22 = vpop.f32.mrb[18].mxu0  ;;  %v4239_v41 = vpop.f32.mrb[18].mxu1 }
 0x456   :  { %v1232_v60 = vpop.f32.mrb[19].mxu0  ;;  %v4241_v0 = vpop.f32.mrb[19].mxu1  ;;  %v1314_v40 = vadd.f32 %v1230_v22, %v4891_v57 }
 0x457   :  { %v1315_v33 = vadd.f32 %v1232_v60, %v4892_v37 }
 0x491   :  { %v1382_v50 = vpop.f32.mrb[20].mxu0 }
 0x492   :  { %v1383_v34 = vadd.f32 %v1382_v50, %v1312_v11  ;;  %v1384_v62 = vpop.f32.mrb[21].mxu0 }
 0x493   :  { %v1385_v54 = vadd.f32 %v1384_v62, %v1313_v43  ;;  %v4893_v62 = vld [vmem:[#allocation58_spill] sm:$0xff] }
 0x494   :  { %v1405_v23 = vmax.f32 %v1383_v34, 0.0  ;;  %v4905_v34 = vld [vmem:[#allocation90_spill] sm:$0xff] }
 0x495   :  { %v1406_v49 = vmax.f32 %v1385_v54, 0.0  ;;  %v1388_v2 = vpop.f32.mrb[22].mxu0 }
 0x496   :  { %v1389_v18 = vadd.f32 %v1388_v2, %v1314_v40  ;;  %v1390_v10 = vpop.f32.mrb[23].mxu0 }
 0x497   :  { %v1391_v42 = vadd.f32 %v1390_v10, %v1315_v33  ;;  %1477 = vmatprep.mubr.f32.mxu1 %v1406_v49 }
 0x498   :  { %1478 = vmatmul.mubr.f32.vlgmr.msra.gmra.mrb[20].mxu1 %v1405_v23  ;;  %v1407_v14 = vmax.f32 %v1389_v18, 0.0  ;;  %v4900_v18 = vld [vmem:[#allocation80_spill] sm:$0xff] }
 0x499   :  { %v1408_v59 = vmax.f32 %v1391_v42, 0.0  ;;  %v1394_v17 = vpop.f32.mrb[24].mxu0  ;;  %2838 = vmatpush1.bf16.msra.mxu1 %v4793_v15 }
 0x49a   :  { %v1395_v50 = vadd.f32 %v1394_v17, %v1312_v11  ;;  %v1396_v55 = vpop.f32.mrb[25].mxu0  ;;  %2840 = vmatprep.subr.bf16.mxu1 %v4893_v62  ;;  %v4902_v11 = vld [vmem:[#allocation84_spill] sm:$0xff]  ;;  %v4909_v62 = vld [vmem:[#allocation98_spill] sm:$0xff] }
 0x49b   :  { %v1397_v22 = vadd.f32 %v1396_v55, %v1313_v43  ;;  %1483 = vmatprep.mubr.f32.mxu1 %v1408_v59  ;;  %v4894_v59 = vld [vmem:[#allocation68_spill] sm:$0xff]  ;;  %v4895_v55 = vld [vmem:[#allocation70_spill] sm:$0xff] }
 0x49c   :  { %1484 = vmatmul.mubr.f32.gmra.mrb[22].mxu1 %v1407_v14  ;;  %v1409_v2 = vmax.f32 %v1395_v50, 0.0  ;;  %v4904_v43 = vld [vmem:[#allocation88_spill] sm:$0xff]  ;;  %v4907_v14 = vld [vmem:[#allocation94_spill] sm:$0xff] }
 0x49d   :  { %v1410_v60 = vmax.f32 %v1397_v22, 0.0  ;;  %v1400_v54 = vpop.f32.mrb[26].mxu0  ;;  %2842 = vmatpush1.bf16.msra.mxu1 %v4795_v30  ;;  %v4896_v30 = vld [vmem:[#allocation72_spill] sm:$0xff] }
 0x49e   :  { %v1401_v10 = vadd.f32 %v1400_v54, %v1314_v40  ;;  %v1402_v49 = vpop.f32.mrb[27].mxu0  ;;  %2844 = vmatprep.subr.bf16.mxu1 %v4796_v27  ;;  %v4897_v40 = vld [vmem:[#allocation74_spill] sm:$0xff]  ;;  %v4898_v27 = vld [vmem:[#allocation76_spill] sm:$0xff] }
 0x49f   :  { %v1403_v23 = vadd.f32 %v1402_v49, %v1315_v33  ;;  %1489 = vmatprep.mubr.f32.mxu1 %v1410_v60  ;;  %v4899_v33 = vld [vmem:[#allocation78_spill] sm:$0xff]  ;;  %v4906_v17 = vld [vmem:[#allocation92_spill] sm:$0xff] }
 0x4a0   :  { %1490 = vmatmul.mubr.f32.gmra.mrb[24].mxu1 %v1409_v2  ;;  %v1411_v42 = vmax.f32 %v1401_v10, 0.0  ;;  %v4908_v50 = vld [vmem:[#allocation96_spill] sm:$0xff]  ;;  %v4911_v60 = vld [vmem:[#allocation102_spill] sm:$0xff] }
 0x4a1   :  { %v1412_v15 = vmax.f32 %v1403_v23, 0.0  ;;  %2846 = vmatpush1.bf16.msra.mxu1 %v4797_v63  ;;  %v4901_v63 = vld [vmem:[#allocation82_spill] sm:$0xff]  ;;  %v4910_v22 = vld [vmem:[#allocation100_spill] sm:$0xff] }
 0x4a2   :  { %2848 = vmatprep.subr.bf16.mxu1 %v4798_v7  ;;  %v4903_v7 = vld [vmem:[#allocation86_spill] sm:$0xff]  ;;  %v4912_v54 = vld [vmem:[#allocation104_spill] sm:$0xff] }
 0x4a3   :  { %1495 = vmatprep.mubr.f32.mxu1 %v1412_v15  ;;  %v4913_v2 = vld [vmem:[#allocation106_spill] sm:$0xff]  ;;  %v4914_v10 = vld [vmem:[#allocation108_spill] sm:$0xff] }
 0x4a4   :  { %1496 = vmatmul.mubr.f32.gmra.mrb[26].mxu1 %v1411_v42  ;;  %v4915_v49 = vld [vmem:[#allocation110_spill] sm:$0xff]  ;;  %v4916_v23 = vld [vmem:[#allocation112_spill] sm:$0xff] }
 0x4a5   :  { %2850 = vmatpush1.bf16.msra.mxu1 %v4894_v59  ;;  %v4917_v15 = vld [vmem:[#allocation114_spill] sm:$0xff]  ;;  %v4918_v42 = vld [vmem:[#allocation116_spill] sm:$0xff] }
 0x4a6   :  { %2852 = vmatprep.subr.bf16.mxu1 %v4895_v55  ;;  %v4919_v59 = vld [vmem:[#allocation118_spill] sm:$0xff] }
 0x4a9   :  { %2854 = vmatpush1.bf16.msra.mxu1 %v4896_v30 }
 0x4aa   :  { %2856 = vmatprep.subr.bf16.mxu1 %v4897_v40 }
 0x4ad   :  { %2858 = vmatpush1.bf16.msra.mxu1 %v4898_v27 }
 0x4ae   :  { %2860 = vmatprep.subr.bf16.mxu1 %v4899_v33 }
 0x4b1   :  { %2862 = vmatpush1.bf16.msra.mxu1 %v4900_v18 }
 0x4b2   :  { %2864 = vmatprep.subr.bf16.mxu1 %v4901_v63 }
 0x4b5   :  { %2866 = vmatpush1.bf16.msra.mxu1 %v4902_v11 }
 0x4b6   :  { %2868 = vmatprep.subr.bf16.mxu1 %v4903_v7 }
 0x4b9   :  { %2870 = vmatpush1.bf16.msra.mxu1 %v4904_v43 }
 0x4ba   :  { %2872 = vmatprep.subr.bf16.mxu1 %v4905_v34 }
 0x4bd   :  { %2874 = vmatpush1.bf16.msra.mxu1 %v4906_v17 }
 0x4be   :  { %2876 = vmatprep.subr.bf16.mxu1 %v4907_v14 }
 0x4c1   :  { %2878 = vmatpush1.bf16.msra.mxu1 %v4908_v50 }
 0x4c2   :  { %2880 = vmatprep.subr.bf16.mxu1 %v4909_v62 }
 0x4c5   :  { %2882 = vmatpush1.bf16.msra.mxu1 %v4910_v22  ;;  %v4920_v22 = vld [vmem:[#allocation60_spill] sm:$0xff] }
 0x4c6   :  { %2884 = vmatprep.subr.bf16.mxu1 %v4911_v60  ;;  %v1522_v60 = vadd.f32 %v4235_v39, %v4920_v22 }
 0x4c9   :  { %2886 = vmatpush1.bf16.msra.mxu1 %v4912_v54 }
 0x4ca   :  { %2888 = vmatprep.subr.bf16.mxu1 %v4913_v2 }
 0x4cd   :  { %2890 = vmatpush1.bf16.msra.mxu1 %v4914_v10 }
 0x4ce   :  { %2892 = vmatprep.subr.bf16.mxu1 %v4915_v49 }
 0x4d1   :  { %2894 = vmatpush1.bf16.msra.mxu1 %v4916_v23 }
 0x4d2   :  { %2896 = vmatprep.subr.bf16.mxu1 %v4917_v15 }
 0x4d5   :  { %2898 = vmatpush1.bf16.msra.mxu1 %v4918_v42 }
 0x4d6   :  { %2964 = vmatprep.subr.bf16.mxu1 %v4919_v59 }
 0x56b   :  { %v1479_v55 = vpop.f32.mrb[20].mxu1 }
 0x56c   :  { %v1481_v30 = vpop.f32.mrb[21].mxu1  ;;  %v1480_v40 = vadd.f32 %v1479_v55, %v4036_v36 }
 0x56d   :  { %v1482_v33 = vadd.f32 %v1481_v30, %v4039_v61 }
 0x56e   :  { %v1502_v63 = vmax.f32 %v1480_v40, 0.0 }
 0x56f   :  { %v1485_v27 = vpop.f32.mrb[22].mxu1  ;;  %v1503_v7 = vmax.f32 %v1482_v33, 0.0  ;;  %v1523_v33 = vadd.f32 %v4237_v45, %v4065_v5 }
 0x570   :  { %v1487_v18 = vpop.f32.mrb[23].mxu1  ;;  %v1486_v43 = vadd.f32 %v1485_v27, %v4036_v36  ;;  %v1510_v2 = vsel %vm1114_vm6, %v1502_v63, 0.0 }
 0x571   :  { %v1488_v14 = vadd.f32 %v1487_v18, %v4039_v61  ;;  %v1511_v23 = vsel %vm1114_vm6, %v1503_v7, 0.0 }
 0x572   :  { %v1504_v15 = vmax.f32 %v1486_v43, 0.0 }
 0x573   :  { %v1491_v11 = vpop.f32.mrb[24].mxu1  ;;  %v1505_v30 = vmax.f32 %v1488_v14, 0.0  ;;  %v1524_v14 = vadd.f32 %v4239_v41, %v4085_v26 }
 0x574   :  { %v1492_v34 = vadd.f32 %v1491_v11, %v4036_v36  ;;  %v1493_v17 = vpop.f32.mrb[25].mxu1  ;;  %v1512_v43 = vsel %vm1115_vm7, %v1504_v15, 0.0 }
 0x575   :  { %v1494_v50 = vadd.f32 %v1493_v17, %v4039_v61 }
 0x576   :  { %v1506_v62 = vmax.f32 %v1492_v34, 0.0 }
 0x577   :  { %v1507_v10 = vmax.f32 %v1494_v50, 0.0  ;;  %v1497_v49 = vpop.f32.mrb[26].mxu1  ;;  %v1513_v50 = vsel %vm1115_vm7, %v1505_v30, 0.0 }
 0x578   :  { %v1514_v42 = vsel %vm1116_vm8, %v1506_v62, 0.0  ;;  %v1498_v59 = vadd.f32 %v1497_v49, %v4036_v36  ;;  %v1499_v55 = vpop.f32.mrb[27].mxu1 }
 0x579   :  { %v1518_v40 = vadd.f32 %v1514_v42, %v1510_v2  ;;  %v1515_v39 = vsel %vm1116_vm8, %v1507_v10, 0.0  ;;  %v1500_v27 = vadd.f32 %v1499_v55, %v4039_v61 }
 0x57a   :  { %v1519_v18 = vadd.f32 %v1515_v39, %v1511_v23  ;;  %v1508_v63 = vmax.f32 %v1498_v59, 0.0 }
 0x57b   :  { %v1526_v11 = vadd.f32 %v1522_v60, %v1518_v40  ;;  %v1509_v7 = vmax.f32 %v1500_v27, 0.0  ;;  %v1525_v60 = vadd.f32 %v4241_v0, %v4088_v1 }
 0x57c   :  { %v1527_v34 = vadd.f32 %v1523_v33, %v1519_v18  ;;  %v1516_v17 = vsel %vm1117_vm9, %v1508_v63, 0.0 }
 0x57d   :  { %v1520_v62 = vadd.f32 %v1516_v17, %v1512_v43  ;;  %v1517_v45 = vsel %vm1117_vm9, %v1509_v7, 0.0  ;;  %v1530_v49 = vmax.f32 %v1526_v11, 0.0  ;;  %v4942_v7 = vld [vmem:[#allocation101_spill] sm:$0xff]  ;;  %v4943_v43 = vld [vmem:[#allocation103_spill] sm:$0xff]  ;;  %v4945_v17 = vld [vmem:[#allocation130_spill] sm:$0xff] }
 0x57e   :  { %v1531_v2 = vmax.f32 %v1527_v34, 0.0  ;;  %v1521_v10 = vadd.f32 %v1517_v45, %v1513_v50  ;;  %v4944_v34 = vld [vmem:[#allocation129_spill] sm:$0xff]  ;;  %v4947_v50 = vld [vmem:[#allocation107_spill] sm:$0xff]  ;;  %v4949_v45 = vld [vmem:[#allocation132_spill] sm:$0xff] }
 0x57f   :  { %v1528_v23 = vadd.f32 %v1524_v14, %v1520_v62  ;;  %v1534_v59 = vrot.slane %v1530_v49, 7  ;;  %v1542_v0 = vrot.slane %v1530_v49, 1  ;;  %v4946_v14 = vld [vmem:[#allocation105_spill] sm:$0xff]  ;;  %v4948_v62 = vld [vmem:[#allocation131_spill] sm:$0xff] }
 0x580   :  { %v1529_v15 = vadd.f32 %v1525_v60, %v1521_v10  ;;  %1614 = vmatprep.mubr.f32.mxu0 %v1531_v2  ;;  %1691 = vmatprep.mubr.f32.mxu1 %v1531_v2  ;;  %v1535_v40 = vrot.slane %v1531_v2, 7  ;;  %v1543_v27 = vrot.slane %v1531_v2, 1  ;;  %v4950_v60 = vld [vmem:[#allocation109_spill] sm:$0xff]  ;;  %v4951_v2 = vld [vmem:[#allocation111_spill] sm:$0xff] }
 0x581   :  { %v1532_v42 = vmax.f32 %v1528_v23, 0.0  ;;  %1615 = vmatmul.mubr.f32.vlgmr.msra.gmra.mrb[28].mxu0 %v1530_v49  ;;  %1692 = vmatmul.mubr.f32.vlgmr.msra.gmra.mrb[28].mxu1 %v1530_v49  ;;  %v4952_v10 = vld [vmem:[#allocation133_spill] sm:$0xff]  ;;  %v4953_v49 = vld [vmem:[#allocation134_spill] sm:$0xff] }
 0x582   :  { %v1533_v41 = vmax.f32 %v1529_v15, 0.0  ;;  %2902 = vmatpush1.bf16.msra.mxu0 %v4820_v4  ;;  %2966 = vmatpush1.bf16.msra.mxu1 %v3853_v48  ;;  %v4954_v23 = vld [vmem:[#allocation113_spill] sm:$0xff]  ;;  %v4955_v15 = vld [vmem:[#allocation115_spill] sm:$0xff] }
 0x583   :  { %2904 = vmatprep.subr.bf16.mxu0 %v4821_v38  ;;  %v1536_v55 = vrot.slane %v1532_v42, 7  ;;  %v1544_v30 = vrot.slane %v1532_v42, 1  ;;  %2968 = vmatprep.subr.bf16.mxu1 %v3855_v52 }
 0x584   :  { %1620 = vmatprep.mubr.f32.mxu0 %v1533_v41  ;;  %1697 = vmatprep.mubr.f32.mxu1 %v1533_v41  ;;  %v1537_v39 = vrot.slane %v1533_v41, 7  ;;  %v1545_v33 = vrot.slane %v1533_v41, 1  ;;  %v4957_v41 = vld [vmem:[#allocation136_spill] sm:$0xff] }
 0x585   :  { %1621 = vmatmul.mubr.f32.gmra.mrb[30].mxu0 %v1532_v42  ;;  %1698 = vmatmul.mubr.f32.gmra.mrb[30].mxu1 %v1532_v42  ;;  %v4317_v4 = vsel %vm710_vm0, %v1536_v55, %v1534_v59  ;;  %v4321_v48 = vsel %vm710_vm0, %v1534_v59, %v1536_v55  ;;  %v4325_v38 = vsel %vm719_vm1, %v1542_v0, %v1544_v30  ;;  %v4956_v42 = vld [vmem:[#allocation135_spill] sm:$0xff]  ;;  %v4958_v59 = vld [vmem:[#allocation117_spill] sm:$0xff] }
 0x586   :  { %2906 = vmatpush1.bf16.msra.mxu0 %v4822_v16  ;;  %v1541_v52 = vsel %vm710_vm0, %v1537_v39, %v1535_v40  ;;  %v1539_v18 = vsel %vm710_vm0, %v1535_v40, %v1537_v39  ;;  %v4334_v63 = vsel %vm719_vm1, %v1543_v27, %v1545_v33  ;;  %v4338_v11 = vsel %vm719_vm1, %v1545_v33, %v1543_v27  ;;  %v4959_v55 = vld [vmem:[#allocation137_spill] sm:$0xff]  ;;  %v1955_v40 = vld [vmem:[#allocation13] sm:$0xff] }
 0x587   :  { %1772 = vmatprep.mubr.f32.mxu0 %v1541_v52  ;;  %2908 = vmatprep.subr.bf16.mxu0 %v4823_v31  ;;  %v1548_v16 = vsel %vm719_vm1, %v1544_v30, %v1542_v0  ;;  %v4933_v31 = vld [vmem:[#allocation124_spill] sm:$0xff]  ;;  %v1958_v30 = vld [vmem:[#allocation13 + $0x18] sm:$0xff]  ;;  %v1957_v27 = vld [vmem:[#allocation13 + $0x10] sm:$0xff] }
 0x588   :  { %2970 = vmatpush1.bf16.msra.mxu1 %v3860_v19  ;;  %v4923_v19 = vld [vmem:[#allocation83_spill] sm:$0xff]  ;;  %v1956_v0 = vld [vmem:[#allocation13 + $0x8] sm:$0xff] }
 0x589   :  { %2972 = vmatprep.subr.bf16.mxu1 %v3863_v21  ;;  %v4924_v21 = vld [vmem:[#allocation119_spill] sm:$0xff]  ;;  %v3027_v39 = vpack.c.bf16 %v1958_v30, %v1956_v0  ;;  %v1960_v33 = vld [vmem:[#allocation13 + $0x28] sm:$0xff] }
 0x58a   :  { %2910 = vmatpush1.bf16.msra.mxu0 %v4824_v13  ;;  %v4934_v13 = vld [vmem:[#allocation93_spill] sm:$0xff]  ;;  %v1962_v52 = vld [vmem:[#allocation13 + $0x38] sm:$0xff] }
 0x58b   :  { %2912 = vmatprep.subr.bf16.mxu0 %v4825_v24  ;;  %v4935_v24 = vld [vmem:[#allocation95_spill] sm:$0xff] }
 0x58c   :  { %2974 = vmatpush1.bf16.msra.mxu1 %v3868_v47  ;;  %v4925_v47 = vld [vmem:[#allocation120_spill] sm:$0xff] }
 0x58d   :  { %2976 = vmatprep.subr.bf16.mxu1 %v3871_v8  ;;  %v4926_v8 = vld [vmem:[#allocation85_spill] sm:$0xff] }
 0x58e   :  { %2914 = vmatpush1.bf16.msra.mxu0 %v4826_v44  ;;  %v4936_v44 = vld [vmem:[#allocation125_spill] sm:$0xff] }
 0x58f   :  { %2916 = vmatprep.subr.bf16.mxu0 %v4827_v53  ;;  %v4937_v53 = vld [vmem:[#allocation126_spill] sm:$0xff] }
 0x590   :  { %2978 = vmatpush1.bf16.msra.mxu1 %v3876_v3  ;;  %v4928_v3 = vld [vmem:[#allocation121_spill] sm:$0xff] }
 0x591   :  { %2980 = vmatprep.subr.bf16.mxu1 %v3879_v51  ;;  %v4929_v51 = vld [vmem:[#allocation122_spill] sm:$0xff] }
 0x592   :  { %2918 = vmatpush1.bf16.msra.mxu0 %v4828_v56  ;;  %v4938_v56 = vld [vmem:[#allocation97_spill] sm:$0xff] }
 0x593   :  { %2920 = vmatprep.subr.bf16.mxu0 %v4829_v32  ;;  %v4939_v32 = vld [vmem:[#allocation99_spill] sm:$0xff] }
 0x594   :  { %2982 = vmatpush1.bf16.msra.mxu1 %v3884_v58  ;;  %v4927_v58 = vld [vmem:[#allocation87_spill] sm:$0xff] }
 0x595   :  { %2984 = vmatprep.subr.bf16.mxu1 %v3887_v25  ;;  %v4930_v25 = vld [vmem:[#allocation89_spill] sm:$0xff] }
 0x596   :  { %2922 = vmatpush1.bf16.msra.mxu0 %v4830_v35  ;;  %v4940_v35 = vld [vmem:[#allocation127_spill] sm:$0xff] }
 0x597   :  { %2924 = vmatprep.subr.bf16.mxu0 %v4831_v12  ;;  %v4941_v12 = vld [vmem:[#allocation128_spill] sm:$0xff] }
 0x598   :  { %2986 = vmatpush1.bf16.msra.mxu1 %v3892_v9  ;;  %v4931_v9 = vld [vmem:[#allocation91_spill] sm:$0xff] }
 0x599   :  { %2988 = vmatprep.subr.bf16.mxu1 %v3895_v46  ;;  %v4932_v46 = vld [vmem:[#allocation123_spill] sm:$0xff] }
 0x59a   :  { %2926 = vmatpush1.bf16.msra.mxu0 %v4922_v28  ;;  %v3029_v28 = vpack.c.bf16 %v1957_v27, %v1955_v40 }
 0x59b   :  { %2928 = vmatprep.subr.bf16.mxu0 %v4923_v19  ;;  %v3031_v19 = vpack.c.bf16 %v1962_v52, %v1960_v33 }
 0x59c   :  { %2990 = vmatpush1.bf16.msra.mxu1 %v4924_v21  ;;  %v1964_v21 = vld [vmem:[#allocation13 + $0x48] sm:$0xff] }
 0x59d   :  { %2992 = vmatprep.subr.bf16.mxu1 %v4925_v47  ;;  %v1968_v47 = vld [vmem:[#allocation13 + $0x68] sm:$0xff] }
 0x59e   :  { %2930 = vmatpush1.bf16.msra.mxu0 %v4926_v8  ;;  %v1970_v8 = vld [vmem:[#allocation13 + $0x78] sm:$0xff] }
 0x59f   :  { %2932 = vmatprep.subr.bf16.mxu0 %v4927_v58 }
 0x5a0   :  { %2994 = vmatpush1.bf16.msra.mxu1 %v4928_v3  ;;  %v3039_v3 = vpack.c.bf16 %v1970_v8, %v1968_v47  ;;  %v1980_v8 = vld [vmem:[#allocation13 + $0xc8] sm:$0xff] }
 0x5a1   :  { %2996 = vmatprep.subr.bf16.mxu1 %v4929_v51  ;;  %v1967_v51 = vld [vmem:[#allocation13 + $0x60] sm:$0xff] }
 0x5a2   :  { %2934 = vmatpush1.bf16.msra.mxu0 %v4930_v25  ;;  %v1969_v25 = vld [vmem:[#allocation13 + $0x70] sm:$0xff] }
 0x5a3   :  { %2936 = vmatprep.subr.bf16.mxu0 %v4931_v9  ;;  %v1972_v9 = vld [vmem:[#allocation13 + $0x88] sm:$0xff] }
 0x5a4   :  { %2998 = vmatpush1.bf16.msra.mxu1 %v4932_v46  ;;  %v1974_v46 = vld [vmem:[#allocation13 + $0x98] sm:$0xff] }
 0x5a5   :  { %3000 = vmatprep.subr.bf16.mxu1 %v4933_v31  ;;  %v3041_v31 = vpack.c.bf16 %v1969_v25, %v1967_v51  ;;  %v1979_v51 = vld [vmem:[#allocation13 + $0xc0] sm:$0xff]  ;;  %v1981_v25 = vld [vmem:[#allocation13 + $0xd0] sm:$0xff] }
 0x5a6   :  { %2938 = vmatpush1.bf16.msra.mxu0 %v4934_v13  ;;  %v3043_v13 = vpack.c.bf16 %v1974_v46, %v1972_v9  ;;  %v3053_v9 = vpack.c.bf16 %v1981_v25, %v1979_v51  ;;  %v1984_v46 = vld [vmem:[#allocation13 + $0xe8] sm:$0xff] }
 0x5a7   :  { %2940 = vmatprep.subr.bf16.mxu0 %v4935_v24  ;;  %v1971_v24 = vld [vmem:[#allocation13 + $0x80] sm:$0xff]  ;;  %v2016_v51 = vld [vmem:[#allocation13 + $0x1e8] sm:$0xff] }
 0x5a8   :  { %3002 = vmatpush1.bf16.msra.mxu1 %v4936_v44  ;;  %v1973_v44 = vld [vmem:[#allocation13 + $0x90] sm:$0xff] }
 0x5a9   :  { %3004 = vmatprep.subr.bf16.mxu1 %v4937_v53  ;;  %v1976_v53 = vld [vmem:[#allocation13 + $0xa8] sm:$0xff] }
 0x5aa   :  { %2942 = vmatpush1.bf16.msra.mxu0 %v4938_v56  ;;  %v1978_v56 = vld [vmem:[#allocation13 + $0xb8] sm:$0xff] }
 0x5ab   :  { %2944 = vmatprep.subr.bf16.mxu0 %v4939_v32  ;;  %v3045_v32 = vpack.c.bf16 %v1973_v44, %v1971_v24  ;;  %v1983_v24 = vld [vmem:[#allocation13 + $0xe0] sm:$0xff]  ;;  %v1985_v44 = vld [vmem:[#allocation13 + $0xf0] sm:$0xff] }
 0x5ac   :  { %3006 = vmatpush1.bf16.msra.mxu1 %v4940_v35  ;;  %v3047_v35 = vpack.c.bf16 %v1978_v56, %v1976_v53  ;;  %v3057_v53 = vpack.c.bf16 %v1985_v44, %v1983_v24  ;;  %v1988_v56 = vld [vmem:[#allocation13 + $0x108] sm:$0xff] }
 0x5ad   :  { %3008 = vmatprep.subr.bf16.mxu1 %v4941_v12  ;;  %v1975_v12 = vld [vmem:[#allocation13 + $0xa0] sm:$0xff] }
 0x5ae   :  { %2946 = vmatpush1.bf16.msra.mxu0 %v4942_v7  ;;  %v1977_v7 = vld [vmem:[#allocation13 + $0xb0] sm:$0xff] }
 0x5af   :  { %2948 = vmatprep.subr.bf16.mxu0 %v4943_v43  ;;  %v3049_v43 = vpack.c.bf16 %v1977_v7, %v1975_v12  ;;  %v1987_v12 = vld [vmem:[#allocation13 + $0x100] sm:$0xff]  ;;  %v1989_v7 = vld [vmem:[#allocation13 + $0x110] sm:$0xff] }
 0x5b0   :  { %3010 = vmatpush1.bf16.msra.mxu1 %v4944_v34 }
 0x5b1   :  { %3012 = vmatprep.subr.bf16.mxu1 %v4945_v17 }
 0x5b2   :  { %2950 = vmatpush1.bf16.msra.mxu0 %v4946_v14 }
 0x5b3   :  { %2952 = vmatprep.subr.bf16.mxu0 %v4947_v50 }
 0x5b4   :  { %3014 = vmatpush1.bf16.msra.mxu1 %v4948_v62 }
 0x5b5   :  { %3016 = vmatprep.subr.bf16.mxu1 %v4949_v45 }
 0x5b6   :  { %2954 = vmatpush1.bf16.msra.mxu0 %v4950_v60 }
 0x5b7   :  { %2956 = vmatprep.subr.bf16.mxu0 %v4951_v2 }
 0x5b8   :  { %3018 = vmatpush1.bf16.msra.mxu1 %v4952_v10 }
 0x5b9   :  { %3020 = vmatprep.subr.bf16.mxu1 %v4953_v49 }
 0x5ba   :  { %2958 = vmatpush1.bf16.msra.mxu0 %v4954_v23 }
 0x5bb   :  { %2960 = vmatprep.subr.bf16.mxu0 %v4955_v15 }
 0x5bc   :  { %3022 = vmatpush1.bf16.msra.mxu1 %v4956_v42 }
 0x5bd   :  { %3024 = vmatprep.subr.bf16.mxu1 %v4957_v41 }
 0x5be   :  { %2962 = vmatpush1.bf16.msra.mxu0 %v4958_v59 }
 0x5bf   :  { %3028 = vmatprep.subr.bf16.mxu0 %v3027_v39 }
 0x5c0   :  { %3026 = vmatpush1.bf16.msra.mxu1 %v4959_v55 }
 0x5c1   :  { %1773 = vmatmul.mubr.f32.vlgmr.msra.gmra.mrb[32].mxu0 %v4317_v4  ;;  %v1959_v4 = vld [vmem:[#allocation13 + $0x20] sm:$0xff] }
 0x5c2   :  { %1778 = vmatprep.mubr.f32.mxu0 %v1539_v18  ;;  %v1961_v18 = vld [vmem:[#allocation13 + $0x30] sm:$0xff]  ;;  %3030 = vmatpush1.bf16.msra.mxu0 %v3029_v28 }
 0x5c3   :  { %3032 = vmatprep.subr.bf16.mxu0 %v3031_v19 }
 0x5c5   :  { %1779 = vmatmul.mubr.f32.gmra.mrb[34].mxu0 %v4321_v48  ;;  %v1966_v48 = vld [vmem:[#allocation13 + $0x58] sm:$0xff] }
 0x5c6   :  { %1784 = vmatprep.mubr.f32.mxu0 %v4334_v63  ;;  %v3033_v63 = vpack.c.bf16 %v1961_v18, %v1959_v4 }
 0x5c8   :  { %3034 = vmatpush1.bf16.msra.mxu0 %v3033_v63 }
 0x5c9   :  { %1785 = vmatmul.mubr.f32.gmra.mrb[36].mxu0 %v4325_v38  ;;  %v3035_v38 = vpack.c.bf16 %v1966_v48, %v1964_v21 }
 0x5ca   :  { %1790 = vmatprep.mubr.f32.mxu0 %v4338_v11  ;;  %v1963_v11 = vld [vmem:[#allocation13 + $0x40] sm:$0xff] }
 0x5cb   :  { %3036 = vmatprep.subr.bf16.mxu0 %v3035_v38 }
 0x5cd   :  { %1791 = vmatmul.mubr.f32.gmra.mrb[38].mxu0 %v1548_v16  ;;  %v1965_v16 = vld [vmem:[#allocation13 + $0x50] sm:$0xff] }
 0x5ce   :  { %v3037_v58 = vpack.c.bf16 %v1965_v16, %v1963_v11 }
 0x5d0   :  { %3038 = vmatpush1.bf16.msra.mxu0 %v3037_v58  ;;  %v1982_v58 = vld [vmem:[#allocation13 + $0xd8] sm:$0xff] }
 0x5d1   :  { %3040 = vmatprep.subr.bf16.mxu0 %v3039_v3  ;;  %v3051_v3 = vpack.c.bf16 %v1982_v58, %v1980_v8  ;;  %v2011_v58 = vld [vmem:[#allocation13 + $0x1c0] sm:$0xff] }
 0x5d4   :  { %3042 = vmatpush1.bf16.msra.mxu0 %v3041_v31  ;;  %v1986_v31 = vld [vmem:[#allocation13 + $0xf8] sm:$0xff] }
 0x5d5   :  { %3044 = vmatprep.subr.bf16.mxu0 %v3043_v13  ;;  %v3055_v13 = vpack.c.bf16 %v1986_v31, %v1984_v46  ;;  %v2015_v46 = vld [vmem:[#allocation13 + $0x1e0] sm:$0xff]  ;;  %v2017_v31 = vld [vmem:[#allocation13 + $0x1f0] sm:$0xff] }
 0x5d6   :  { %v3089_v24 = vpack.c.bf16 %v2017_v31, %v2015_v46 }
 0x5d8   :  { %3046 = vmatpush1.bf16.msra.mxu0 %v3045_v32  ;;  %v1990_v32 = vld [vmem:[#allocation13 + $0x118] sm:$0xff] }
 0x5d9   :  { %3048 = vmatprep.subr.bf16.mxu0 %v3047_v35  ;;  %v3059_v35 = vpack.c.bf16 %v1990_v32, %v1988_v56 }
 0x5dc   :  { %3050 = vmatpush1.bf16.msra.mxu0 %v3049_v43  ;;  %v3061_v43 = vpack.c.bf16 %v1989_v7, %v1987_v12 }
 0x5dd   :  { %3052 = vmatprep.subr.bf16.mxu0 %v3051_v3  ;;  %v2013_v3 = vld [vmem:[#allocation13 + $0x1d0] sm:$0xff] }
 0x5de   :  { %v3085_v25 = vpack.c.bf16 %v2013_v3, %v2011_v58 }
 0x5e0   :  { %3054 = vmatpush1.bf16.msra.mxu0 %v3053_v9  ;;  %v2018_v9 = vld [vmem:[#allocation13 + $0x1f8] sm:$0xff] }
 0x5e1   :  { %3056 = vmatprep.subr.bf16.mxu0 %v3055_v13  ;;  %v3087_v13 = vpack.c.bf16 %v2018_v9, %v2016_v51 }
 0x5e4   :  { %3058 = vmatpush1.bf16.msra.mxu0 %v3057_v53 }
 0x5e5   :  { %3060 = vmatprep.subr.bf16.mxu0 %v3059_v35 }
 0x5e8   :  { %3062 = vmatpush1.bf16.msra.mxu0 %v3061_v43 }
 0x654   :  { %v1616_v34 = vpop.f32.mrb[28].mxu0  ;;  %v4404_v17 = vpop.f32.mrb[28].mxu1 }
 0x655   :  { %v1618_v14 = vpop.f32.mrb[29].mxu0  ;;  %v4406_v50 = vpop.f32.mrb[29].mxu1  ;;  %v1704_v10 = vadd.f32 %v1616_v34, %v4891_v57  ;;  %v1992_v34 = vld [vmem:[#allocation13 + $0x128] sm:$0xff] }
 0x656   :  { %v1705_v49 = vadd.f32 %v1618_v14, %v4892_v37  ;;  %v1994_v14 = vld [vmem:[#allocation13 + $0x138] sm:$0xff] }
 0x658   :  { %v1622_v62 = vpop.f32.mrb[30].mxu0  ;;  %v4408_v45 = vpop.f32.mrb[30].mxu1 }
 0x659   :  { %v1624_v60 = vpop.f32.mrb[31].mxu0  ;;  %v4410_v2 = vpop.f32.mrb[31].mxu1  ;;  %v1706_v59 = vadd.f32 %v1622_v62, %v4891_v57  ;;  %v3063_v62 = vpack.c.bf16 %v1994_v14, %v1992_v34 }
 0x65a   :  { %v1707_v55 = vadd.f32 %v1624_v60, %v4892_v37  ;;  %v1991_v60 = vld [vmem:[#allocation13 + $0x120] sm:$0xff] }
 0x65b   :  { %3064 = vmatprep.subr.bf16.mxu0 %v3063_v62 }
 0x694   :  { %v1774_v23 = vpop.f32.mrb[32].mxu0 }
 0x695   :  { %v1775_v15 = vadd.f32 %v1774_v23, %v1704_v10  ;;  %v1776_v42 = vpop.f32.mrb[33].mxu0  ;;  %v1996_v23 = vld [vmem:[#allocation13 + $0x148] sm:$0xff] }
 0x696   :  { %v1777_v41 = vadd.f32 %v1776_v42, %v1705_v49 }
 0x697   :  { %v1797_v40 = vmax.f32 %v1775_v15, 0.0  ;;  %v1998_v15 = vld [vmem:[#allocation13 + $0x158] sm:$0xff] }
 0x698   :  { %v1798_v0 = vmax.f32 %v1777_v41, 0.0  ;;  %v1780_v30 = vpop.f32.mrb[34].mxu0  ;;  %v3067_v42 = vpack.c.bf16 %v1998_v15, %v1996_v23  ;;  %v1995_v41 = vld [vmem:[#allocation13 + $0x140] sm:$0xff]  ;;  %v1914_v15 = vadd.f32 %v4404_v17, %v4920_v22 }
 0x699   :  { %v1781_v39 = vadd.f32 %v1780_v30, %v1706_v59  ;;  %v1782_v27 = vpop.f32.mrb[35].mxu0  ;;  %v2002_v30 = vld [vmem:[#allocation13 + $0x178] sm:$0xff] }
 0x69a   :  { %v1783_v33 = vadd.f32 %v1782_v27, %v1707_v55  ;;  %1869 = vmatprep.mubr.f32.mxu1 %v1798_v0  ;;  %v2000_v0 = vld [vmem:[#allocation13 + $0x168] sm:$0xff]  ;;  %v2001_v27 = vld [vmem:[#allocation13 + $0x170] sm:$0xff] }
 0x69b   :  { %1870 = vmatmul.mubr.f32.vlgmr.msra.gmra.mrb[32].mxu1 %v1797_v40  ;;  %v1799_v19 = vmax.f32 %v1781_v39, 0.0  ;;  %v3071_v40 = vpack.c.bf16 %v2002_v30, %v2000_v0  ;;  %v1999_v39 = vld [vmem:[#allocation13 + $0x160] sm:$0xff] }
 0x69c   :  { %v1800_v52 = vmax.f32 %v1783_v33, 0.0  ;;  %v1786_v28 = vpop.f32.mrb[36].mxu0  ;;  %v3073_v33 = vpack.c.bf16 %v2001_v27, %v1999_v39 }
 0x69d   :  { %v1787_v4 = vadd.f32 %v1786_v28, %v1704_v10  ;;  %v1788_v18 = vpop.f32.mrb[37].mxu0  ;;  %v1993_v10 = vld [vmem:[#allocation13 + $0x130] sm:$0xff]  ;;  %v2006_v28 = vld [vmem:[#allocation13 + $0x198] sm:$0xff] }
 0x69e   :  { %v1789_v21 = vadd.f32 %v1788_v18, %v1705_v49  ;;  %1875 = vmatprep.mubr.f32.mxu1 %v1800_v52  ;;  %v3065_v49 = vpack.c.bf16 %v1993_v10, %v1991_v60  ;;  %v2004_v52 = vld [vmem:[#allocation13 + $0x188] sm:$0xff]  ;;  %v2005_v18 = vld [vmem:[#allocation13 + $0x190] sm:$0xff] }
 0x69f   :  { %1876 = vmatmul.mubr.f32.gmra.mrb[34].mxu1 %v1799_v19  ;;  %v1801_v63 = vmax.f32 %v1787_v4, 0.0  ;;  %v3075_v19 = vpack.c.bf16 %v2006_v28, %v2004_v52  ;;  %v2003_v4 = vld [vmem:[#allocation13 + $0x180] sm:$0xff]  ;;  %v1915_v52 = vadd.f32 %v4406_v50, %v4065_v5  ;;  %v1917_v50 = vadd.f32 %v4410_v2, %v4088_v1 }
 0x6a0   :  { %v1802_v48 = vmax.f32 %v1789_v21, 0.0  ;;  %v1792_v57 = vpop.f32.mrb[38].mxu0  ;;  %3066 = vmatpush1.bf16.msra.mxu0 %v3065_v49  ;;  %v3077_v21 = vpack.c.bf16 %v2005_v18, %v2003_v4  ;;  %v1916_v18 = vadd.f32 %v4408_v45, %v4085_v26 }
 0x6a1   :  { %v1793_v37 = vadd.f32 %v1792_v57, %v1706_v59  ;;  %v1794_v38 = vpop.f32.mrb[39].mxu0  ;;  %v1997_v59 = vld [vmem:[#allocation13 + $0x150] sm:$0xff]  ;;  %3068 = vmatprep.subr.bf16.mxu0 %v3067_v42  ;;  %v2010_v57 = vld [vmem:[#allocation13 + $0x1b8] sm:$0xff] }
 0x6a2   :  { %v1795_v11 = vadd.f32 %v1794_v38, %v1707_v55  ;;  %1881 = vmatprep.mubr.f32.mxu1 %v1802_v48  ;;  %v3069_v55 = vpack.c.bf16 %v1997_v59, %v1995_v41  ;;  %v2008_v48 = vld [vmem:[#allocation13 + $0x1a8] sm:$0xff]  ;;  %v2009_v38 = vld [vmem:[#allocation13 + $0x1b0] sm:$0xff] }
 0x6a3   :  { %1882 = vmatmul.mubr.f32.gmra.mrb[36].mxu1 %v1801_v63  ;;  %v1803_v47 = vmax.f32 %v1793_v37, 0.0  ;;  %v3079_v63 = vpack.c.bf16 %v2010_v57, %v2008_v48  ;;  %v2007_v37 = vld [vmem:[#allocation13 + $0x1a0] sm:$0xff] }
 0x6a4   :  { %v1804_v16 = vmax.f32 %v1795_v11, 0.0  ;;  %3070 = vmatpush1.bf16.msra.mxu0 %v3069_v55  ;;  %v3081_v11 = vpack.c.bf16 %v2009_v38, %v2007_v37 }
 0x6a5   :  { %3072 = vmatprep.subr.bf16.mxu0 %v3071_v40 }
 0x6a6   :  { %1887 = vmatprep.mubr.f32.mxu1 %v1804_v16  ;;  %v2012_v16 = vld [vmem:[#allocation13 + $0x1c8] sm:$0xff] }
 0x6a7   :  { %1888 = vmatmul.mubr.f32.gmra.mrb[38].mxu1 %v1803_v47  ;;  %v2014_v47 = vld [vmem:[#allocation13 + $0x1d8] sm:$0xff] }
 0x6a8   :  { %3074 = vmatpush1.bf16.msra.mxu0 %v3073_v33  ;;  %v3083_v8 = vpack.c.bf16 %v2014_v47, %v2012_v16 }
 0x6a9   :  { %3076 = vmatprep.subr.bf16.mxu0 %v3075_v19 }
 0x6ac   :  { %3078 = vmatpush1.bf16.msra.mxu0 %v3077_v21 }
 0x6ad   :  { %3080 = vmatprep.subr.bf16.mxu0 %v3079_v63 }
 0x6b0   :  { %3082 = vmatpush1.bf16.msra.mxu0 %v3081_v11 }
 0x6b1   :  { %3084 = vmatprep.subr.bf16.mxu0 %v3083_v8 }
 0x6b4   :  { %3086 = vmatpush1.bf16.msra.mxu0 %v3085_v25 }
 0x6b5   :  { %3088 = vmatprep.subr.bf16.mxu0 %v3087_v13 }
 0x6b8   :  { %3090 = vmatpush1.bf16.msra.mxu0 %v3089_v24 }
 0x76e   :  { %v1871_v44 = vpop.f32.mrb[32].mxu1 }
 0x76f   :  { %v1873_v53 = vpop.f32.mrb[33].mxu1  ;;  %v1872_v56 = vadd.f32 %v1871_v44, %v4036_v36 }
 0x770   :  { %v1874_v35 = vadd.f32 %v1873_v53, %v4039_v61 }
 0x771   :  { %v1894_v7 = vmax.f32 %v1872_v56, 0.0 }
 0x772   :  { %v1877_v32 = vpop.f32.mrb[34].mxu1  ;;  %v1895_v34 = vmax.f32 %v1874_v35, 0.0 }
 0x773   :  { %v1879_v12 = vpop.f32.mrb[35].mxu1  ;;  %v1878_v14 = vadd.f32 %v1877_v32, %v4036_v36  ;;  %v1902_v42 = vsel %vm1114_vm6, %v1894_v7, 0.0 }
 0x774   :  { %v1880_v10 = vadd.f32 %v1879_v12, %v4039_v61  ;;  %v1903_v55 = vsel %vm1114_vm6, %v1895_v34, 0.0 }
 0x775   :  { %v1896_v0 = vmax.f32 %v1878_v14, 0.0 }
 0x776   :  { %v1883_v43 = vpop.f32.mrb[36].mxu1  ;;  %v1897_v27 = vmax.f32 %v1880_v10, 0.0 }
 0x777   :  { %v1884_v62 = vadd.f32 %v1883_v43, %v4036_v36  ;;  %v1885_v60 = vpop.f32.mrb[37].mxu1 }
 0x778   :  { %v1886_v49 = vadd.f32 %v1885_v60, %v4039_v61 }
 0x779   :  { %v1898_v23 = vmax.f32 %v1884_v62, 0.0 }
 0x77a   :  { %v1899_v41 = vmax.f32 %v1886_v49, 0.0  ;;  %v1889_v59 = vpop.f32.mrb[38].mxu1 }
 0x77b   :  { %v1906_v30 = vsel %vm1116_vm8, %v1898_v23, 0.0  ;;  %v1890_v40 = vadd.f32 %v1889_v59, %v4036_v36  ;;  %v1891_v39 = vpop.f32.mrb[39].mxu1  ;;  %v1904_v36 = vsel %vm1115_vm7, %v1896_v0, 0.0  ;;  %v2019_v23 = vld [vmem:[%s4480_s11] sm:$0x3]  ;;  %s3316_s11 = smov [#allocation14]  }
 0x77c   :  { %v1910_v33 = vadd.f32 %v1906_v30, %v1902_v42  ;;  %v1907_v22 = vsel %vm1116_vm8, %v1899_v41, 0.0  ;;  %v1892_v17 = vadd.f32 %v1891_v39, %v4039_v61  ;;  %v1905_v61 = vsel %vm1115_vm7, %v1897_v27, 0.0  ;;  %v4961_v41 = vld [vmem:[#allocation55_spill] sm:$0xff]  ;;  %s2150_s19 = sshll.u32 %s3316_s11, 4  ;;  %s2151_s19 = int_to_ptr.vmem [resolvable:$true] %s2150_s19 }
 0x77d   :  { %v1911_v28 = vadd.f32 %v1907_v22, %v1903_v55  ;;  %v1900_v54 = vmax.f32 %v1890_v40, 0.0  ;;  %v2028_v59 = vrot.slane %v2019_v23, %v4961_v41  ;;  %s3269_s21 = scalar_lea.vmem %s2151_s19, 64  ;;  %p3274_p1 = scmp.lt.s32.totalorder %s2151_s19, %s2151_s19 }
 0x77e   :  { %v1918_v19 = vadd.f32 %v1914_v15, %v1910_v33  ;;  %v1901_v4 = vmax.f32 %v1892_v17, 0.0  ;;  %v4960_v15 = vld [vmem:[#allocation54_spill] sm:$0xff]  ;;  %p3270_p0 = scmp.ne.s32.totalorder %s2151_s19, %s3269_s21  ;;  %p3275_p2 = scmp.lt.s32.totalorder %s3269_s21, %s3269_s21 }
 0x77f   :  { %v1919_v21 = vadd.f32 %v1915_v52, %v1911_v28  ;;  %v1908_v29 = vsel %vm1117_vm9, %v1900_v54, 0.0  ;;  %v2024_v42 = vrot.slane %v2019_v23, %v4960_v15 }
 0x780   :  { %v1922_v48 = vmax.f32 %v1918_v19, 0.0  ;;  %v1912_v57 = vadd.f32 %v1908_v29, %v1904_v36  ;;  %v1909_v5 = vsel %vm1117_vm9, %v1901_v4, 0.0  ;;  %p3276_p3 = por %p3275_p2, %p3274_p1 }
 0x781   :  { %v1923_v63 = vmax.f32 %v1919_v21, 0.0  ;;  %v1913_v26 = vadd.f32 %v1909_v5, %v1905_v61 }
 0x782   :  { %v1926_v45 = vrot.slane %v1922_v48, 4  ;;  %v1920_v37 = vadd.f32 %v1916_v18, %v1912_v57  ;;  %p3277_p4 = pnand %p3276_p3, %p3270_p0 }
 0x783   :  { %v1932_v38 = vrot.slane %v1923_v63, 4  ;;  %v1921_v11 = vadd.f32 %v1917_v50, %v1913_v26 }
 0x784   :  { %v1927_v16 = vadd.f32 %v1926_v45, %v1922_v48  ;;  %v1924_v47 = vmax.f32 %v1920_v37, 0.0 }
 0x785   :  { %v1933_v8 = vadd.f32 %v1932_v38, %v1923_v63  ;;  %v1925_v58 = vmax.f32 %v1921_v11, 0.0 }
 0x786   :  { %v1928_v6 = vrot.slane %v1927_v16, 2  ;;  %v1938_v3 = vrot.slane %v1924_v47, 4 }
 0x787   :  { %v1934_v51 = vrot.slane %v1933_v8, 2  ;;  %v1944_v25 = vrot.slane %v1925_v58, 4 }
 0x788   :  { %v1929_v9 = vadd.f32 %v1928_v6, %v1927_v16  ;;  %v1939_v20 = vadd.f32 %v1938_v3, %v1924_v47 }
 0x789   :  { %v1945_v46 = vadd.f32 %v1944_v25, %v1925_v58  ;;  %v1935_v31 = vadd.f32 %v1934_v51, %v1933_v8 }
 0x78a   :  { %v1930_v13 = vrot.slane %v1929_v9, 1  ;;  %v1940_v1 = vrot.slane %v1939_v20, 2 }
 0x78b   :  { %v1946_v2 = vrot.slane %v1945_v46, 2  ;;  %v1936_v24 = vrot.slane %v1935_v31, 1 }
 0x78c   :  { %v1941_v44 = vadd.f32 %v1940_v1, %v1939_v20  ;;  %v1931_v32 = vadd.f32 %v1930_v13, %v1929_v9 }
 0x78d   :  { %v1947_v53 = vadd.f32 %v1946_v2, %v1945_v46  ;;  %v1937_v35 = vadd.f32 %v1936_v24, %v1935_v31 }
 0x78e   :  { %v1942_v56 = vrot.slane %v1941_v44, 1  ;;  %v1951_v34 = vmul.f32 0.125, %v1931_v32 }
 0x78f   :  { %v1948_v12 = vrot.slane %v1947_v53, 1  ;;  %v1952_v62 = vmul.f32 0.125, %v1937_v35 }
 0x790   :  { %v1943_v7 = vadd.f32 %v1942_v56, %v1941_v44 }
 0x791   :  { %v1949_v43 = vadd.f32 %v1948_v12, %v1947_v53 }
 0x792   :  { %v1953_v14 = vmul.f32 0.125, %v1943_v7 }
 0x793   :  { %v1954_v60 = vmul.f32 0.125, %v1949_v43 }
 0x794   :  { %v2036_v10 = vsel %vm2035_vm10, %v1953_v14, %v1951_v34 }
 0x795   :  { %v2037_v49 = vsel %vm2035_vm10, %v1954_v60, %v1952_v62 }
 0x796   :  { %2104 = vmatprep.mubr.f32.mxu0 %v2037_v49 }
 0x797   :  { %2105 = vmatmul.mubr.f32.vlgmr.msra.gmra.mrb[40].mxu0 %v2036_v10 }
 0x86a   :  { %v2106_v55 = vpop.f32.mrb[40].mxu0 }
 0x86b   :  { %v2107_v0 = vadd.f32 %v2106_v55, %v2024_v42  ;;  %v2108_v30 = vpop.f32.mrb[41].mxu0 }
 0x86c   :  { %v2109_v40 = vadd.f32 %v2108_v30, %v2028_v59 }
 0x86d   :  { %v2112_v39 = vsel %vm2111_vm11, %v2107_v0, -inf }
 0x86e   :  { %v2113_v27 = vsel %vm2111_vm11, %v2109_v40, -inf }
 0x86f   :  { %v2114_v33 = vmax.f32 %v2112_v39, %v2113_v27 }
 0x871   :  { %2115 = vmax.xlane.f32.xlu0 %v2114_v33 }
 0x8fe   :  { %v2116_v22 = vpop.xlane.xlu0 %2115 }
 0x8ff   :  { %v2117_v17 = vsub.f32 %v2107_v0, %v2116_v22  ;;  %v2118_v52 = vsub.f32 %v2109_v40, %v2116_v22 }
 0x901   :  { %v2119_v28 = vmul.f32 1.442695, %v2117_v17  ;;  %v2121_v54 = vmul.f32 1.442695, %v2118_v52 }
 0x903   :  { %3109 = vpow2.f32 %v2119_v28 }
 0x904   :  { %3111 = vpow2.f32 %v2121_v54 }
 0x90d   :  { %v3110_v19 = vpop.eup %3109 }
 0x90e   :  { %v3112_v4 = vpop.eup %3111  ;;  %v2123_v18 = vsel %vm2111_vm11, %v3110_v19, 0.0 }
 0x90f   :  { %v2124_v36 = vsel %vm2111_vm11, %v3112_v4, 0.0 }
 0x910   :  { %v2125_v21 = vadd.f32 %v2124_v36, %v2123_v18 }
 0x912   :  { %2126 = vadd.xlane.f32.xlu1 %v2125_v21 }
 0x99f   :  { %v2127_v29 = vpop.xlane.xlu1 %2126 }
 0x9a0   :  { %3113 = vlog2.f32 %v2127_v29 }
 0x9aa   :  { %v3114_v61 = vpop.eup %3113 }
 0x9ab   :  { %v2129_v48 = vmul.f32 0.6931472, %v3114_v61 }
 0x9ad   :  { %v2130_v57 = vsub.f32 %v2117_v17, %v2129_v48  ;;  %v2131_v5 = vsub.f32 %v2118_v52, %v2129_v48 }
 0x9af   :  { %v2134_v50 = vcombine.low %v2130_v57, %v2131_v5 }
 0x9b1   :  { %2162 = vst.sshfl [vmem:[#allocation14] sm:$0x33 pattern:$0x76325410] %v2134_v50 }
 0x9b2   :  { %3280 = shalt.err (!%p3277_p4)
}
 0x9b3   :  { %s3281_s18 = scalar_lea.hbm %s4481_s12, 64 }
 0x9b4   :  { %p3282_p5 = scmp.ne.s32.totalorder %s4481_s12, %s3281_s18  ;;  %p3285_p6 = scmp.lt.u32.totalorder %s3281_s18, %s4481_s12 }
 0x9b6   :  { %p3287_p7 = pnand %p3285_p6, %p3282_p5 }
 0x9b8   :  { %3290 = shalt.err (!%p3287_p7)
}
 0x9b9   :  { %2153 = dma.vmem_to_hbm [thread:$0]  %s2151_s19, 64, %s4481_s12, [#allocation4]  }
 0x9ba   :  { %3299 = dma.done.wait [#allocation4], 64  }
 0x9bb   :  { %3300 = vsyncadd [#allocation4], 4294967232 }
 0x9bc   :  { %2157 = vsyncpa [#allocation3], 1 }
 0x9bd   :  { %2158 = vsyncpa [#allocation6], 1 }
 0x9be   :  { %2159 = vsyncpa [#allocation9], 1 }
 0x9bf   :  { %2160 = vsyncpa [#allocation12], 1 }
 0x9c0   :  { %2161 = vsyncpa [#allocation4], 1 }

</bundles_post_ra>
